<compile_context>
chip_gen: v6e
topology: v6e:2x2x1
jax: 0.10.0
libtpu: 0.0.40
codegen_flags: <defaults>
</compile_context>

<pallas_src>
import functools
import math

import jax
import jax.numpy as jnp
from jax.experimental import pallas as pl

HIGHEST = jax.lax.Precision.HIGHEST


# ---------------------------------------------------------------------------
# The fused kernel: num_layers x (gather -> MHA -> mean -> scatter -> conv),
# plus the final averaging over the stack.  Single grid point, everything
# VMEM-resident.
# ---------------------------------------------------------------------------
def _fused_stack_kernel(nodes_ref, cg_ref, gather_ref, pos_ref, scat_t_ref,
                        keep_ref, attn_mask_ref, mean_mat_ref,
                        w_qkv_ref, b_qkv_ref, w_o_ref, b_o_ref, out_ref,
                        *, num_layers, num_heads, scale):
    f32 = jnp.float32
    d_model = out_ref.shape[-1]
    dh = d_model // num_heads

    nodes0 = nodes_ref[...]                     # (N+1, D), stays resident
    cur = nodes0
    acc = nodes0
    for _ in range(num_layers):                 # static unroll (num_layers small)
        # 1. Gather each user's sequence rows from the resident node table:
        #    one-hot matmul gather on the MXU (indices folded into gather_ref).
        x = jnp.dot(gather_ref[...], cur, preferred_element_type=f32) + pos_ref[...]

        # 2. Fused Q/K/V projection: one lane-dense (B*S, D) @ (D, 3D) matmul.
        qkv = jnp.dot(x, w_qkv_ref[...], preferred_element_type=f32) + b_qkv_ref[...]
        q = qkv[:, :d_model]                    # 128-lane-boundary slices (free)
        k = qkv[:, d_model:2 * d_model]
        v = qkv[:, 2 * d_model:]

        # 3. Multi-head self-attention over all users at once.  Cross-user
        #    attention is masked out with a block-diagonal additive mask, so
        #    the batch loop disappears; only the tiny static head loop remains.
        o_parts = []
        for h in range(num_heads):
            sl = slice(h * dh, (h + 1) * dh)
            s = jax.lax.dot_general(q[:, sl], k[:, sl], (((1,), (1,)), ((), ())),
                                    preferred_element_type=f32) * scale
            s = s + attn_mask_ref[...]
            s = s - jnp.max(s, axis=-1, keepdims=True)
            p = jnp.exp(s)                                                   # EUP
            p = p * pl.reciprocal(jnp.sum(p, axis=-1, keepdims=True), approx=True)
            # TODO(synk): attention-weight dropout (training-only) is omitted;
            # this implements the inference forward pass.
            o_parts.append(jnp.dot(p, v[:, sl], preferred_element_type=f32))
        o = jnp.concatenate(o_parts, axis=-1)                                # (B*S, D)

        # 4. Per-user mean over the sequence + fused out-projection
        #    (the out-projection is linear, so it commutes with the mean).
        means = jnp.dot(mean_mat_ref[...], o, preferred_element_type=f32)    # (B, D)
        users = jnp.dot(means, w_o_ref[...], preferred_element_type=f32) + b_o_ref[...]

        # 5. Scatter user embeddings back into the node table (one-hot matmul;
        #    assumes distinct user indices, as in the module's usage).
        upd = cur * keep_ref[...] + jnp.dot(scat_t_ref[...], users,
                                            preferred_element_type=f32)

        # 6. Graph convolution.  cg_ref is CG padded with an identity row for
        #    the trailing padding node, so one matmul implements
        #    nodes[:-1] = CG @ nodes[:-1] with nodes[-1] unchanged.
        cur = jnp.dot(cg_ref[...], upd, preferred_element_type=f32)          # (N+1, D)
        acc = acc + cur

    out_ref[...] = (acc * (1.0 / float(num_layers + 1))).astype(out_ref.dtype)


# ---------------------------------------------------------------------------
# Wrapper: hoists all index-dependent operator construction (one-hot gather /
# scatter matrices, block-diagonal attention mask, sequence-mean operator,
# padded CG, positional embeddings) into tiny one-time XLA ops, then issues a
# single fused pallas_call for the whole stack.
# ---------------------------------------------------------------------------
def local_stg2_forward(cg, nodes_embeds, seqs, masks, user_idx, params,
                       *, num_layers, num_heads):
    f32 = jnp.float32
    n_rows, d = nodes_embeds.shape          # N+1 rows (incl. trailing padding row)
    n = n_rows - 1
    b, s = seqs.shape

    # positional embeddings (depend only on masks -> hoisted once)
    pos_ids = jnp.arange(1, s + 1, dtype=jnp.int32)[None, :] * masks
    pos = jnp.take(params["pos_emb"], pos_ids, axis=0).reshape(b * s, d).astype(f32)

    # one-hot gather / scatter operators (depend only on seqs / user_idx)
    gather = jax.nn.one_hot(seqs.reshape(-1), n_rows, dtype=f32)            # (B*S, N+1)
    scat_t = jax.nn.one_hot(user_idx, n_rows, dtype=f32).T                  # (N+1, B)
    keep = 1.0 - jnp.sum(scat_t, axis=1, keepdims=True)                     # (N+1, 1)

    # block-diagonal additive mask: attention only within a user's own sequence
    batch_id = jnp.repeat(jnp.arange(b, dtype=jnp.int32), s)                # (B*S,)
    attn_mask = jnp.where(batch_id[:, None] == batch_id[None, :],
                          0.0, -1e9).astype(f32)                            # (B*S, B*S)

    # per-user sequence-mean operator
    mean_mat = (jax.nn.one_hot(batch_id, b, dtype=f32) / float(s)).T        # (B, B*S)

    # CG padded so the padding row passes through the "graph conv" unchanged
    cg_ext = (jnp.zeros((n_rows, n_rows), f32)
              .at[:n, :n].set(cg.astype(f32))
              .at[n, n].set(1.0))

    kernel = functools.partial(
        _fused_stack_kernel, num_layers=num_layers, num_heads=num_heads,
        scale=1.0 / math.sqrt(d // num_heads))

    operands = (nodes_embeds.astype(f32), cg_ext, gather, pos, scat_t, keep,
                attn_mask, mean_mat,
                params["w_qkv"], params["b_qkv"], params["w_o"], params["b_o"])

    def _full(a):
        return pl.BlockSpec(a.shape, lambda *_: (0,) * a.ndim)

    return pl.pallas_call(
        kernel,
        out_shape=jax.ShapeDtypeStruct((n_rows, d), f32),
        in_specs=[_full(a) for a in operands],
        out_specs=_full(nodes_embeds),
    )(*operands)


# ---------------------------------------------------------------------------
# Parameters (torch layout) + one-time kernel layout prep (hoisted)
# ---------------------------------------------------------------------------
def init_raw_params(key, seq_len, emb_dim):
    stdv = 1.0 / math.sqrt(emb_dim)
    ks = jax.random.split(key, 5)
    u = lambda k, shape: jax.random.uniform(k, shape, jnp.float32, -stdv, stdv)
    pos = u(ks[0], (seq_len + 1, emb_dim)).at[0].set(0.0)          # padding_idx=0
    return {
        "pos_emb": pos,
        "in_proj_w": u(ks[1], (3 * emb_dim, emb_dim)),
        "in_proj_b": u(ks[2], (3 * emb_dim,)),
        "out_proj_w": u(ks[3], (emb_dim, emb_dim)),
        "out_proj_b": u(ks[4], (emb_dim,)),
    }


def prep_kernel_params(raw):
    return {
        "pos_emb": raw["pos_emb"],
        "w_qkv": raw["in_proj_w"].T,          # (D, 3D) = [Wq^T | Wk^T | Wv^T]
        "b_qkv": raw["in_proj_b"][None, :],   # (1, 3D)
        "w_o": raw["out_proj_w"].T,           # (D, D)
        "b_o": raw["out_proj_b"][None, :],    # (1, D)
    }


# ---------------------------------------------------------------------------
# Pure-JAX reference mirroring the PyTorch forward (eval mode, dense CG)
# ---------------------------------------------------------------------------
def _ref_mha_mean(x, raw, num_heads):
    b, s, d = x.shape
    dh = d // num_heads
    qkv = jnp.einsum("bsd,ed->bse", x, raw["in_proj_w"], precision=HIGHEST) + raw["in_proj_b"]
    q, k, v = qkv[..., :d], qkv[..., d:2 * d], qkv[..., 2 * d:]
    split = lambda t: t.reshape(b, s, num_heads, dh).transpose(0, 2, 1, 3)
    q, k, v = split(q), split(k), split(v)
    scores = jnp.einsum("bhqd,bhkd->bhqk", q, k, precision=HIGHEST) / math.sqrt(dh)
    p = jax.nn.softmax(scores, axis=-1)
    o = jnp.einsum("bhqk,bhkd->bhqd", p, v, precision=HIGHEST)
    o = o.transpose(0, 2, 1, 3).reshape(b, s, d)
    out = jnp.einsum("bsd,ed->bse", o, raw["out_proj_w"], precision=HIGHEST) + raw["out_proj_b"]
    return out.mean(axis=1)


def _ref_layer(cg, nodes, seqs, masks, user_idx, raw, num_heads):
    s = seqs.shape[1]
    seq_e = nodes[seqs]
    pos = jnp.arange(1, s + 1, dtype=jnp.int32)[None, :] * masks
    x = seq_e + raw["pos_emb"][pos]
    users = _ref_mha_mean(x, raw, num_heads)
    nodes = nodes.at[user_idx].set(users)
    conv = jnp.dot(cg, nodes[:-1], precision=HIGHEST)
    return nodes.at[:-1].set(conv)


def _ref_forward(cg, nodes, seqs, masks, user_idx, raw, num_layers, num_heads):
    acc = nodes
    cur = nodes
    for _ in range(num_layers):
        cur = _ref_layer(cg, cur, seqs, masks, user_idx, raw, num_heads)
        acc = acc + cur
    return acc / float(num_layers + 1)


if __name__ == "__main__":
    num_users, num_cats = 16, 48
    num_nodes = num_users + num_cats            # 64 graph nodes (+1 padding row)
    seq_len, emb_dim, num_heads = 8, 128, 4
    batch, num_layers = 4, 2

    key = jax.random.PRNGKey(0)
    k_par, k_nodes, k_cg, k_seq, k_len = jax.random.split(key, 5)

    raw = init_raw_params(k_par, seq_len, emb_dim)
    params = prep_kernel_params(raw)

    nodes_embeds = jax.random.normal(k_nodes, (num_nodes + 1, emb_dim), jnp.float32)

    # Dense, row-normalized adjacency standing in for the sparse CG.
    adj = (jax.random.uniform(k_cg, (num_nodes, num_nodes)) < 0.2).astype(jnp.float32)
    adj = adj + jnp.eye(num_nodes, dtype=jnp.float32)
    cg = adj / jnp.sum(adj, axis=1, keepdims=True)

    lengths = jax.random.randint(k_len, (batch,), 3, seq_len + 1)
    masks = (jnp.arange(seq_len)[None, :] < lengths[:, None]).astype(jnp.int32)   # (B, S)
    seqs_raw = jax.random.randint(k_seq, (batch, seq_len), num_users, num_nodes)
    seqs = jnp.where(masks == 1, seqs_raw, num_nodes)      # masked slots -> padding row
    user_idx = jnp.arange(batch, dtype=jnp.int32)          # distinct user node rows

    fwd = jax.jit(functools.partial(local_stg2_forward,
                                    num_layers=num_layers, num_heads=num_heads))
    out = jax.block_until_ready(fwd(cg, nodes_embeds, seqs, masks, user_idx, params))

    ref = _ref_forward(cg, nodes_embeds, seqs, masks, user_idx, raw,
                       num_layers, num_heads)
    assert out.shape == (num_nodes + 1, emb_dim), out.shape
    max_err = float(jnp.max(jnp.abs(out - ref)))
    # Tolerance is slightly looser than pure-f32 because the softmax
    # normalization uses the EUP approx reciprocal (per perf review).
    assert jnp.allclose(out, ref, atol=2e-3, rtol=2e-3), f"mismatch, max abs err={max_err}"
    print("KERNEL_OK")
</pallas_src>

<mosaic_0001>
module attributes {stable_mosaic.version = 11 : i64} {
  func.func @_fused_stack_kernel(%arg0: memref<65x128xf32, #tpu.memory_space<vmem>>, %arg1: memref<65x65xf32, #tpu.memory_space<vmem>>, %arg2: memref<32x65xf32, #tpu.memory_space<vmem>>, %arg3: memref<32x128xf32, #tpu.memory_space<vmem>>, %arg4: memref<65x4xf32, #tpu.memory_space<vmem>>, %arg5: memref<65x1xf32, #tpu.memory_space<vmem>>, %arg6: memref<32x32xf32, #tpu.memory_space<vmem>>, %arg7: memref<4x32xf32, #tpu.memory_space<vmem>>, %arg8: memref<128x384xf32, #tpu.memory_space<vmem>>, %arg9: memref<1x384xf32, #tpu.memory_space<vmem>>, %arg10: memref<128x128xf32, #tpu.memory_space<vmem>>, %arg11: memref<1x128xf32, #tpu.memory_space<vmem>>, %arg12: memref<65x128xf32, #tpu.memory_space<vmem>>) attributes {dimension_semantics = [], scalar_prefetch = 0 : i64, scratch_operands = 0 : i64, tpu.core_type = #tpu.core_type<tc>} {
    %c0 = arith.constant 0 : index
    %c0_0 = arith.constant 0 : index
    %0 = vector.load %arg0[%c0, %c0_0] : memref<65x128xf32, #tpu.memory_space<vmem>>, vector<65x128xf32>
    %c0_1 = arith.constant 0 : index
    %c0_2 = arith.constant 0 : index
    %1 = vector.load %arg2[%c0_1, %c0_2] : memref<32x65xf32, #tpu.memory_space<vmem>>, vector<32x65xf32>
    %cst = arith.constant dense<0.000000e+00> : vector<32x128xf32>
    %2 = tpu.matmul %1, %0, %cst {dimension_numbers = #tpu.dot_dimension_numbers<[1], [0], [0], [1], [0, 0, 1, 1], [], []>} : vector<32x65xf32>, vector<65x128xf32>, vector<32x128xf32> -> vector<32x128xf32>
    %c0_3 = arith.constant 0 : index
    %c0_4 = arith.constant 0 : index
    %3 = vector.load %arg3[%c0_3, %c0_4] : memref<32x128xf32, #tpu.memory_space<vmem>>, vector<32x128xf32>
    %4 = arith.addf %2, %3 : vector<32x128xf32>
    %c0_5 = arith.constant 0 : index
    %c0_6 = arith.constant 0 : index
    %5 = vector.load %arg8[%c0_5, %c0_6] : memref<128x384xf32, #tpu.memory_space<vmem>>, vector<128x384xf32>
    %cst_7 = arith.constant dense<0.000000e+00> : vector<32x384xf32>
    %6 = tpu.matmul %4, %5, %cst_7 {dimension_numbers = #tpu.dot_dimension_numbers<[1], [0], [0], [1], [0, 0, 1, 1], [], []>} : vector<32x128xf32>, vector<128x384xf32>, vector<32x384xf32> -> vector<32x384xf32>
    %c0_8 = arith.constant 0 : index
    %c0_9 = arith.constant 0 : index
    %7 = vector.load %arg9[%c0_8, %c0_9] : memref<1x384xf32, #tpu.memory_space<vmem>>, vector<1x384xf32>
    %8 = vector.broadcast %7 : vector<1x384xf32> to vector<32x384xf32>
    %9 = arith.addf %6, %8 : vector<32x384xf32>
    %10 = vector.extract_strided_slice %9 {offsets = [0, 0], sizes = [32, 128], strides = [1, 1]} : vector<32x384xf32> to vector<32x128xf32>
    %11 = vector.extract_strided_slice %9 {offsets = [0, 128], sizes = [32, 128], strides = [1, 1]} : vector<32x384xf32> to vector<32x128xf32>
    %12 = vector.extract_strided_slice %9 {offsets = [0, 256], sizes = [32, 128], strides = [1, 1]} : vector<32x384xf32> to vector<32x128xf32>
    %13 = vector.extract_strided_slice %10 {offsets = [0, 0], sizes = [32, 32], strides = [1, 1]} : vector<32x128xf32> to vector<32x32xf32>
    %14 = vector.extract_strided_slice %11 {offsets = [0, 0], sizes = [32, 32], strides = [1, 1]} : vector<32x128xf32> to vector<32x32xf32>
    %cst_10 = arith.constant dense<0.000000e+00> : vector<32x32xf32>
    %15 = tpu.matmul %13, %14, %cst_10 {dimension_numbers = #tpu.dot_dimension_numbers<[1], [1], [0], [0], [0, 0, 1, 0], [], []>} : vector<32x32xf32>, vector<32x32xf32>, vector<32x32xf32> -> vector<32x32xf32>
    %cst_11 = arith.constant 0.176776692 : f32
    %16 = vector.broadcast %cst_11 : f32 to vector<32x32xf32>
    %17 = arith.mulf %15, %16 : vector<32x32xf32>
    %c0_12 = arith.constant 0 : index
    %c0_13 = arith.constant 0 : index
    %18 = vector.load %arg6[%c0_12, %c0_13] : memref<32x32xf32, #tpu.memory_space<vmem>>, vector<32x32xf32>
    %19 = arith.addf %17, %18 : vector<32x32xf32>
    %cst_14 = arith.constant dense<0xFF800000> : vector<32xf32>
    %20 = vector.multi_reduction <maximumf>, %19, %cst_14 [1] : vector<32x32xf32> to vector<32xf32>
    %21 = vector.shape_cast %20 : vector<32xf32> to vector<32x1xf32>
    %22 = vector.broadcast %21 : vector<32x1xf32> to vector<32x32xf32>
    %23 = arith.subf %19, %22 : vector<32x32xf32>
    %24 = math.exp %23 : vector<32x32xf32>
    %cst_15 = arith.constant dense<0.000000e+00> : vector<32xf32>
    %25 = vector.multi_reduction <add>, %24, %cst_15 [1] : vector<32x32xf32> to vector<32xf32>
    %26 = vector.shape_cast %25 : vector<32xf32> to vector<32x1xf32>
    %27 = tpu.reciprocal %26 {approx = true} : vector<32x1xf32> -> vector<32x1xf32>
    %28 = vector.broadcast %27 : vector<32x1xf32> to vector<32x32xf32>
    %29 = arith.mulf %24, %28 : vector<32x32xf32>
    %30 = vector.extract_strided_slice %12 {offsets = [0, 0], sizes = [32, 32], strides = [1, 1]} : vector<32x128xf32> to vector<32x32xf32>
    %cst_16 = arith.constant dense<0.000000e+00> : vector<32x32xf32>
    %31 = tpu.matmul %29, %30, %cst_16 {dimension_numbers = #tpu.dot_dimension_numbers<[1], [0], [0], [1], [0, 0, 1, 1], [], []>} : vector<32x32xf32>, vector<32x32xf32>, vector<32x32xf32> -> vector<32x32xf32>
    %32 = vector.extract_strided_slice %10 {offsets = [0, 32], sizes = [32, 32], strides = [1, 1]} : vector<32x128xf32> to vector<32x32xf32>
    %33 = vector.extract_strided_slice %11 {offsets = [0, 32], sizes = [32, 32], strides = [1, 1]} : vector<32x128xf32> to vector<32x32xf32>
    %cst_17 = arith.constant dense<0.000000e+00> : vector<32x32xf32>
    %34 = tpu.matmul %32, %33, %cst_17 {dimension_numbers = #tpu.dot_dimension_numbers<[1], [1], [0], [0], [0, 0, 1, 0], [], []>} : vector<32x32xf32>, vector<32x32xf32>, vector<32x32xf32> -> vector<32x32xf32>
    %cst_18 = arith.constant 0.176776692 : f32
    %35 = vector.broadcast %cst_18 : f32 to vector<32x32xf32>
    %36 = arith.mulf %34, %35 : vector<32x32xf32>
    %c0_19 = arith.constant 0 : index
    %c0_20 = arith.constant 0 : index
    %37 = vector.load %arg6[%c0_19, %c0_20] : memref<32x32xf32, #tpu.memory_space<vmem>>, vector<32x32xf32>
    %38 = arith.addf %36, %37 : vector<32x32xf32>
    %cst_21 = arith.constant dense<0xFF800000> : vector<32xf32>
    %39 = vector.multi_reduction <maximumf>, %38, %cst_21 [1] : vector<32x32xf32> to vector<32xf32>
    %40 = vector.shape_cast %39 : vector<32xf32> to vector<32x1xf32>
    %41 = vector.broadcast %40 : vector<32x1xf32> to vector<32x32xf32>
    %42 = arith.subf %38, %41 : vector<32x32xf32>
    %43 = math.exp %42 : vector<32x32xf32>
    %cst_22 = arith.constant dense<0.000000e+00> : vector<32xf32>
    %44 = vector.multi_reduction <add>, %43, %cst_22 [1] : vector<32x32xf32> to vector<32xf32>
    %45 = vector.shape_cast %44 : vector<32xf32> to vector<32x1xf32>
    %46 = tpu.reciprocal %45 {approx = true} : vector<32x1xf32> -> vector<32x1xf32>
    %47 = vector.broadcast %46 : vector<32x1xf32> to vector<32x32xf32>
    %48 = arith.mulf %43, %47 : vector<32x32xf32>
    %49 = vector.extract_strided_slice %12 {offsets = [0, 32], sizes = [32, 32], strides = [1, 1]} : vector<32x128xf32> to vector<32x32xf32>
    %cst_23 = arith.constant dense<0.000000e+00> : vector<32x32xf32>
    %50 = tpu.matmul %48, %49, %cst_23 {dimension_numbers = #tpu.dot_dimension_numbers<[1], [0], [0], [1], [0, 0, 1, 1], [], []>} : vector<32x32xf32>, vector<32x32xf32>, vector<32x32xf32> -> vector<32x32xf32>
    %51 = vector.extract_strided_slice %10 {offsets = [0, 64], sizes = [32, 32], strides = [1, 1]} : vector<32x128xf32> to vector<32x32xf32>
    %52 = vector.extract_strided_slice %11 {offsets = [0, 64], sizes = [32, 32], strides = [1, 1]} : vector<32x128xf32> to vector<32x32xf32>
    %cst_24 = arith.constant dense<0.000000e+00> : vector<32x32xf32>
    %53 = tpu.matmul %51, %52, %cst_24 {dimension_numbers = #tpu.dot_dimension_numbers<[1], [1], [0], [0], [0, 0, 1, 0], [], []>} : vector<32x32xf32>, vector<32x32xf32>, vector<32x32xf32> -> vector<32x32xf32>
    %cst_25 = arith.constant 0.176776692 : f32
    %54 = vector.broadcast %cst_25 : f32 to vector<32x32xf32>
    %55 = arith.mulf %53, %54 : vector<32x32xf32>
    %c0_26 = arith.constant 0 : index
    %c0_27 = arith.constant 0 : index
    %56 = vector.load %arg6[%c0_26, %c0_27] : memref<32x32xf32, #tpu.memory_space<vmem>>, vector<32x32xf32>
    %57 = arith.addf %55, %56 : vector<32x32xf32>
    %cst_28 = arith.constant dense<0xFF800000> : vector<32xf32>
    %58 = vector.multi_reduction <maximumf>, %57, %cst_28 [1] : vector<32x32xf32> to vector<32xf32>
    %59 = vector.shape_cast %58 : vector<32xf32> to vector<32x1xf32>
    %60 = vector.broadcast %59 : vector<32x1xf32> to vector<32x32xf32>
    %61 = arith.subf %57, %60 : vector<32x32xf32>
    %62 = math.exp %61 : vector<32x32xf32>
    %cst_29 = arith.constant dense<0.000000e+00> : vector<32xf32>
    %63 = vector.multi_reduction <add>, %62, %cst_29 [1] : vector<32x32xf32> to vector<32xf32>
    %64 = vector.shape_cast %63 : vector<32xf32> to vector<32x1xf32>
    %65 = tpu.reciprocal %64 {approx = true} : vector<32x1xf32> -> vector<32x1xf32>
    %66 = vector.broadcast %65 : vector<32x1xf32> to vector<32x32xf32>
    %67 = arith.mulf %62, %66 : vector<32x32xf32>
    %68 = vector.extract_strided_slice %12 {offsets = [0, 64], sizes = [32, 32], strides = [1, 1]} : vector<32x128xf32> to vector<32x32xf32>
    %cst_30 = arith.constant dense<0.000000e+00> : vector<32x32xf32>
    %69 = tpu.matmul %67, %68, %cst_30 {dimension_numbers = #tpu.dot_dimension_numbers<[1], [0], [0], [1], [0, 0, 1, 1], [], []>} : vector<32x32xf32>, vector<32x32xf32>, vector<32x32xf32> -> vector<32x32xf32>
    %70 = vector.extract_strided_slice %10 {offsets = [0, 96], sizes = [32, 32], strides = [1, 1]} : vector<32x128xf32> to vector<32x32xf32>
    %71 = vector.extract_strided_slice %11 {offsets = [0, 96], sizes = [32, 32], strides = [1, 1]} : vector<32x128xf32> to vector<32x32xf32>
    %cst_31 = arith.constant dense<0.000000e+00> : vector<32x32xf32>
    %72 = tpu.matmul %70, %71, %cst_31 {dimension_numbers = #tpu.dot_dimension_numbers<[1], [1], [0], [0], [0, 0, 1, 0], [], []>} : vector<32x32xf32>, vector<32x32xf32>, vector<32x32xf32> -> vector<32x32xf32>
    %cst_32 = arith.constant 0.176776692 : f32
    %73 = vector.broadcast %cst_32 : f32 to vector<32x32xf32>
    %74 = arith.mulf %72, %73 : vector<32x32xf32>
    %c0_33 = arith.constant 0 : index
    %c0_34 = arith.constant 0 : index
    %75 = vector.load %arg6[%c0_33, %c0_34] : memref<32x32xf32, #tpu.memory_space<vmem>>, vector<32x32xf32>
    %76 = arith.addf %74, %75 : vector<32x32xf32>
    %cst_35 = arith.constant dense<0xFF800000> : vector<32xf32>
    %77 = vector.multi_reduction <maximumf>, %76, %cst_35 [1] : vector<32x32xf32> to vector<32xf32>
    %78 = vector.shape_cast %77 : vector<32xf32> to vector<32x1xf32>
    %79 = vector.broadcast %78 : vector<32x1xf32> to vector<32x32xf32>
    %80 = arith.subf %76, %79 : vector<32x32xf32>
    %81 = math.exp %80 : vector<32x32xf32>
    %cst_36 = arith.constant dense<0.000000e+00> : vector<32xf32>
    %82 = vector.multi_reduction <add>, %81, %cst_36 [1] : vector<32x32xf32> to vector<32xf32>
    %83 = vector.shape_cast %82 : vector<32xf32> to vector<32x1xf32>
    %84 = tpu.reciprocal %83 {approx = true} : vector<32x1xf32> -> vector<32x1xf32>
    %85 = vector.broadcast %84 : vector<32x1xf32> to vector<32x32xf32>
    %86 = arith.mulf %81, %85 : vector<32x32xf32>
    %87 = vector.extract_strided_slice %12 {offsets = [0, 96], sizes = [32, 32], strides = [1, 1]} : vector<32x128xf32> to vector<32x32xf32>
    %cst_37 = arith.constant dense<0.000000e+00> : vector<32x32xf32>
    %88 = tpu.matmul %86, %87, %cst_37 {dimension_numbers = #tpu.dot_dimension_numbers<[1], [0], [0], [1], [0, 0, 1, 1], [], []>} : vector<32x32xf32>, vector<32x32xf32>, vector<32x32xf32> -> vector<32x32xf32>
    %89 = tpu.concatenate %31, %50, %69, %88 in 1 : vector<32x32xf32>, vector<32x32xf32>, vector<32x32xf32>, vector<32x32xf32> -> vector<32x128xf32>
    %c0_38 = arith.constant 0 : index
    %c0_39 = arith.constant 0 : index
    %90 = vector.load %arg7[%c0_38, %c0_39] : memref<4x32xf32, #tpu.memory_space<vmem>>, vector<4x32xf32>
    %cst_40 = arith.constant dense<0.000000e+00> : vector<4x128xf32>
    %91 = tpu.matmul %90, %89, %cst_40 {dimension_numbers = #tpu.dot_dimension_numbers<[1], [0], [0], [1], [0, 0, 1, 1], [], []>} : vector<4x32xf32>, vector<32x128xf32>, vector<4x128xf32> -> vector<4x128xf32>
    %c0_41 = arith.constant 0 : index
    %c0_42 = arith.constant 0 : index
    %92 = vector.load %arg10[%c0_41, %c0_42] : memref<128x128xf32, #tpu.memory_space<vmem>>, vector<128x128xf32>
    %cst_43 = arith.constant dense<0.000000e+00> : vector<4x128xf32>
    %93 = tpu.matmul %91, %92, %cst_43 {dimension_numbers = #tpu.dot_dimension_numbers<[1], [0], [0], [1], [0, 0, 1, 1], [], []>} : vector<4x128xf32>, vector<128x128xf32>, vector<4x128xf32> -> vector<4x128xf32>
    %c0_44 = arith.constant 0 : index
    %c0_45 = arith.constant 0 : index
    %94 = vector.load %arg11[%c0_44, %c0_45] : memref<1x128xf32, #tpu.memory_space<vmem>>, vector<1x128xf32>
    %95 = vector.broadcast %94 : vector<1x128xf32> to vector<4x128xf32>
    %96 = arith.addf %93, %95 : vector<4x128xf32>
    %c0_46 = arith.constant 0 : index
    %c0_47 = arith.constant 0 : index
    %97 = vector.load %arg5[%c0_46, %c0_47] : memref<65x1xf32, #tpu.memory_space<vmem>>, vector<65x1xf32>
    %98 = vector.broadcast %97 : vector<65x1xf32> to vector<65x128xf32>
    %99 = arith.mulf %0, %98 : vector<65x128xf32>
    %c0_48 = arith.constant 0 : index
    %c0_49 = arith.constant 0 : index
    %100 = vector.load %arg4[%c0_48, %c0_49] : memref<65x4xf32, #tpu.memory_space<vmem>>, vector<65x4xf32>
    %cst_50 = arith.constant dense<0.000000e+00> : vector<65x128xf32>
    %101 = tpu.matmul %100, %96, %cst_50 {dimension_numbers = #tpu.dot_dimension_numbers<[1], [0], [0], [1], [0, 0, 1, 1], [], []>} : vector<65x4xf32>, vector<4x128xf32>, vector<65x128xf32> -> vector<65x128xf32>
    %102 = arith.addf %99, %101 : vector<65x128xf32>
    %c0_51 = arith.constant 0 : index
    %c0_52 = arith.constant 0 : index
    %103 = vector.load %arg1[%c0_51, %c0_52] : memref<65x65xf32, #tpu.memory_space<vmem>>, vector<65x65xf32>
    %cst_53 = arith.constant dense<0.000000e+00> : vector<65x128xf32>
    %104 = tpu.matmul %103, %102, %cst_53 {dimension_numbers = #tpu.dot_dimension_numbers<[1], [0], [0], [1], [0, 0, 1, 1], [], []>} : vector<65x65xf32>, vector<65x128xf32>, vector<65x128xf32> -> vector<65x128xf32>
    %105 = arith.addf %0, %104 : vector<65x128xf32>
    %c0_54 = arith.constant 0 : index
    %c0_55 = arith.constant 0 : index
    %106 = vector.load %arg2[%c0_54, %c0_55] : memref<32x65xf32, #tpu.memory_space<vmem>>, vector<32x65xf32>
    %cst_56 = arith.constant dense<0.000000e+00> : vector<32x128xf32>
    %107 = tpu.matmul %106, %104, %cst_56 {dimension_numbers = #tpu.dot_dimension_numbers<[1], [0], [0], [1], [0, 0, 1, 1], [], []>} : vector<32x65xf32>, vector<65x128xf32>, vector<32x128xf32> -> vector<32x128xf32>
    %c0_57 = arith.constant 0 : index
    %c0_58 = arith.constant 0 : index
    %108 = vector.load %arg3[%c0_57, %c0_58] : memref<32x128xf32, #tpu.memory_space<vmem>>, vector<32x128xf32>
    %109 = arith.addf %107, %108 : vector<32x128xf32>
    %c0_59 = arith.constant 0 : index
    %c0_60 = arith.constant 0 : index
    %110 = vector.load %arg8[%c0_59, %c0_60] : memref<128x384xf32, #tpu.memory_space<vmem>>, vector<128x384xf32>
    %cst_61 = arith.constant dense<0.000000e+00> : vector<32x384xf32>
    %111 = tpu.matmul %109, %110, %cst_61 {dimension_numbers = #tpu.dot_dimension_numbers<[1], [0], [0], [1], [0, 0, 1, 1], [], []>} : vector<32x128xf32>, vector<128x384xf32>, vector<32x384xf32> -> vector<32x384xf32>
    %c0_62 = arith.constant 0 : index
    %c0_63 = arith.constant 0 : index
    %112 = vector.load %arg9[%c0_62, %c0_63] : memref<1x384xf32, #tpu.memory_space<vmem>>, vector<1x384xf32>
    %113 = vector.broadcast %112 : vector<1x384xf32> to vector<32x384xf32>
    %114 = arith.addf %111, %113 : vector<32x384xf32>
    %115 = vector.extract_strided_slice %114 {offsets = [0, 0], sizes = [32, 128], strides = [1, 1]} : vector<32x384xf32> to vector<32x128xf32>
    %116 = vector.extract_strided_slice %114 {offsets = [0, 128], sizes = [32, 128], strides = [1, 1]} : vector<32x384xf32> to vector<32x128xf32>
    %117 = vector.extract_strided_slice %114 {offsets = [0, 256], sizes = [32, 128], strides = [1, 1]} : vector<32x384xf32> to vector<32x128xf32>
    %118 = vector.extract_strided_slice %115 {offsets = [0, 0], sizes = [32, 32], strides = [1, 1]} : vector<32x128xf32> to vector<32x32xf32>
    %119 = vector.extract_strided_slice %116 {offsets = [0, 0], sizes = [32, 32], strides = [1, 1]} : vector<32x128xf32> to vector<32x32xf32>
    %cst_64 = arith.constant dense<0.000000e+00> : vector<32x32xf32>
    %120 = tpu.matmul %118, %119, %cst_64 {dimension_numbers = #tpu.dot_dimension_numbers<[1], [1], [0], [0], [0, 0, 1, 0], [], []>} : vector<32x32xf32>, vector<32x32xf32>, vector<32x32xf32> -> vector<32x32xf32>
    %cst_65 = arith.constant 0.176776692 : f32
    %121 = vector.broadcast %cst_65 : f32 to vector<32x32xf32>
    %122 = arith.mulf %120, %121 : vector<32x32xf32>
    %c0_66 = arith.constant 0 : index
    %c0_67 = arith.constant 0 : index
    %123 = vector.load %arg6[%c0_66, %c0_67] : memref<32x32xf32, #tpu.memory_space<vmem>>, vector<32x32xf32>
    %124 = arith.addf %122, %123 : vector<32x32xf32>
    %cst_68 = arith.constant dense<0xFF800000> : vector<32xf32>
    %125 = vector.multi_reduction <maximumf>, %124, %cst_68 [1] : vector<32x32xf32> to vector<32xf32>
    %126 = vector.shape_cast %125 : vector<32xf32> to vector<32x1xf32>
    %127 = vector.broadcast %126 : vector<32x1xf32> to vector<32x32xf32>
    %128 = arith.subf %124, %127 : vector<32x32xf32>
    %129 = math.exp %128 : vector<32x32xf32>
    %cst_69 = arith.constant dense<0.000000e+00> : vector<32xf32>
    %130 = vector.multi_reduction <add>, %129, %cst_69 [1] : vector<32x32xf32> to vector<32xf32>
    %131 = vector.shape_cast %130 : vector<32xf32> to vector<32x1xf32>
    %132 = tpu.reciprocal %131 {approx = true} : vector<32x1xf32> -> vector<32x1xf32>
    %133 = vector.broadcast %132 : vector<32x1xf32> to vector<32x32xf32>
    %134 = arith.mulf %129, %133 : vector<32x32xf32>
    %135 = vector.extract_strided_slice %117 {offsets = [0, 0], sizes = [32, 32], strides = [1, 1]} : vector<32x128xf32> to vector<32x32xf32>
    %cst_70 = arith.constant dense<0.000000e+00> : vector<32x32xf32>
    %136 = tpu.matmul %134, %135, %cst_70 {dimension_numbers = #tpu.dot_dimension_numbers<[1], [0], [0], [1], [0, 0, 1, 1], [], []>} : vector<32x32xf32>, vector<32x32xf32>, vector<32x32xf32> -> vector<32x32xf32>
    %137 = vector.extract_strided_slice %115 {offsets = [0, 32], sizes = [32, 32], strides = [1, 1]} : vector<32x128xf32> to vector<32x32xf32>
    %138 = vector.extract_strided_slice %116 {offsets = [0, 32], sizes = [32, 32], strides = [1, 1]} : vector<32x128xf32> to vector<32x32xf32>
    %cst_71 = arith.constant dense<0.000000e+00> : vector<32x32xf32>
    %139 = tpu.matmul %137, %138, %cst_71 {dimension_numbers = #tpu.dot_dimension_numbers<[1], [1], [0], [0], [0, 0, 1, 0], [], []>} : vector<32x32xf32>, vector<32x32xf32>, vector<32x32xf32> -> vector<32x32xf32>
    %cst_72 = arith.constant 0.176776692 : f32
    %140 = vector.broadcast %cst_72 : f32 to vector<32x32xf32>
    %141 = arith.mulf %139, %140 : vector<32x32xf32>
    %c0_73 = arith.constant 0 : index
    %c0_74 = arith.constant 0 : index
    %142 = vector.load %arg6[%c0_73, %c0_74] : memref<32x32xf32, #tpu.memory_space<vmem>>, vector<32x32xf32>
    %143 = arith.addf %141, %142 : vector<32x32xf32>
    %cst_75 = arith.constant dense<0xFF800000> : vector<32xf32>
    %144 = vector.multi_reduction <maximumf>, %143, %cst_75 [1] : vector<32x32xf32> to vector<32xf32>
    %145 = vector.shape_cast %144 : vector<32xf32> to vector<32x1xf32>
    %146 = vector.broadcast %145 : vector<32x1xf32> to vector<32x32xf32>
    %147 = arith.subf %143, %146 : vector<32x32xf32>
    %148 = math.exp %147 : vector<32x32xf32>
    %cst_76 = arith.constant dense<0.000000e+00> : vector<32xf32>
    %149 = vector.multi_reduction <add>, %148, %cst_76 [1] : vector<32x32xf32> to vector<32xf32>
    %150 = vector.shape_cast %149 : vector<32xf32> to vector<32x1xf32>
    %151 = tpu.reciprocal %150 {approx = true} : vector<32x1xf32> -> vector<32x1xf32>
    %152 = vector.broadcast %151 : vector<32x1xf32> to vector<32x32xf32>
    %153 = arith.mulf %148, %152 : vector<32x32xf32>
    %154 = vector.extract_strided_slice %117 {offsets = [0, 32], sizes = [32, 32], strides = [1, 1]} : vector<32x128xf32> to vector<32x32xf32>
    %cst_77 = arith.constant dense<0.000000e+00> : vector<32x32xf32>
    %155 = tpu.matmul %153, %154, %cst_77 {dimension_numbers = #tpu.dot_dimension_numbers<[1], [0], [0], [1], [0, 0, 1, 1], [], []>} : vector<32x32xf32>, vector<32x32xf32>, vector<32x32xf32> -> vector<32x32xf32>
    %156 = vector.extract_strided_slice %115 {offsets = [0, 64], sizes = [32, 32], strides = [1, 1]} : vector<32x128xf32> to vector<32x32xf32>
    %157 = vector.extract_strided_slice %116 {offsets = [0, 64], sizes = [32, 32], strides = [1, 1]} : vector<32x128xf32> to vector<32x32xf32>
    %cst_78 = arith.constant dense<0.000000e+00> : vector<32x32xf32>
    %158 = tpu.matmul %156, %157, %cst_78 {dimension_numbers = #tpu.dot_dimension_numbers<[1], [1], [0], [0], [0, 0, 1, 0], [], []>} : vector<32x32xf32>, vector<32x32xf32>, vector<32x32xf32> -> vector<32x32xf32>
    %cst_79 = arith.constant 0.176776692 : f32
    %159 = vector.broadcast %cst_79 : f32 to vector<32x32xf32>
    %160 = arith.mulf %158, %159 : vector<32x32xf32>
    %c0_80 = arith.constant 0 : index
    %c0_81 = arith.constant 0 : index
    %161 = vector.load %arg6[%c0_80, %c0_81] : memref<32x32xf32, #tpu.memory_space<vmem>>, vector<32x32xf32>
    %162 = arith.addf %160, %161 : vector<32x32xf32>
    %cst_82 = arith.constant dense<0xFF800000> : vector<32xf32>
    %163 = vector.multi_reduction <maximumf>, %162, %cst_82 [1] : vector<32x32xf32> to vector<32xf32>
    %164 = vector.shape_cast %163 : vector<32xf32> to vector<32x1xf32>
    %165 = vector.broadcast %164 : vector<32x1xf32> to vector<32x32xf32>
    %166 = arith.subf %162, %165 : vector<32x32xf32>
    %167 = math.exp %166 : vector<32x32xf32>
    %cst_83 = arith.constant dense<0.000000e+00> : vector<32xf32>
    %168 = vector.multi_reduction <add>, %167, %cst_83 [1] : vector<32x32xf32> to vector<32xf32>
    %169 = vector.shape_cast %168 : vector<32xf32> to vector<32x1xf32>
    %170 = tpu.reciprocal %169 {approx = true} : vector<32x1xf32> -> vector<32x1xf32>
    %171 = vector.broadcast %170 : vector<32x1xf32> to vector<32x32xf32>
    %172 = arith.mulf %167, %171 : vector<32x32xf32>
    %173 = vector.extract_strided_slice %117 {offsets = [0, 64], sizes = [32, 32], strides = [1, 1]} : vector<32x128xf32> to vector<32x32xf32>
    %cst_84 = arith.constant dense<0.000000e+00> : vector<32x32xf32>
    %174 = tpu.matmul %172, %173, %cst_84 {dimension_numbers = #tpu.dot_dimension_numbers<[1], [0], [0], [1], [0, 0, 1, 1], [], []>} : vector<32x32xf32>, vector<32x32xf32>, vector<32x32xf32> -> vector<32x32xf32>
    %175 = vector.extract_strided_slice %115 {offsets = [0, 96], sizes = [32, 32], strides = [1, 1]} : vector<32x128xf32> to vector<32x32xf32>
    %176 = vector.extract_strided_slice %116 {offsets = [0, 96], sizes = [32, 32], strides = [1, 1]} : vector<32x128xf32> to vector<32x32xf32>
    %cst_85 = arith.constant dense<0.000000e+00> : vector<32x32xf32>
    %177 = tpu.matmul %175, %176, %cst_85 {dimension_numbers = #tpu.dot_dimension_numbers<[1], [1], [0], [0], [0, 0, 1, 0], [], []>} : vector<32x32xf32>, vector<32x32xf32>, vector<32x32xf32> -> vector<32x32xf32>
    %cst_86 = arith.constant 0.176776692 : f32
    %178 = vector.broadcast %cst_86 : f32 to vector<32x32xf32>
    %179 = arith.mulf %177, %178 : vector<32x32xf32>
    %c0_87 = arith.constant 0 : index
    %c0_88 = arith.constant 0 : index
    %180 = vector.load %arg6[%c0_87, %c0_88] : memref<32x32xf32, #tpu.memory_space<vmem>>, vector<32x32xf32>
    %181 = arith.addf %179, %180 : vector<32x32xf32>
    %cst_89 = arith.constant dense<0xFF800000> : vector<32xf32>
    %182 = vector.multi_reduction <maximumf>, %181, %cst_89 [1] : vector<32x32xf32> to vector<32xf32>
    %183 = vector.shape_cast %182 : vector<32xf32> to vector<32x1xf32>
    %184 = vector.broadcast %183 : vector<32x1xf32> to vector<32x32xf32>
    %185 = arith.subf %181, %184 : vector<32x32xf32>
    %186 = math.exp %185 : vector<32x32xf32>
    %cst_90 = arith.constant dense<0.000000e+00> : vector<32xf32>
    %187 = vector.multi_reduction <add>, %186, %cst_90 [1] : vector<32x32xf32> to vector<32xf32>
    %188 = vector.shape_cast %187 : vector<32xf32> to vector<32x1xf32>
    %189 = tpu.reciprocal %188 {approx = true} : vector<32x1xf32> -> vector<32x1xf32>
    %190 = vector.broadcast %189 : vector<32x1xf32> to vector<32x32xf32>
    %191 = arith.mulf %186, %190 : vector<32x32xf32>
    %192 = vector.extract_strided_slice %117 {offsets = [0, 96], sizes = [32, 32], strides = [1, 1]} : vector<32x128xf32> to vector<32x32xf32>
    %cst_91 = arith.constant dense<0.000000e+00> : vector<32x32xf32>
    %193 = tpu.matmul %191, %192, %cst_91 {dimension_numbers = #tpu.dot_dimension_numbers<[1], [0], [0], [1], [0, 0, 1, 1], [], []>} : vector<32x32xf32>, vector<32x32xf32>, vector<32x32xf32> -> vector<32x32xf32>
    %194 = tpu.concatenate %136, %155, %174, %193 in 1 : vector<32x32xf32>, vector<32x32xf32>, vector<32x32xf32>, vector<32x32xf32> -> vector<32x128xf32>
    %c0_92 = arith.constant 0 : index
    %c0_93 = arith.constant 0 : index
    %195 = vector.load %arg7[%c0_92, %c0_93] : memref<4x32xf32, #tpu.memory_space<vmem>>, vector<4x32xf32>
    %cst_94 = arith.constant dense<0.000000e+00> : vector<4x128xf32>
    %196 = tpu.matmul %195, %194, %cst_94 {dimension_numbers = #tpu.dot_dimension_numbers<[1], [0], [0], [1], [0, 0, 1, 1], [], []>} : vector<4x32xf32>, vector<32x128xf32>, vector<4x128xf32> -> vector<4x128xf32>
    %c0_95 = arith.constant 0 : index
    %c0_96 = arith.constant 0 : index
    %197 = vector.load %arg10[%c0_95, %c0_96] : memref<128x128xf32, #tpu.memory_space<vmem>>, vector<128x128xf32>
    %cst_97 = arith.constant dense<0.000000e+00> : vector<4x128xf32>
    %198 = tpu.matmul %196, %197, %cst_97 {dimension_numbers = #tpu.dot_dimension_numbers<[1], [0], [0], [1], [0, 0, 1, 1], [], []>} : vector<4x128xf32>, vector<128x128xf32>, vector<4x128xf32> -> vector<4x128xf32>
    %c0_98 = arith.constant 0 : index
    %c0_99 = arith.constant 0 : index
    %199 = vector.load %arg11[%c0_98, %c0_99] : memref<1x128xf32, #tpu.memory_space<vmem>>, vector<1x128xf32>
    %200 = vector.broadcast %199 : vector<1x128xf32> to vector<4x128xf32>
    %201 = arith.addf %198, %200 : vector<4x128xf32>
    %c0_100 = arith.constant 0 : index
    %c0_101 = arith.constant 0 : index
    %202 = vector.load %arg5[%c0_100, %c0_101] : memref<65x1xf32, #tpu.memory_space<vmem>>, vector<65x1xf32>
    %203 = vector.broadcast %202 : vector<65x1xf32> to vector<65x128xf32>
    %204 = arith.mulf %104, %203 : vector<65x128xf32>
    %c0_102 = arith.constant 0 : index
    %c0_103 = arith.constant 0 : index
    %205 = vector.load %arg4[%c0_102, %c0_103] : memref<65x4xf32, #tpu.memory_space<vmem>>, vector<65x4xf32>
    %cst_104 = arith.constant dense<0.000000e+00> : vector<65x128xf32>
    %206 = tpu.matmul %205, %201, %cst_104 {dimension_numbers = #tpu.dot_dimension_numbers<[1], [0], [0], [1], [0, 0, 1, 1], [], []>} : vector<65x4xf32>, vector<4x128xf32>, vector<65x128xf32> -> vector<65x128xf32>
    %207 = arith.addf %204, %206 : vector<65x128xf32>
    %c0_105 = arith.constant 0 : index
    %c0_106 = arith.constant 0 : index
    %208 = vector.load %arg1[%c0_105, %c0_106] : memref<65x65xf32, #tpu.memory_space<vmem>>, vector<65x65xf32>
    %cst_107 = arith.constant dense<0.000000e+00> : vector<65x128xf32>
    %209 = tpu.matmul %208, %207, %cst_107 {dimension_numbers = #tpu.dot_dimension_numbers<[1], [0], [0], [1], [0, 0, 1, 1], [], []>} : vector<65x65xf32>, vector<65x128xf32>, vector<65x128xf32> -> vector<65x128xf32>
    %210 = arith.addf %105, %209 : vector<65x128xf32>
    %cst_108 = arith.constant 0.333333343 : f32
    %211 = vector.broadcast %cst_108 : f32 to vector<65x128xf32>
    %212 = arith.mulf %210, %211 : vector<65x128xf32>
    %c0_109 = arith.constant 0 : index
    %c0_110 = arith.constant 0 : index
    %213 = vector.load %arg12[%c0_109, %c0_110] : memref<65x128xf32, #tpu.memory_space<vmem>>, vector<65x128xf32>
    tpu.vector_store %arg12[%c0_109, %c0_110], %212 {strides = array<i32>} : memref<65x128xf32, #tpu.memory_space<vmem>>, vector<65x128xf32>,
    return
  }
}

</mosaic_0001>

<bundles_post_ra>
// kernel: eq.1
= control target key start
LH: loop header
LB: loop body
LE: loop exit
PB: predicated region body
PF: predicated region fallthrough
CT: control target
= control target key end

     0   :  { %2 = vsyncpa [#allocation1], 0  ;;  %s73_s6 = smov [#allocation0]   ;;  %s93_s0 = inlined_call_operand.hbm [shape: s32[4,8], index: 0, kind: input, shape index: {}]   ;;  %s94_s1 = inlined_call_operand.vmem [shape: s32[32], index: 1, kind: output, shape index: {}]  }
   0x1   :  { %s7_s7 = sshll.u32 %s73_s6, 4  ;;  %s8_s7 = int_to_ptr.vmem [resolvable:$true] %s7_s7 }
   0x2   :  { %s59_s8 = scalar_lea.vmem %s8_s7, 64  ;;  %p64_p1 = scmp.lt.s32.totalorder %s8_s7, %s8_s7 }
   0x3   :  { %p60_p0 = scmp.ne.s32.totalorder %s8_s7, %s59_s8  ;;  %p65_p2 = scmp.lt.s32.totalorder %s59_s8, %s59_s8 }
   0x5   :  { %p66_p3 = por %p65_p2, %p64_p1 }
   0x7   :  { %p67_p4 = pnand %p66_p3, %p60_p0 }
   0x9   :  { %70 = shalt.err (!%p67_p4)
}
   0xa   :  { %10 = dma.hbm_to_vmem [thread:$0]  %s93_s0, 64, %s8_s7, [#allocation1]  }
   0xb   :  { %71 = dma.done.wait [#allocation1], 64  }
   0xc   :  { %72 = vsyncadd [#allocation1], 4294967232  ;;  %v15_v0 = vld [vmem:[#allocation0] sm:$0xf]  ;;  %vm18_vm0 = vcmask 64512   ;;  %s74_s0 = smov 24  }
   0xd   :  { %16 = vst [vmem:[#allocation3] sm:$0xf] %v15_v0  ;;  %s75_s11 = smov 8   ;;  %s76_s12 = smov 16   ;;  %vm24_vm1 = vcmask 261312   ;;  %vm30_vm2 = vcmask 195712  }
   0xe   :  { %vm36_vm3 = vcmask 130112  }
  0x14   :  { %v21_v1 = vld [vmem:[#allocation3 + $0x3] sm:$0x1]   ;;  %v33_v2 = vld [vmem:[#allocation3 + $0x1] sm:$0x1]   ;;  %v17_v3 = vld [vmem:[#allocation3] sm:$0x1]  }
  0x15   :  { %22 = vrot.lane.b32.xlu0 %v21_v1, %s74_s0  ;;  %34 = vrot.lane.b32.xlu1 %v33_v2, %s75_s11  ;;  %v27_v4 = vld [vmem:[#allocation3 + $0x2] sm:$0x1]   ;;  %19 = vst.msk [vmem:[#allocation2] sm:$0x1] %vm18_vm0, %v17_v3  }
  0x19   :  { %28 = vrot.lane.b32.xlu0 %v27_v4, %s76_s12 }
  0x87   :  { %v23_v5 = vpop.permute.xlu0 %22   ;;  %v35_v6 = vpop.permute.xlu1 %34  }
  0x88   :  { %25 = vst.msk [vmem:[#allocation2] sm:$0x1] %vm24_vm1, %v23_v5  }
  0x8b   :  { %v29_v7 = vpop.permute.xlu0 %28  }
  0x8c   :  { %31 = vst.msk [vmem:[#allocation2] sm:$0x1] %vm30_vm2, %v29_v7  }
  0x8d   :  { %37 = vst.msk [vmem:[#allocation2] sm:$0x1] %vm36_vm3, %v35_v6  }
  0x94   :  { %v42_v8 = vld [vmem:[#allocation2] sm:$0x1] }
  0x95   :  { %45 = vst [vmem:[%s94_s1] sm:$0x1] %v42_v8 }
  0x96   :  { %46 = vsyncpa [#allocation1], 1 }

// kernel: eq.50
= control target key start
LH: loop header
LB: loop body
LE: loop exit
PB: predicated region body
PF: predicated region fallthrough
CT: control target
= control target key end

     0   :  { %vm8_vm0 = vcmask 64512   ;;  %s40_s8 = smov 8   ;;  %s41_s9 = smov 16   ;;  %vm14_vm1 = vcmask 261312   ;;  %vm20_vm2 = vcmask 195712   ;;  %vm26_vm3 = vcmask 130112   ;;  %s58_s0 = inlined_call_operand.vmem [shape: s32[4,8], index: 0, kind: input, shape index: {}]   ;;  %s59_s1 = inlined_call_operand.vmem [shape: s32[32], index: 1, kind: output, shape index: {}]  }
   0x1   :  { %v5_v0 = vld [vmem:[%s58_s0] sm:$0xf]  ;;  %s39_s0 = smov 24  }
   0x2   :  { %6 = vst [vmem:[#allocation1] sm:$0xf] %v5_v0 }
   0x9   :  { %v11_v1 = vld [vmem:[#allocation1 + $0x3] sm:$0x1]   ;;  %v23_v2 = vld [vmem:[#allocation1 + $0x1] sm:$0x1]   ;;  %v7_v3 = vld [vmem:[#allocation1] sm:$0x1]  }
   0xa   :  { %12 = vrot.lane.b32.xlu0 %v11_v1, %s39_s0  ;;  %24 = vrot.lane.b32.xlu1 %v23_v2, %s40_s8  ;;  %v17_v4 = vld [vmem:[#allocation1 + $0x2] sm:$0x1]   ;;  %9 = vst.msk [vmem:[#allocation0] sm:$0x1] %vm8_vm0, %v7_v3  }
   0xe   :  { %18 = vrot.lane.b32.xlu0 %v17_v4, %s41_s9 }
  0x7c   :  { %v13_v5 = vpop.permute.xlu0 %12   ;;  %v25_v6 = vpop.permute.xlu1 %24  }
  0x7d   :  { %15 = vst.msk [vmem:[#allocation0] sm:$0x1] %vm14_vm1, %v13_v5  }
  0x80   :  { %v19_v7 = vpop.permute.xlu0 %18  }
  0x81   :  { %21 = vst.msk [vmem:[#allocation0] sm:$0x1] %vm20_vm2, %v19_v7  }
  0x82   :  { %27 = vst.msk [vmem:[#allocation0] sm:$0x1] %vm26_vm3, %v25_v6  }
  0x89   :  { %v32_v8 = vld [vmem:[#allocation0] sm:$0x1] }
  0x8a   :  { %35 = vst [vmem:[%s59_s1] sm:$0x1] %v32_v8 }

// kernel: local_stg2_forward.1
= control target key start
LH: loop header
LB: loop body
LE: loop exit
PB: predicated region body
PF: predicated region fallthrough
CT: control target
= control target key end

     0   :  { %vm72_vm0 = vcmask 1040384   ;;  %vm59_vm1 = vcmask 531456   ;;  %s6990_s0 = inlined_call_operand.vmem [shape: f32[65,128], index: 0, kind: input, shape index: {}]   ;;  %s6991_s1 = inlined_call_operand.vmem [shape: f32[65,65], index: 1, kind: input, shape index: {}]   ;;  %s6992_s2 = inlined_call_operand.vmem [shape: f32[32,65], index: 2, kind: input, shape index: {}]   ;;  %s6993_s3 = inlined_call_operand.vmem [shape: f32[32,128], index: 3, kind: input, shape index: {}]   ;;  %s6994_s4 = inlined_call_operand.vmem [shape: f32[65,4], index: 4, kind: input, shape index: {}]   ;;  %s6995_s5 = inlined_call_operand.vmem [shape: f32[65,1], index: 5, kind: input, shape index: {}]   ;;  %s6996_s6 = inlined_call_operand.vmem [shape: f32[32,32], index: 6, kind: input, shape index: {}]   ;;  %s6997_s7 = inlined_call_operand.vmem [shape: f32[4,32], index: 7, kind: input, shape index: {}]   ;;  %s6998_s8 = inlined_call_operand.vmem [shape: f32[128,384], index: 8, kind: input, shape index: {}]   ;;  %s6999_s9 = inlined_call_operand.vmem [shape: f32[1,384], index: 9, kind: input, shape index: {}]   ;;  %s7000_s10 = inlined_call_operand.vmem [shape: f32[128,128], index: 10, kind: input, shape index: {}]   ;;  %s7001_s11 = inlined_call_operand.vmem [shape: f32[1,128], index: 11, kind: input, shape index: {}]   ;;  %s7002_s12 = inlined_call_operand.hbm [shape: f32[65,128], index: 12, kind: output, shape index: {}]  }
   0x1   :  { %v50_v0 = vld [vmem:[%s6990_s0 + $0x40] sm:$0x1]  ;;  %v49_v1 = vld [vmem:[%s6990_s0 + $0x38] sm:$0xff]  ;;  %v48_v2 = vld [vmem:[%s6990_s0 + $0x30] sm:$0xff] }
   0x2   :  { %4399 = vmatprep.subr.msk.mxu1 %vm72_vm0, %v50_v0  ;;  %v51_v3 = vld [vmem:[%s6992_s2] sm:$0xff]  ;;  %v47_v4 = vld [vmem:[%s6990_s0 + $0x28] sm:$0xff]  ;;  %v208_v5 = vld [vmem:[%s6998_s8 + $0x178] sm:$0xff] }
   0x3   :  { %4400 = vmatpush3.msk.msra.mxu1 %vm72_vm0, %v50_v0  ;;  %4417 = vmatprep.mubr.msk.f32.mxu1 %vm59_vm1, %v51_v3  ;;  %v46_v6 = vld [vmem:[%s6990_s0 + $0x20] sm:$0xff]  ;;  %v202_v8 = vld [vmem:[%s6998_s8 + $0x148] sm:$0xff]  ;;  %v45_v9 = vld [vmem:[%s6990_s0 + $0x18] sm:$0xff] }
   0x4   :  { %4401 = vmatprep.subr.mxu1 %v49_v1  ;;  %4423 = vmatprep.subr.mxu0 %v208_v5  ;;  %v205_v7 = vld [vmem:[%s6998_s8 + $0x160] sm:$0xff]  ;;  %v199_v10 = vld [vmem:[%s6998_s8 + $0x130] sm:$0xff]  ;;  %v196_v12 = vld [vmem:[%s6998_s8 + $0x118] sm:$0xff] }
   0x5   :  { %4402 = vmatpush3.msra.mxu1 %v49_v1  ;;  %4424 = vmatpush3.msra.mxu0 %v208_v5  ;;  %v44_v11 = vld [vmem:[%s6990_s0 + $0x10] sm:$0xff]  ;;  %v43_v13 = vld [vmem:[%s6990_s0 + $0x8] sm:$0xff]  ;;  %v193_v14 = vld [vmem:[%s6998_s8 + $0x100] sm:$0xff] }
   0x6   :  { %4403 = vmatprep.subr.mxu1 %v48_v2  ;;  %4425 = vmatprep.subr.mxu0 %v205_v7  ;;  %v42_v15 = vld [vmem:[%s6990_s0] sm:$0xff]  ;;  %v190_v16 = vld [vmem:[%s6998_s8 + $0xe8] sm:$0xff]  ;;  %v207_v18 = vld [vmem:[%s6998_s8 + $0x170] sm:$0xff] }
   0x7   :  { %4404 = vmatpush3.msra.mxu1 %v48_v2  ;;  %4426 = vmatpush3.msra.mxu0 %v205_v7  ;;  %v52_v17 = vld [vmem:[%s6992_s2 + $0x8] sm:$0xff]  ;;  %v53_v19 = vld [vmem:[%s6992_s2 + $0x10] sm:$0xff]  ;;  %v204_v21 = vld [vmem:[%s6998_s8 + $0x158] sm:$0xff] }
   0x8   :  { %4405 = vmatprep.subr.mxu1 %v47_v4  ;;  %4427 = vmatprep.subr.mxu0 %v202_v8  ;;  %v206_v20 = vld [vmem:[%s6998_s8 + $0x168] sm:$0xff] }
   0x9   :  { %4406 = vmatpush3.msra.mxu1 %v47_v4  ;;  %4428 = vmatpush3.msra.mxu0 %v202_v8 }
   0xa   :  { %4407 = vmatprep.subr.mxu1 %v46_v6  ;;  %4429 = vmatprep.subr.mxu0 %v199_v10 }
   0xb   :  { %4408 = vmatpush3.msra.mxu1 %v46_v6  ;;  %4430 = vmatpush3.msra.mxu0 %v199_v10 }
   0xc   :  { %4409 = vmatprep.subr.mxu1 %v45_v9  ;;  %4431 = vmatprep.subr.mxu0 %v196_v12 }
   0xd   :  { %4410 = vmatpush3.msra.mxu1 %v45_v9  ;;  %4432 = vmatpush3.msra.mxu0 %v196_v12 }
   0xe   :  { %4411 = vmatprep.subr.mxu1 %v44_v11  ;;  %4433 = vmatprep.subr.mxu0 %v193_v14 }
   0xf   :  { %4412 = vmatpush3.msra.mxu1 %v44_v11  ;;  %4434 = vmatpush3.msra.mxu0 %v193_v14 }
  0x10   :  { %4413 = vmatprep.subr.mxu1 %v43_v13  ;;  %4435 = vmatprep.subr.mxu0 %v190_v16 }
  0x11   :  { %4414 = vmatpush3.msra.mxu1 %v43_v13 }
  0x12   :  { %4415 = vmatprep.subr.mxu1 %v42_v15 }
  0x13   :  { %4416 = vmatpush3.msra.mxu1 %v42_v15 }
  0x14   :  { %17 = vsyncpa [#allocation3], 0  ;;  %4418 = vmatmul.mubr.msk.f32.vlgmr.msra.gmra.mxu1 %vm59_vm1, %v52_v17  ;;  %226 = vmatprep.subr.mxu1 %v207_v18  ;;  %v203_v22 = vld [vmem:[%s6998_s8 + $0x150] sm:$0xff]  ;;  %v54_v24 = vld [vmem:[%s6992_s2 + $0x18] sm:$0xff]  ;;  %v5262_v61 = vmov 0.0   ;;  %v211_v10 = vlaneseq  ;;  %vm400_vm2 = vcmask 261120  }
  0x15   :  { %v187_v23 = vld [vmem:[%s6998_s8 + $0xd0] sm:$0xff]  ;;  %4420 = vmatprep.mubr.msk.f32.mxu1 %vm59_vm1, %v53_v19  ;;  %227 = vmatpush1.msra.mxu1 %v206_v20  ;;  %v201_v25 = vld [vmem:[%s6998_s8 + $0x140] sm:$0xff]  ;;  %v200_v26 = vld [vmem:[%s6998_s8 + $0x138] sm:$0xff]  ;;  %s5264_s27 = smov 64   ;;  %s5265_s28 = smov 32   ;;  %vm5266_vm3 = vmmov 0  }
  0x16   :  { %228 = vmatprep.subr.mxu1 %v204_v21  ;;  %4436 = vmatpush3.msra.mxu0 %v190_v16  ;;  %v198_v27 = vld [vmem:[%s6998_s8 + $0x128] sm:$0xff]  ;;  %v184_v28 = vld [vmem:[%s6998_s8 + $0xb8] sm:$0xff]  ;;  %v197_v29 = vld [vmem:[%s6998_s8 + $0x120] sm:$0xff]  ;;  %v212_v11 = vshrl.u32 %v211_v10, 7  ;;  %vm1558_vm4 = vcmask 785408   ;;  %vm1553_vm5 = vcmask 523264  }
  0x17   :  { %229 = vmatpush1.msra.mxu1 %v203_v22  ;;  %4437 = vmatprep.subr.mxu0 %v187_v23  ;;  %v195_v30 = vld [vmem:[%s6998_s8 + $0x110] sm:$0xff]  ;;  %v181_v31 = vld [vmem:[%s6998_s8 + $0xa0] sm:$0xff]  ;;  %v194_v32 = vld [vmem:[%s6998_s8 + $0x108] sm:$0xff]  ;;  %vm1830_vm6 = vcmask 1043456   ;;  %vm1802_vm7 = vcmask 31744  }
  0x18   :  { %4421 = vmatmul.mubr.msk.f32.gmra.mxu1 %vm59_vm1, %v54_v24  ;;  %230 = vmatprep.subr.mxu1 %v201_v25  ;;  %v192_v33 = vld [vmem:[%s6998_s8 + $0xf8] sm:$0xff]  ;;  %v178_v34 = vld [vmem:[%s6998_s8 + $0x88] sm:$0xff]  ;;  %v191_v35 = vld [vmem:[%s6998_s8 + $0xf0] sm:$0xff]  ;;  %v213_v12 = vsub.s32 0, %v212_v11  ;;  %v217_v17 = vsub.s32 1, %v212_v11 }
  0x19   :  { %231 = vmatpush1.msra.mxu1 %v200_v26  ;;  %4438 = vmatpush3.msra.mxu0 %v187_v23  ;;  %v189_v36 = vld [vmem:[%s6998_s8 + $0xe0] sm:$0xff]  ;;  %v175_v37 = vld [vmem:[%s6998_s8 + $0x70] sm:$0xff]  ;;  %v188_v38 = vld [vmem:[%s6998_s8 + $0xd8] sm:$0xff] }
  0x1a   :  { %232 = vmatprep.subr.mxu1 %v198_v27  ;;  %4439 = vmatprep.subr.mxu0 %v184_v28  ;;  %v186_v39 = vld [vmem:[%s6998_s8 + $0xc8] sm:$0xff]  ;;  %v172_v40 = vld [vmem:[%s6998_s8 + $0x58] sm:$0xff]  ;;  %v185_v41 = vld [vmem:[%s6998_s8 + $0xc0] sm:$0xff] }
  0x1b   :  { %233 = vmatpush1.msra.mxu1 %v197_v29  ;;  %4440 = vmatpush3.msra.mxu0 %v184_v28  ;;  %v183_v42 = vld [vmem:[%s6998_s8 + $0xb0] sm:$0xff]  ;;  %v182_v43 = vld [vmem:[%s6998_s8 + $0xa8] sm:$0xff]  ;;  %v180_v44 = vld [vmem:[%s6998_s8 + $0x98] sm:$0xff] }
  0x1c   :  { %234 = vmatprep.subr.mxu1 %v195_v30  ;;  %4441 = vmatprep.subr.mxu0 %v181_v31  ;;  %v179_v45 = vld [vmem:[%s6998_s8 + $0x90] sm:$0xff]  ;;  %v177_v46 = vld [vmem:[%s6998_s8 + $0x80] sm:$0xff]  ;;  %v176_v47 = vld [vmem:[%s6998_s8 + $0x78] sm:$0xff] }
  0x1d   :  { %235 = vmatpush1.msra.mxu1 %v194_v32  ;;  %4442 = vmatpush3.msra.mxu0 %v181_v31  ;;  %v174_v48 = vld [vmem:[%s6998_s8 + $0x68] sm:$0xff]  ;;  %v173_v49 = vld [vmem:[%s6998_s8 + $0x60] sm:$0xff]  ;;  %v171_v50 = vld [vmem:[%s6998_s8 + $0x50] sm:$0xff] }
  0x1e   :  { %236 = vmatprep.subr.mxu1 %v192_v33  ;;  %4443 = vmatprep.subr.mxu0 %v178_v34  ;;  %v170_v51 = vld [vmem:[%s6998_s8 + $0x48] sm:$0xff]  ;;  %v168_v52 = vld [vmem:[%s6998_s8 + $0x38] sm:$0xff]  ;;  %v167_v53 = vld [vmem:[%s6998_s8 + $0x30] sm:$0xff]  ;;  %v221_v33 = vsub.s32 2, %v212_v11 }
  0x1f   :  { %237 = vmatpush1.msra.mxu1 %v191_v35  ;;  %4444 = vmatpush3.msra.mxu0 %v178_v34  ;;  %v169_v54 = vld [vmem:[%s6998_s8 + $0x40] sm:$0xff]  ;;  %v164_v56 = vld [vmem:[%s6998_s8 + $0x18] sm:$0xff]  ;;  %v166_v57 = vld [vmem:[%s6998_s8 + $0x28] sm:$0xff] }
  0x20   :  { %238 = vmatprep.subr.mxu1 %v189_v36  ;;  %4445 = vmatprep.subr.mxu0 %v175_v37  ;;  %v165_v55 = vld [vmem:[%s6998_s8 + $0x20] sm:$0xff]  ;;  %v162_v58 = vld [vmem:[%s6998_s8 + $0x8] sm:$0xff]  ;;  %v163_v60 = vld [vmem:[%s6998_s8 + $0x10] sm:$0xff] }
  0x21   :  { %239 = vmatpush1.msra.mxu1 %v188_v38  ;;  %4446 = vmatpush3.msra.mxu0 %v175_v37  ;;  %v161_v59 = vld [vmem:[%s6998_s8] sm:$0xff]  ;;  %v56_v0 = vld [vmem:[%s6993_s3 + $0x8] sm:$0xff]  ;;  %v58_v3 = vld [vmem:[%s6993_s3 + $0x18] sm:$0xff] }
  0x22   :  { %240 = vmatprep.subr.mxu1 %v186_v39  ;;  %4447 = vmatprep.subr.mxu0 %v172_v40  ;;  %v55_v63 = vld [vmem:[%s6993_s3] sm:$0xff]  ;;  %v57_v6 = vld [vmem:[%s6993_s3 + $0x10] sm:$0xff] }
  0x23   :  { %241 = vmatpush1.msra.mxu1 %v185_v41  ;;  %4448 = vmatpush3.msra.mxu0 %v172_v40  ;;  %v209_v13 = vld [vmem:[%s6999_s9] sm:$0x7]  ;;  %s5263_s9 = smov 96  }
  0x24   :  { %242 = vmatprep.subr.mxu1 %v183_v42  ;;  %4449 = vmatprep.subr.mxu0 %v169_v54  ;;  %v5544_v14 = vrot.slane %v209_v13, %v213_v12  ;;  %v5551_v20 = vrot.slane %v209_v13, %v217_v17  ;;  %v5582_v36 = vrot.slane %v209_v13, %v221_v33 }
  0x25   :  { %243 = vmatpush1.msra.mxu1 %v182_v43  ;;  %4450 = vmatpush3.msra.mxu0 %v169_v54 }
  0x26   :  { %244 = vmatprep.subr.mxu1 %v180_v44  ;;  %4451 = vmatprep.subr.mxu0 %v166_v57 }
  0x27   :  { %245 = vmatpush1.msra.mxu1 %v179_v45  ;;  %4452 = vmatpush3.msra.mxu0 %v166_v57  ;;  %v5669_v57 = vld [vmem:[%s6996_s6 + $0x8] sm:$0xff] }
  0x28   :  { %246 = vmatprep.subr.mxu1 %v177_v46  ;;  %290 = vmatprep.mubr.f32.mxu1 %v5262_v61 }
  0x29   :  { %247 = vmatpush1.msra.mxu1 %v176_v47  ;;  %4453 = vmatprep.subr.mxu0 %v163_v60 }
  0x2a   :  { %248 = vmatprep.subr.mxu1 %v174_v48  ;;  %4454 = vmatpush3.msra.mxu0 %v163_v60  ;;  %v5674_v60 = vld [vmem:[%s6996_s6] sm:$0xff] }
  0x2b   :  { %249 = vmatpush1.msra.mxu1 %v173_v49 }
  0x2c   :  { %250 = vmatprep.subr.mxu1 %v171_v50 }
  0x2d   :  { %251 = vmatpush1.msra.mxu1 %v170_v51 }
  0x2e   :  { %252 = vmatprep.subr.mxu1 %v168_v52 }
  0x2f   :  { %253 = vmatpush1.msra.mxu1 %v167_v53 }
  0x30   :  { %254 = vmatprep.subr.mxu1 %v165_v55 }
  0x31   :  { %255 = vmatpush1.msra.mxu1 %v164_v56 }
  0x32   :  { %256 = vmatprep.subr.mxu1 %v162_v58 }
  0x33   :  { %257 = vmatpush1.msra.mxu1 %v161_v59 }
  0xd4   :  { %v4419_v62 = vpop.f32.mrf.mxu1 }
  0xd5   :  { %v148_v4 = vadd.f32 %v4419_v62, %v56_v0 }
  0xd6   :  { %v142_v1 = vpop.f32.mrf.mxu1 }
  0xd7   :  { %v143_v2 = vadd.f32 %v142_v1, %v55_v63 }
  0xd8   :  { %v4422_v5 = vpop.f32.mrf.mxu1 }
  0xd9   :  { %291 = vmatmul.mubr.f32.vlgmr.msra.gmra.mxu1 %v143_v2  ;;  %4455 = vmatprep.mubr.f32.mxu0 %v143_v2  ;;  %v158_v7 = vadd.f32 %v4422_v5, %v58_v3  ;;  %v5682_v3 = vld [vmem:[%s6996_s6 + $0x18] sm:$0xff] }
  0xda   :  { %v152_v8 = vpop.f32.mrf.mxu1  ;;  %4456 = vmatmul.mubr.f32.vlgmr.msra.gmra.mxu0 %v148_v4  ;;  %296 = vmatprep.mubr.f32.mxu1 %v5262_v61 }
  0xdb   :  { %v153_v9 = vadd.f32 %v152_v8, %v57_v6 }
  0xdd   :  { %297 = vmatmul.mubr.f32.gmra.mxu1 %v148_v4  ;;  %4458 = vmatprep.mubr.f32.mxu0 %v153_v9 }
  0xde   :  { %4459 = vmatmul.mubr.f32.gmra.mxu0 %v158_v7  ;;  %302 = vmatprep.mubr.f32.mxu1 %v5262_v61 }
  0xe1   :  { %303 = vmatmul.mubr.f32.gmra.mxu1 %v153_v9  ;;  %v5689_v9 = vld [vmem:[%s6996_s6 + $0x10] sm:$0xff] }
  0xe2   :  { %308 = vmatprep.mubr.f32.mxu1 %v5262_v61 }
  0xe5   :  { %309 = vmatmul.mubr.f32.gmra.mxu1 %v158_v7 }
 0x199   :  { %v292_v15 = vpop.f32.mrf.mxu1 }
 0x19a   :  { %v5547_v16 = vadd.f32 %v292_v15, %v5544_v14  ;;  %v4457_v27 = vpop.f32.mrf.mxu0 }
 0x19b   :  { %v294_v18 = vpop.f32.mrf.mxu1  ;;  %v5605_v39 = vadd.f32 %v4457_v27, %v5582_v36 }
 0x19c   :  { %4469 = vmatprep.mubr.msk.f32.mxu1 %vm400_vm2, %v5547_v16  ;;  %v5559_v25 = vadd.f32 %v294_v18, %v5551_v20  ;;  %v381_v31 = vpop.f32.mrf.mxu0 }
 0x19d   :  { %v298_v19 = vpop.f32.mrf.mxu1  ;;  %v5618_v42 = vadd.f32 %v381_v31, %v5582_v36 }
 0x19e   :  { %v5565_v30 = vadd.f32 %v298_v19, %v5544_v14  ;;  %v4460_v35 = vpop.f32.mrf.mxu0 }
 0x19f   :  { %v300_v21 = vpop.f32.mrf.mxu1  ;;  %v5591_v37 = vadd.f32 %v4460_v35, %v5582_v36 }
 0x1a0   :  { %v5554_v22 = vadd.f32 %v300_v21, %v5551_v20  ;;  %v391_v40 = vpop.f32.mrf.mxu0 }
 0x1a1   :  { %v304_v23 = vpop.f32.mrf.mxu1  ;;  %v5614_v41 = vadd.f32 %v391_v40, %v5582_v36 }
 0x1a2   :  { %673 = vrot.lane.b32.xlu1 %v5554_v22, %s5263_s9  ;;  %v5600_v38 = vadd.f32 %v304_v23, %v5544_v14 }
 0x1a3   :  { %v306_v24 = vpop.f32.mrf.mxu1 }
 0x1a4   :  { %v5568_v32 = vadd.f32 %v306_v24, %v5551_v20 }
 0x1a5   :  { %v310_v26 = vpop.f32.mrf.mxu1 }
 0x1a6   :  { %671 = vrot.lane.b32.xlu1 %v5559_v25, %s5263_s9  ;;  %v5578_v34 = vadd.f32 %v310_v26, %v5544_v14 }
 0x1a7   :  { %v312_v28 = vpop.f32.mrf.mxu1 }
 0x1a8   :  { %v313_v29 = vadd.f32 %v312_v28, %v5551_v20 }
 0x1aa   :  { %677 = vrot.lane.b32.xlu0 %v313_v29, %s5263_s9  ;;  %4461 = vmatprep.subr.msk.mxu1 %vm400_vm2, %v313_v29 }
 0x1ab   :  { %665 = vrot.lane.b32.xlu1 %v5565_v30, %s5263_s9  ;;  %4462 = vmatpush3.xpose.msk.msra.mxu1 %vm400_vm2, %v313_v29 }
 0x1ac   :  { %4463 = vmatprep.subr.msk.mxu1 %vm400_vm2, %v5568_v32 }
 0x1ae   :  { %675 = vrot.lane.b32.xlu0 %v5568_v32, %s5263_s9 }
 0x1af   :  { %669 = vrot.lane.b32.xlu1 %v5578_v34, %s5263_s9  ;;  %4464 = vmatpush3.xpose.msk.msra.mxu1 %vm400_vm2, %v5568_v32 }
 0x1b0   :  { %4465 = vmatprep.subr.msk.mxu1 %vm400_vm2, %v5554_v22 }
 0x1b2   :  { %663 = vrot.lane.b32.xlu0 %v5547_v16, %s5263_s9 }
 0x1b3   :  { %842 = vrot.lane.b32.xlu1 %v5591_v37, %s5263_s9  ;;  %4466 = vmatpush3.xpose.msk.msra.mxu1 %vm400_vm2, %v5554_v22 }
 0x1b4   :  { %4467 = vmatprep.subr.msk.mxu1 %vm400_vm2, %v5559_v25 }
 0x1b6   :  { %667 = vrot.lane.b32.xlu0 %v5600_v38, %s5263_s9 }
 0x1b7   :  { %838 = vrot.lane.b32.xlu1 %v5605_v39, %s5263_s9  ;;  %4468 = vmatpush3.xpose.msk.msra.mxu1 %vm400_vm2, %v5559_v25 }
 0x1b8   :  { %4475 = vmatprep.subr.mxu1 %v5591_v37 }
 0x1ba   :  { %840 = vrot.lane.b32.xlu0 %v5614_v41, %s5263_s9  ;;  %4470 = vmatmul.mubr.msk.f32.vlgmr.msra.gmra.mxu1 %vm400_vm2, %v5565_v30 }
 0x1bb   :  { %836 = vrot.lane.b32.xlu1 %v5618_v42, %s5263_s9  ;;  %4472 = vmatprep.mubr.msk.f32.mxu1 %vm400_vm2, %v5600_v38 }
 0x1bc   :  { %4476 = vmatpush3.msra.mxu1 %v5591_v37 }
 0x1bd   :  { %4477 = vmatprep.subr.mxu1 %v5614_v41 }
 0x1be   :  { %4478 = vmatpush3.msra.mxu1 %v5614_v41  ;;  %955 = vrot.lane.b32.xlu0 %v5554_v22, %s5264_s27 }
 0x1bf   :  { %957 = vrot.lane.b32.xlu1 %v5568_v32, %s5264_s27  ;;  %4473 = vmatmul.mubr.msk.f32.gmra.mxu1 %vm400_vm2, %v5578_v34 }
 0x1c0   :  { %4479 = vmatprep.subr.mxu1 %v5605_v39 }
 0x1c1   :  { %4480 = vmatpush3.msra.mxu1 %v5605_v39 }
 0x1c2   :  { %4481 = vmatprep.subr.mxu1 %v5618_v42  ;;  %959 = vrot.lane.b32.xlu0 %v313_v29, %s5264_s27 }
 0x1c3   :  { %4482 = vmatpush3.msra.mxu1 %v5618_v42  ;;  %1237 = vrot.lane.b32.xlu1 %v313_v29, %s5265_s28 }
 0x214   :  { %v674_v43 = vpop.permute.xlu1 %673 }
 0x218   :  { %v672_v44 = vpop.permute.xlu1 %671 }
 0x21c   :  { %v678_v45 = vpop.permute.xlu0 %677 }
 0x21d   :  { %v666_v46 = vpop.permute.xlu1 %665  ;;  %4489 = vmatprep.subr.msk.mxu0 %vm400_vm2, %v678_v45 }
 0x21e   :  { %4490 = vmatpush3.xpose.msk.msra.mxu0 %vm400_vm2, %v678_v45 }
 0x220   :  { %v676_v47 = vpop.permute.xlu0 %675 }
 0x221   :  { %v670_v48 = vpop.permute.xlu1 %669  ;;  %4491 = vmatprep.subr.msk.mxu0 %vm400_vm2, %v676_v47 }
 0x222   :  { %4492 = vmatpush3.xpose.msk.msra.mxu0 %vm400_vm2, %v676_v47 }
 0x223   :  { %4493 = vmatprep.subr.msk.mxu0 %vm400_vm2, %v674_v43 }
 0x224   :  { %v664_v49 = vpop.permute.xlu0 %663 }
 0x225   :  { %v5648_v50 = vpop.permute.xlu1 %842  ;;  %4497 = vmatprep.mubr.msk.f32.mxu0 %vm400_vm2, %v664_v49 }
 0x226   :  { %4503 = vmatprep.subr.mxu1 %v5648_v50  ;;  %4494 = vmatpush3.xpose.msk.msra.mxu0 %vm400_vm2, %v674_v43 }
 0x227   :  { %4495 = vmatprep.subr.msk.mxu0 %vm400_vm2, %v672_v44 }
 0x228   :  { %v668_v52 = vpop.permute.xlu0 %667 }
 0x229   :  { %v5654_v51 = vpop.permute.xlu1 %838 }
 0x22a   :  { %4496 = vmatpush3.xpose.msk.msra.mxu0 %vm400_vm2, %v672_v44 }
 0x22c   :  { %v5705_v43 = vpop.permute.xlu0 %840 }
 0x22d   :  { %v5657_v53 = vpop.permute.xlu1 %836  ;;  %4498 = vmatmul.mubr.msk.f32.vlgmr.msra.gmra.mxu0 %vm400_vm2, %v666_v46 }
 0x22e   :  { %4500 = vmatprep.mubr.msk.f32.mxu0 %vm400_vm2, %v668_v52 }
 0x230   :  { %v5707_v44 = vpop.permute.xlu0 %955 }
 0x231   :  { %v5661_v54 = vpop.permute.xlu1 %957  ;;  %4501 = vmatmul.mubr.msk.f32.gmra.mxu0 %vm400_vm2, %v670_v48 }
 0x234   :  { %v5709_v45 = vpop.permute.xlu0 %959 }
 0x235   :  { %v1238_v55 = vpop.permute.xlu1 %1237 }
 0x236   :  { %4545 = vmatprep.subr.msk.mxu0 %vm400_vm2, %v1238_v55 }
 0x237   :  { %4546 = vmatpush3.xpose.msk.msra.mxu0 %vm400_vm2, %v1238_v55 }
 0x27a   :  { %v4471_v56 = vpop.f32.mrf.mxu1 }
 0x27b   :  { %v511_v58 = vmul.f32 0.17677669, %v4471_v56 }
 0x27c   :  { %v491_v59 = vpop.f32.mrf.mxu1 }
 0x27d   :  { %v510_v62 = vmul.f32 0.17677669, %v491_v59  ;;  %v519_v63 = vadd.f32 %v5669_v57, %v511_v58 }
 0x27f   :  { %v4474_v0 = vpop.f32.mrf.mxu1  ;;  %v525_v1 = vsel %vm400_vm2, %v519_v63, -inf  ;;  %v518_v2 = vadd.f32 %v5674_v60, %v510_v62 }
 0x280   :  { %v513_v4 = vmul.f32 0.17677669, %v4474_v0  ;;  %526 = vmax.xlane.f32.xlu1 %v525_v1 }
 0x281   :  { %v501_v5 = vpop.f32.mrf.mxu1  ;;  %v522_v6 = vsel %vm400_vm2, %v518_v2, -inf }
 0x282   :  { %v512_v7 = vmul.f32 0.17677669, %v501_v5  ;;  %523 = vmax.xlane.f32.xlu0 %v522_v6  ;;  %v521_v8 = vadd.f32 %v5682_v3, %v513_v4 }
 0x284   :  { %v531_v10 = vsel %vm400_vm2, %v521_v8, -inf  ;;  %v520_v11 = vadd.f32 %v5689_v9, %v512_v7 }
 0x286   :  { %532 = vmax.xlane.f32.xlu0 %v531_v10  ;;  %v528_v12 = vsel %vm400_vm2, %v520_v11, -inf }
 0x28a   :  { %529 = vmax.xlane.f32.xlu0 %v528_v12 }
 0x2ed   :  { %v4499_v13 = vpop.f32.mrf.mxu0 }
 0x2ee   :  { %v781_v15 = vmul.f32 0.17677669, %v4499_v13 }
 0x2ef   :  { %v761_v17 = vpop.f32.mrf.mxu0 }
 0x2f0   :  { %v780_v18 = vmul.f32 0.17677669, %v761_v17  ;;  %v785_v19 = vadd.f32 %v781_v15, %v5669_v57 }
 0x2f1   :  { %v4502_v21 = vpop.f32.mrf.mxu0 }
 0x2f2   :  { %v783_v23 = vmul.f32 0.17677669, %v4502_v21  ;;  %v791_v24 = vsel %vm400_vm2, %v785_v19, -inf  ;;  %v784_v26 = vadd.f32 %v780_v18, %v5674_v60 }
 0x2f3   :  { %v771_v27 = vpop.f32.mrf.mxu0  ;;  %792 = vmax.xlane.f32.xlu0 %v791_v24 }
 0x2f4   :  { %v782_v28 = vmul.f32 0.17677669, %v771_v27  ;;  %v788_v29 = vsel %vm400_vm2, %v784_v26, -inf  ;;  %v5699_v31 = vadd.f32 %v783_v23, %v5682_v3 }
 0x2f5   :  { %789 = vmax.xlane.f32.xlu1 %v788_v29 }
 0x2f6   :  { %v797_v33 = vsel %vm400_vm2, %v5699_v31, -inf  ;;  %v786_v35 = vadd.f32 %v782_v28, %v5689_v9 }
 0x2f7   :  { %798 = vmax.xlane.f32.xlu0 %v797_v33 }
 0x2f8   :  { %v794_v40 = vsel %vm400_vm2, %v786_v35, -inf }
 0x2f9   :  { %795 = vmax.xlane.f32.xlu1 %v794_v40 }
 0x309   :  { %v527_v47 = vpop.xlane.xlu1 %526 }
 0x30a   :  { %1235 = vrot.lane.b32.xlu1 %v5568_v32, %s5265_s28  ;;  %v535_v49 = vsub.f32 %v519_v63, %v527_v47 }
 0x30b   :  { %v524_v46 = vpop.xlane.xlu0 %523 }
 0x30c   :  { %v534_v52 = vsub.f32 %v518_v2, %v524_v46  ;;  %v540_v56 = vmul.f32 1.442695, %v535_v49 }
 0x30d   :  { %953 = vrot.lane.b32.xlu0 %v5559_v25, %s5264_s27 }
 0x30e   :  { %v538_v59 = vmul.f32 1.442695, %v534_v52  ;;  %4998 = vpow2.f32 %v540_v56 }
 0x30f   :  { %v533_v48 = vpop.xlane.xlu0 %532 }
 0x310   :  { %v537_v58 = vsub.f32 %v521_v8, %v533_v48  ;;  %5000 = vpow2.f32 %v538_v59 }
 0x312   :  { %v544_v0 = vmul.f32 1.442695, %v537_v58 }
 0x313   :  { %v530_v55 = vpop.xlane.xlu0 %529 }
 0x314   :  { %v536_v62 = vsub.f32 %v520_v11, %v530_v55  ;;  %5002 = vpow2.f32 %v544_v0 }
 0x316   :  { %v542_v1 = vmul.f32 1.442695, %v536_v62 }
 0x318   :  { %5004 = vpow2.f32 %v542_v1 }
 0x31b   :  { %v4999_v32 = vpop.eup %4998 }
 0x31c   :  { %v549_v5 = vsel %vm400_vm2, %v4999_v32, 0.0 }
 0x31d   :  { %v5001_v4 = vpop.eup %5000 }
 0x31e   :  { %v546_v63 = vsel %vm400_vm2, %v5001_v4, 0.0 }
 0x321   :  { %v5003_v6 = vpop.eup %5002 }
 0x322   :  { %v555_v7 = vsel %vm400_vm2, %v5003_v6, 0.0 }
 0x325   :  { %v5005_v2 = vpop.eup %5004 }
 0x326   :  { %v552_v8 = vsel %vm400_vm2, %v5005_v2, 0.0 }
 0x32c   :  { %550 = vadd.xlane.f32.xlu0 %v549_v5 }
 0x32e   :  { %547 = vadd.xlane.f32.xlu1 %v546_v63 }
 0x330   :  { %556 = vadd.xlane.f32.xlu0 %v555_v7 }
 0x332   :  { %553 = vadd.xlane.f32.xlu1 %v552_v8 }
 0x37c   :  { %v793_v10 = vpop.xlane.xlu0 %792 }
 0x37d   :  { %v801_v11 = vsub.f32 %v785_v19, %v793_v10 }
 0x37e   :  { %v790_v12 = vpop.xlane.xlu1 %789 }
 0x37f   :  { %v806_v13 = vmul.f32 1.442695, %v801_v11  ;;  %v800_v15 = vsub.f32 %v784_v26, %v790_v12 }
 0x380   :  { %v799_v26 = vpop.xlane.xlu0 %798 }
 0x381   :  { %5006 = vpow2.f32 %v806_v13  ;;  %v804_v17 = vmul.f32 1.442695, %v800_v15  ;;  %v803_v28 = vsub.f32 %v5699_v31, %v799_v26 }
 0x382   :  { %v796_v18 = vpop.xlane.xlu1 %795 }
 0x383   :  { %5008 = vpow2.f32 %v804_v17  ;;  %v802_v29 = vsub.f32 %v786_v35, %v796_v18  ;;  %v810_v33 = vmul.f32 1.442695, %v803_v28 }
 0x384   :  { %v954_v40 = vpop.permute.xlu0 %953 }
 0x385   :  { %v808_v46 = vmul.f32 1.442695, %v802_v29  ;;  %5010 = vpow2.f32 %v810_v33 }
 0x386   :  { %v1236_v21 = vpop.permute.xlu1 %1235 }
 0x387   :  { %4547 = vmatprep.subr.msk.mxu0 %vm400_vm2, %v1236_v21  ;;  %5012 = vpow2.f32 %v808_v46 }
 0x388   :  { %4548 = vmatpush3.xpose.msk.msra.mxu0 %vm400_vm2, %v1236_v21 }
 0x38e   :  { %v5721_v23 = vpop.eup %5006 }
 0x38f   :  { %v815_v24 = vsel %vm400_vm2, %v5721_v23, 0.0 }
 0x390   :  { %v5009_v27 = vpop.eup %5008  ;;  %816 = vadd.xlane.f32.xlu0 %v815_v24 }
 0x391   :  { %v812_v19 = vsel %vm400_vm2, %v5009_v27, 0.0 }
 0x392   :  { %813 = vadd.xlane.f32.xlu1 %v812_v19  ;;  %v5731_v55 = vpop.eup %5010 }
 0x393   :  { %v821_v31 = vsel %vm400_vm2, %v5731_v55, 0.0 }
 0x394   :  { %v5733_v56 = vpop.eup %5012 }
 0x395   :  { %v818_v59 = vsel %vm400_vm2, %v5733_v56, 0.0 }
 0x3a3   :  { %947 = vrot.lane.b32.xlu1 %v5565_v30, %s5264_s27 }
 0x3a6   :  { %945 = vrot.lane.b32.xlu0 %v5547_v16, %s5264_s27 }
 0x3b5   :  { %v551_v47 = vpop.xlane.xlu0 %550 }
 0x3b6   :  { %5014 = vrcp.f32 %v551_v47 }
 0x3b7   :  { %v548_v48 = vpop.xlane.xlu1 %547 }
 0x3b8   :  { %5016 = vrcp.f32 %v548_v48 }
 0x3b9   :  { %v557_v49 = vpop.xlane.xlu0 %556 }
 0x3ba   :  { %5018 = vrcp.f32 %v557_v49 }
 0x3bb   :  { %v554_v52 = vpop.xlane.xlu1 %553 }
 0x3bc   :  { %5020 = vrcp.f32 %v554_v52 }
 0x3c3   :  { %v5015_v58 = vpop.eup %5014 }
 0x3c4   :  { %v563_v0 = vmul.f32 %v5015_v58, %v4999_v32 }
 0x3c5   :  { %v5017_v35 = vpop.eup %5016  ;;  %822 = vadd.xlane.f32.xlu0 %v821_v31 }
 0x3c6   :  { %v562_v62 = vmul.f32 %v5017_v35, %v5001_v4 }
 0x3c7   :  { %819 = vadd.xlane.f32.xlu1 %v818_v59  ;;  %v5019_v1 = vpop.eup %5018 }
 0x3c8   :  { %4483 = vmatprep.mubr.msk.f32.mxu1 %vm400_vm2, %v562_v62  ;;  %v565_v7 = vmul.f32 %v5019_v1, %v5003_v6 }
 0x3c9   :  { %v5021_v5 = vpop.eup %5020  ;;  %4484 = vmatmul.mubr.msk.f32.vlgmr.msra.gmra.mxu1 %vm400_vm2, %v563_v0 }
 0x3ca   :  { %4504 = vmatpush3.msra.mxu1 %v5648_v50  ;;  %v564_v63 = vmul.f32 %v5021_v5, %v5005_v2 }
 0x3cb   :  { %4505 = vmatprep.subr.mxu1 %v5705_v43 }
 0x3cc   :  { %4506 = vmatpush3.msra.mxu1 %v5705_v43  ;;  %4486 = vmatprep.mubr.msk.f32.mxu1 %vm400_vm2, %v564_v63 }
 0x3cd   :  { %4507 = vmatprep.subr.mxu1 %v5654_v51  ;;  %4487 = vmatmul.mubr.msk.f32.gmra.mxu1 %vm400_vm2, %v565_v7 }
 0x3ce   :  { %4508 = vmatpush3.msra.mxu1 %v5654_v51 }
 0x3cf   :  { %4509 = vmatprep.subr.mxu1 %v5657_v53 }
 0x3d0   :  { %4510 = vmatpush3.msra.mxu1 %v5657_v53 }
 0x3d1   :  { %4517 = vmatprep.subr.msk.mxu1 %vm400_vm2, %v5709_v45 }
 0x3d8   :  { %949 = vrot.lane.b32.xlu1 %v5600_v38, %s5264_s27 }
 0x3db   :  { %1233 = vrot.lane.b32.xlu0 %v5554_v22, %s5265_s28 }
 0x3dc   :  { %1231 = vrot.lane.b32.xlu1 %v5559_v25, %s5265_s28 }
 0x3df   :  { %951 = vrot.lane.b32.xlu0 %v5578_v34, %s5264_s27 }
 0x3e0   :  { %1225 = vrot.lane.b32.xlu1 %v5565_v30, %s5265_s28 }
 0x3e3   :  { %1223 = vrot.lane.b32.xlu0 %v5547_v16, %s5265_s28 }
 0x3e4   :  { %1229 = vrot.lane.b32.xlu1 %v5578_v34, %s5265_s28 }
 0x3e7   :  { %1227 = vrot.lane.b32.xlu0 %v5600_v38, %s5265_s28 }
 0x419   :  { %v817_v50 = vpop.xlane.xlu0 %816 }
 0x41a   :  { %5022 = vrcp.f32 %v817_v50 }
 0x41b   :  { %v814_v22 = vpop.xlane.xlu1 %813 }
 0x41c   :  { %5024 = vrcp.f32 %v814_v22 }
 0x41d   :  { %v946_v16 = vpop.permute.xlu0 %945 }
 0x41f   :  { %v948_v30 = vpop.permute.xlu1 %947 }
 0x427   :  { %v5023_v25 = vpop.eup %5022 }
 0x428   :  { %v829_v43 = vmul.f32 %v5023_v25, %v5721_v23 }
 0x429   :  { %v5025_v51 = vpop.eup %5024 }
 0x42a   :  { %v828_v53 = vmul.f32 %v5025_v51, %v5009_v27 }
 0x42c   :  { %4511 = vmatprep.mubr.msk.f32.mxu1 %vm400_vm2, %v828_v53 }
 0x42d   :  { %4512 = vmatmul.mubr.msk.f32.vlgmr.msra.gmra.mxu1 %vm400_vm2, %v829_v43 }
 0x42e   :  { %4518 = vmatpush3.xpose.msk.msra.mxu1 %vm400_vm2, %v5709_v45 }
 0x42f   :  { %4519 = vmatprep.subr.msk.mxu1 %vm400_vm2, %v5661_v54 }
 0x432   :  { %4520 = vmatpush3.xpose.msk.msra.mxu1 %vm400_vm2, %v5661_v54 }
 0x433   :  { %4521 = vmatprep.subr.msk.mxu1 %vm400_vm2, %v5707_v44 }
 0x436   :  { %4522 = vmatpush3.xpose.msk.msra.mxu1 %vm400_vm2, %v5707_v44 }
 0x437   :  { %4523 = vmatprep.subr.msk.mxu1 %vm400_vm2, %v954_v40 }
 0x43a   :  { %4524 = vmatpush3.xpose.msk.msra.mxu1 %vm400_vm2, %v954_v40 }
 0x44e   :  { %v823_v34 = vpop.xlane.xlu0 %822 }
 0x44f   :  { %5026 = vrcp.f32 %v823_v34 }
 0x450   :  { %v820_v38 = vpop.xlane.xlu1 %819 }
 0x451   :  { %5028 = vrcp.f32 %v820_v38 }
 0x452   :  { %v1234_v45 = vpop.permute.xlu0 %1233 }
 0x453   :  { %4549 = vmatprep.subr.msk.mxu0 %vm400_vm2, %v1234_v45 }
 0x454   :  { %v950_v54 = vpop.permute.xlu1 %949  ;;  %4550 = vmatpush3.xpose.msk.msra.mxu0 %vm400_vm2, %v1234_v45 }
 0x456   :  { %v952_v32 = vpop.permute.xlu0 %951 }
 0x458   :  { %v1232_v4 = vpop.permute.xlu1 %1231 }
 0x459   :  { %4551 = vmatprep.subr.msk.mxu0 %vm400_vm2, %v1232_v4 }
 0x45a   :  { %4552 = vmatpush3.xpose.msk.msra.mxu0 %vm400_vm2, %v1232_v4  ;;  %v1224_v44 = vpop.permute.xlu0 %1223 }
 0x45b   :  { %4553 = vmatprep.mubr.msk.f32.mxu0 %vm400_vm2, %v1224_v44  ;;  %4584 = vmatprep.subr.mxu0 %v5262_v61 }
 0x45c   :  { %v1226_v6 = vpop.permute.xlu1 %1225  ;;  %v5027_v2 = vpop.eup %5026 }
 0x45d   :  { %4554 = vmatmul.mubr.msk.f32.vlgmr.msra.gmra.mxu0 %vm400_vm2, %v1226_v6  ;;  %v831_v13 = vmul.f32 %v5027_v2, %v5731_v55 }
 0x45e   :  { %v5029_v8 = vpop.eup %5028  ;;  %v1228_v10 = vpop.permute.xlu0 %1227 }
 0x45f   :  { %4556 = vmatprep.mubr.msk.f32.mxu0 %vm400_vm2, %v1228_v10  ;;  %v830_v11 = vmul.f32 %v5029_v8, %v5733_v56 }
 0x460   :  { %v1230_v12 = vpop.permute.xlu1 %1229 }
 0x461   :  { %4514 = vmatprep.mubr.msk.f32.mxu1 %vm400_vm2, %v830_v11  ;;  %4557 = vmatmul.mubr.msk.f32.gmra.mxu0 %vm400_vm2, %v1230_v12 }
 0x462   :  { %4515 = vmatmul.mubr.msk.f32.gmra.mxu1 %vm400_vm2, %v831_v13  ;;  %4616 = vmatprep.mubr.msk.f32.mxu0 %vm5266_vm3, %v5262_v61 }
 0x463   :  { %4525 = vmatprep.mubr.msk.f32.mxu1 %vm400_vm2, %v946_v16 }
 0x466   :  { %4526 = vmatmul.mubr.msk.f32.vlgmr.msra.gmra.mxu1 %vm400_vm2, %v948_v30 }
 0x467   :  { %4528 = vmatprep.mubr.msk.f32.mxu1 %vm400_vm2, %v950_v54 }
 0x46a   :  { %4529 = vmatmul.mubr.msk.f32.gmra.mxu1 %vm400_vm2, %v952_v32 }
 0x489   :  { %v5800_v15 = vpop.f32.mrf.mxu1 }
 0x48b   :  { %v5802_v17 = vpop.f32.mrf.mxu1 }
 0x48d   :  { %v5804_v18 = vpop.f32.mrf.mxu1 }
 0x48f   :  { %v5806_v21 = vpop.f32.mrf.mxu1 }
 0x4ed   :  { %v5808_v23 = vpop.f32.mrf.mxu1 }
 0x4ef   :  { %v5810_v27 = vpop.f32.mrf.mxu1 }
 0x51d   :  { %v4555_v24 = vpop.f32.mrf.mxu0 }
 0x51e   :  { %v1341_v50 = vmul.f32 0.17677669, %v4555_v24 }
 0x51f   :  { %v1321_v19 = vpop.f32.mrf.mxu0 }
 0x520   :  { %v1340_v40 = vmul.f32 0.17677669, %v1321_v19  ;;  %v1345_v43 = vadd.f32 %v1341_v50, %v5669_v57 }
 0x521   :  { %v4558_v28 = vpop.f32.mrf.mxu0 }
 0x522   :  { %v5812_v26 = vpop.f32.mrf.mxu1  ;;  %v1344_v35 = vadd.f32 %v1340_v40, %v5674_v60  ;;  %v1343_v51 = vmul.f32 0.17677669, %v4558_v28  ;;  %v1351_v16 = vsel %vm400_vm2, %v1345_v43, -inf }
 0x523   :  { %v1331_v47 = vpop.f32.mrf.mxu0 }
 0x524   :  { %v5814_v29 = vpop.f32.mrf.mxu1  ;;  %v1342_v56 = vmul.f32 0.17677669, %v1331_v47  ;;  %v1348_v5 = vsel %vm400_vm2, %v1344_v35, -inf }
 0x526   :  { %v4527_v33 = vpop.f32.mrf.mxu1  ;;  %v1346_v7 = vadd.f32 %v1342_v56, %v5689_v9 }
 0x527   :  { %v1063_v46 = vmul.f32 0.17677669, %v4527_v33 }
 0x528   :  { %v1043_v48 = vpop.f32.mrf.mxu1  ;;  %v1354_v25 = vsel %vm400_vm2, %v1346_v7, -inf }
 0x529   :  { %v1062_v49 = vmul.f32 0.17677669, %v1043_v48  ;;  %v5817_v52 = vadd.f32 %v1063_v46, %v5669_v57 }
 0x52a   :  { %v4530_v55 = vpop.f32.mrf.mxu1 }
 0x52b   :  { %v1073_v58 = vsel %vm400_vm2, %v5817_v52, -inf  ;;  %v5822_v31 = vadd.f32 %v1062_v49, %v5674_v60  ;;  %v1065_v62 = vmul.f32 0.17677669, %v4530_v55 }
 0x52c   :  { %1074 = vmax.xlane.f32.xlu1 %v1073_v58  ;;  %v1053_v59 = vpop.f32.mrf.mxu1 }
 0x52d   :  { %v1064_v0 = vmul.f32 0.17677669, %v1053_v59  ;;  %v1070_v1 = vsel %vm400_vm2, %v5822_v31, -inf  ;;  %v1069_v22 = vadd.f32 %v1065_v62, %v5682_v3 }
 0x52e   :  { %1071 = vmax.xlane.f32.xlu0 %v1070_v1 }
 0x52f   :  { %v5829_v63 = vadd.f32 %v1064_v0, %v5689_v9  ;;  %v1079_v53 = vsel %vm400_vm2, %v1069_v22, -inf  ;;  %v1347_v9 = vadd.f32 %v1343_v51, %v5682_v3 }
 0x530   :  { %1349 = vmax.xlane.f32.xlu1 %v1348_v5 }
 0x531   :  { %v1076_v60 = vsel %vm400_vm2, %v5829_v63, -inf  ;;  %v1357_v30 = vsel %vm400_vm2, %v1347_v9, -inf }
 0x532   :  { %1077 = vmax.xlane.f32.xlu0 %v1076_v60 }
 0x534   :  { %1355 = vmax.xlane.f32.xlu1 %v1354_v25 }
 0x536   :  { %1080 = vmax.xlane.f32.xlu0 %v1079_v53 }
 0x53a   :  { %1352 = vmax.xlane.f32.xlu0 %v1351_v16 }
 0x53e   :  { %1358 = vmax.xlane.f32.xlu0 %v1357_v30 }
 0x5b5   :  { %v1075_v34 = vpop.xlane.xlu1 %1074 }
 0x5b6   :  { %v1083_v55 = vsub.f32 %v5817_v52, %v1075_v34 }
 0x5b7   :  { %v1072_v38 = vpop.xlane.xlu0 %1071 }
 0x5b8   :  { %v1082_v49 = vsub.f32 %v5822_v31, %v1072_v38 }
 0x5b9   :  { %v1350_v45 = vpop.xlane.xlu1 %1349 }
 0x5ba   :  { %v1360_v54 = vsub.f32 %v1344_v35, %v1350_v45  ;;  %v1086_v56 = vmul.f32 1.442695, %v1082_v49  ;;  %v1088_v35 = vmul.f32 1.442695, %v1083_v55  ;;  %v1650_v55 = vld [vmem:[%s7000_s10 + $0x68] sm:$0xff] }
 0x5bb   :  { %v1078_v32 = vpop.xlane.xlu0 %1077 }
 0x5bc   :  { %v1364_v4 = vmul.f32 1.442695, %v1360_v54  ;;  %v1084_v58 = vsub.f32 %v5829_v63, %v1078_v32 }
 0x5bd   :  { %v1356_v44 = vpop.xlane.xlu1 %1355 }
 0x5be   :  { %5030 = vpow2.f32 %v1364_v4  ;;  %v1362_v6 = vsub.f32 %v1346_v7, %v1356_v44  ;;  %v1090_v62 = vmul.f32 1.442695, %v1084_v58  ;;  %v1649_v58 = vld [vmem:[%s7000_s10 + $0x60] sm:$0xff] }
 0x5bf   :  { %v1081_v2 = vpop.xlane.xlu0 %1080 }
 0x5c0   :  { %v1368_v57 = vmul.f32 1.442695, %v1362_v6  ;;  %v1085_v59 = vsub.f32 %v1069_v22, %v1081_v2 }
 0x5c2   :  { %5032 = vpow2.f32 %v1368_v57  ;;  %v1092_v0 = vmul.f32 1.442695, %v1085_v59  ;;  %v1647_v59 = vld [vmem:[%s7000_s10 + $0x50] sm:$0xff] }
 0x5c3   :  { %v1353_v8 = vpop.xlane.xlu0 %1352 }
 0x5c4   :  { %v1361_v10 = vsub.f32 %v1345_v43, %v1353_v8 }
 0x5c6   :  { %v1366_v11 = vmul.f32 1.442695, %v1361_v10 }
 0x5c7   :  { %v1359_v3 = vpop.xlane.xlu0 %1358 }
 0x5c8   :  { %5034 = vpow2.f32 %v1366_v11  ;;  %v1363_v12 = vsub.f32 %v1347_v9, %v1359_v3 }
 0x5ca   :  { %v1370_v13 = vmul.f32 1.442695, %v1363_v12 }
 0x5cb   :  { %v5841_v24 = vpop.eup %5030 }
 0x5cc   :  { %5036 = vpow2.f32 %v1370_v13  ;;  %v1372_v19 = vsel %vm400_vm2, %v5841_v24, 0.0 }
 0x5cd   :  { %1373 = vadd.xlane.f32.xlu1 %v1372_v19  ;;  %5038 = vpow2.f32 %v1086_v56 }
 0x5ce   :  { %5040 = vpow2.f32 %v1088_v35  ;;  %v1648_v35 = vld [vmem:[%s7000_s10 + $0x58] sm:$0xff] }
 0x5cf   :  { %v5845_v28 = vpop.eup %5032  ;;  %5042 = vpow2.f32 %v1090_v62  ;;  %v1646_v62 = vld [vmem:[%s7000_s10 + $0x48] sm:$0xff] }
 0x5d0   :  { %v1378_v33 = vsel %vm400_vm2, %v5845_v28, 0.0  ;;  %5044 = vpow2.f32 %v1092_v0  ;;  %v1645_v0 = vld [vmem:[%s7000_s10 + $0x40] sm:$0xff] }
 0x5d1   :  { %1379 = vadd.xlane.f32.xlu1 %v1378_v33 }
 0x5d5   :  { %v5849_v40 = vpop.eup %5034 }
 0x5d6   :  { %v1375_v46 = vsel %vm400_vm2, %v5849_v40, 0.0 }
 0x5d7   :  { %1376 = vadd.xlane.f32.xlu0 %v1375_v46 }
 0x5d9   :  { %v5853_v47 = vpop.eup %5036 }
 0x5da   :  { %v1381_v48 = vsel %vm400_vm2, %v5853_v47, 0.0  ;;  %v5039_v1 = vpop.eup %5038 }
 0x5db   :  { %1382 = vadd.xlane.f32.xlu0 %v1381_v48  ;;  %v1094_v5 = vsel %vm400_vm2, %v5039_v1, 0.0  ;;  %v1651_v48 = vld [vmem:[%s7000_s10 + $0x70] sm:$0xff] }
 0x5e2   :  { %1120 = vrot.lane.b32.xlu1 %v5591_v37, %s5264_s27 }
 0x5e6   :  { %1116 = vrot.lane.b32.xlu1 %v5605_v39, %s5264_s27 }
 0x5ea   :  { %1114 = vrot.lane.b32.xlu1 %v5618_v42, %s5264_s27 }
 0x5ee   :  { %1396 = vrot.lane.b32.xlu1 %v5614_v41, %s5265_s28 }
 0x5f1   :  { %1118 = vrot.lane.b32.xlu0 %v5614_v41, %s5264_s27  ;;  %v5041_v41 = vpop.eup %5040 }
 0x5f2   :  { %v1097_v31 = vsel %vm400_vm2, %v5041_v41, 0.0 }
 0x5f5   :  { %1398 = vrot.lane.b32.xlu0 %v5591_v37, %s5265_s28  ;;  %v5043_v37 = vpop.eup %5042 }
 0x5f6   :  { %v5045_v52 = vpop.eup %5044  ;;  %v1100_v63 = vsel %vm400_vm2, %v5043_v37, 0.0 }
 0x5f7   :  { %v1103_v7 = vsel %vm400_vm2, %v5045_v52, 0.0 }
 0x612   :  { %1095 = vadd.xlane.f32.xlu1 %v1094_v5  ;;  %v1642_v5 = vld [vmem:[%s7000_s10 + $0x28] sm:$0xff] }
 0x614   :  { %1098 = vadd.xlane.f32.xlu0 %v1097_v31  ;;  %v1640_v31 = vld [vmem:[%s7000_s10 + $0x18] sm:$0xff] }
 0x616   :  { %1101 = vadd.xlane.f32.xlu1 %v1100_v63  ;;  %v1638_v63 = vld [vmem:[%s7000_s10 + $0x8] sm:$0xff] }
 0x618   :  { %1104 = vadd.xlane.f32.xlu0 %v1103_v7 }
 0x627   :  { %1392 = vrot.lane.b32.xlu1 %v5618_v42, %s5265_s28 }
 0x62b   :  { %1507 = vrot.lane.b32.xlu1 %v5808_v23, %s5265_s28 }
 0x62e   :  { %1394 = vrot.lane.b32.xlu0 %v5605_v39, %s5265_s28 }
 0x632   :  { %1511 = vrot.lane.b32.xlu0 %v5812_v26, %s5265_s28 }
 0x636   :  { %1509 = vrot.lane.b32.xlu0 %v5814_v29, %s5265_s28 }
 0x63a   :  { %1505 = vrot.lane.b32.xlu0 %v5810_v27, %s5265_s28 }
 0x656   :  { %v1374_v50 = vpop.xlane.xlu1 %1373 }
 0x65a   :  { %v1380_v60 = vpop.xlane.xlu1 %1379 }
 0x65e   :  { %v1121_v22 = vpop.permute.xlu1 %1120 }
 0x65f   :  { %4531 = vmatprep.subr.mxu1 %v1121_v22 }
 0x660   :  { %4532 = vmatpush3.msra.mxu1 %v1121_v22  ;;  %v1377_v42 = vpop.xlane.xlu0 %1376 }
 0x662   :  { %v1117_v23 = vpop.permute.xlu1 %1116 }
 0x664   :  { %v1383_v25 = vpop.xlane.xlu0 %1382 }
 0x666   :  { %v1115_v39 = vpop.permute.xlu1 %1114 }
 0x668   :  { %v1119_v51 = vpop.permute.xlu0 %1118 }
 0x669   :  { %4533 = vmatprep.subr.mxu1 %v1119_v51 }
 0x66a   :  { %4534 = vmatpush3.msra.mxu1 %v1119_v51  ;;  %v1397_v29 = vpop.permute.xlu1 %1396 }
 0x66b   :  { %4535 = vmatprep.subr.mxu1 %v1117_v23 }
 0x66c   :  { %4536 = vmatpush3.msra.mxu1 %v1117_v23  ;;  %v1399_v26 = vpop.permute.xlu0 %1398 }
 0x66d   :  { %4537 = vmatprep.subr.mxu1 %v1115_v39 }
 0x66e   :  { %4538 = vmatpush3.msra.mxu1 %v1115_v39 }
 0x66f   :  { %4559 = vmatprep.subr.mxu1 %v1399_v26 }
 0x69b   :  { %v1096_v27 = vpop.xlane.xlu1 %1095 }
 0x69c   :  { %5046 = vrcp.f32 %v1096_v27 }
 0x69d   :  { %v1099_v53 = vpop.xlane.xlu0 %1098 }
 0x69e   :  { %5048 = vrcp.f32 %v1099_v53 }
 0x69f   :  { %v1102_v43 = vpop.xlane.xlu1 %1101 }
 0x6a0   :  { %5050 = vrcp.f32 %v1102_v43 }
 0x6a1   :  { %5052 = vrcp.f32 %v1374_v50  ;;  %v1105_v16 = vpop.xlane.xlu0 %1104 }
 0x6a2   :  { %5054 = vrcp.f32 %v1105_v16 }
 0x6a3   :  { %5056 = vrcp.f32 %v1377_v42  ;;  %v1393_v10 = vpop.permute.xlu1 %1392 }
 0x6a4   :  { %5058 = vrcp.f32 %v1380_v60 }
 0x6a5   :  { %5060 = vrcp.f32 %v1383_v25  ;;  %v1395_v2 = vpop.permute.xlu0 %1394 }
 0x6a7   :  { %v1508_v50 = vpop.permute.xlu1 %1507 }
 0x6a8   :  { %v1550_v16 = vsel %vm400_vm2, %v5800_v15, %v1508_v50 }
 0x6a9   :  { %v5047_v9 = vpop.eup %5046  ;;  %v1512_v7 = vpop.permute.xlu0 %1511 }
 0x6aa   :  { %v1110_v30 = vmul.f32 %v5047_v9, %v5039_v1  ;;  %v1644_v1 = vld [vmem:[%s7000_s10 + $0x38] sm:$0xff]  ;;  %v1552_v51 = vsel %vm400_vm2, %v5804_v18, %v1512_v7 }
 0x6ab   :  { %v5049_v34 = vpop.eup %5048 }
 0x6ac   :  { %v1111_v38 = vmul.f32 %v5049_v34, %v5041_v41  ;;  %4539 = vmatprep.mubr.msk.f32.mxu1 %vm400_vm2, %v1110_v30  ;;  %v1643_v41 = vld [vmem:[%s7000_s10 + $0x30] sm:$0xff] }
 0x6ad   :  { %v5051_v45 = vpop.eup %5050  ;;  %v1510_v60 = vpop.permute.xlu0 %1509 }
 0x6ae   :  { %v5053_v54 = vpop.eup %5052  ;;  %4540 = vmatmul.mubr.msk.f32.vlgmr.msra.gmra.mxu1 %vm400_vm2, %v1111_v38  ;;  %v1112_v32 = vmul.f32 %v5051_v45, %v5043_v37  ;;  %v1641_v37 = vld [vmem:[%s7000_s10 + $0x20] sm:$0xff] }
 0x6af   :  { %v5055_v4 = vpop.eup %5054  ;;  %4560 = vmatpush3.msra.mxu1 %v1399_v26  ;;  %v1388_v57 = vmul.f32 %v5053_v54, %v5841_v24  ;;  %v1563_v54 = vld [vmem:[%s6997_s7] sm:$0xf] }
 0x6b0   :  { %4561 = vmatprep.subr.mxu1 %v1397_v29  ;;  %4542 = vmatprep.mubr.msk.f32.mxu1 %vm400_vm2, %v1112_v32  ;;  %v1113_v44 = vmul.f32 %v5055_v4, %v5045_v52  ;;  %v5057_v6 = vpop.eup %5056  ;;  %v1639_v52 = vld [vmem:[%s7000_s10 + $0x10] sm:$0xff] }
 0x6b1   :  { %4562 = vmatpush3.msra.mxu1 %v1397_v29  ;;  %v5059_v8 = vpop.eup %5058  ;;  %v1389_v11 = vmul.f32 %v5057_v6, %v5849_v40  ;;  %v1506_v42 = vpop.permute.xlu0 %1505  ;;  %v1551_v29 = vsel %vm400_vm2, %v5806_v21, %v1510_v60  ;;  %v5126_v6 = vld [vmem:[%s6992_s2] sm:$0xff] }
 0x6b2   :  { %4563 = vmatprep.subr.mxu1 %v1395_v2  ;;  %4543 = vmatmul.mubr.msk.f32.gmra.mxu1 %vm400_vm2, %v1113_v44  ;;  %v5061_v3 = vpop.eup %5060  ;;  %v1390_v12 = vmul.f32 %v5059_v8, %v5845_v28  ;;  %v1549_v21 = vsel %vm400_vm2, %v5802_v17, %v1506_v42  ;;  %v1637_v17 = vld [vmem:[%s7000_s10] sm:$0xff] }
 0x6b3   :  { %4564 = vmatpush3.msra.mxu1 %v1395_v2  ;;  %4567 = vmatprep.mubr.msk.f32.mxu1 %vm400_vm2, %v1388_v57  ;;  %v1391_v13 = vmul.f32 %v5061_v3, %v5853_v47  ;;  %v1652_v47 = vld [vmem:[%s7000_s10 + $0x78] sm:$0xff]  ;;  %v5267_v57 = vmov 0   ;;  %v1738_v8 = vld [vmem:[%s6995_s5 + $0x40] sm:$0x1] }
 0x6b4   :  { %4565 = vmatprep.subr.mxu1 %v1393_v10  ;;  %4585 = vmatpush3.msra.mxu0 %v1652_v47  ;;  %v1737_v2 = vld [vmem:[%s6995_s5 + $0x38] sm:$0xff]  ;;  %v1734_v3 = vld [vmem:[%s6995_s5 + $0x20] sm:$0xff] }
 0x6b5   :  { %4566 = vmatpush3.msra.mxu1 %v1393_v10  ;;  %4586 = vmatprep.subr.mxu0 %v5262_v61  ;;  %v1736_v10 = vld [vmem:[%s6995_s5 + $0x30] sm:$0xff] }
 0x6b6   :  { %4568 = vmatmul.mubr.msk.f32.vlgmr.msra.gmra.mxu1 %vm400_vm2, %v1389_v11  ;;  %4573 = vmatprep.subr.mxu1 %v5262_v61  ;;  %v1735_v11 = vld [vmem:[%s6995_s5 + $0x28] sm:$0xff] }
 0x6b7   :  { %4570 = vmatprep.mubr.msk.f32.mxu1 %vm400_vm2, %v1390_v12  ;;  %4587 = vmatpush3.msra.mxu0 %v1651_v48  ;;  %v1733_v12 = vld [vmem:[%s6995_s5 + $0x18] sm:$0xff]  ;;  %v1794_v48 = vld [vmem:[%s6994_s4 + $0x8] sm:$0xff] }
 0x6b8   :  { %4588 = vmatprep.subr.mxu0 %v5262_v61  ;;  %4997 = vset.pattern.permute.xlu1 %v5267_v57 }
 0x6b9   :  { %4589 = vmatpush3.msra.mxu0 %v1650_v55  ;;  %4996 = vset.pattern.permute.xlu0 %v5267_v57  ;;  %v1796_v55 = vld [vmem:[%s6994_s4 + $0x18] sm:$0xff] }
 0x6ba   :  { %4571 = vmatmul.mubr.msk.f32.gmra.mxu1 %vm400_vm2, %v1391_v13  ;;  %4590 = vmatprep.subr.mxu0 %v5262_v61  ;;  %v1732_v13 = vld [vmem:[%s6995_s5 + $0x10] sm:$0xff]  ;;  %v5132_v57 = vld [vmem:[%s6990_s0 + $0x18] sm:$0xff] }
 0x6bb   :  { %4581 = vmatprep.mubr.msk.f32.mxu1 %vm5266_vm3, %v5262_v61  ;;  %4591 = vmatpush3.msra.mxu0 %v1649_v58  ;;  %v1798_v58 = vld [vmem:[%s6994_s4 + $0x28] sm:$0xff] }
 0x6bc   :  { %4592 = vmatprep.subr.mxu0 %v5262_v61 }
 0x6bd   :  { %4593 = vmatpush3.msra.mxu0 %v1648_v35  ;;  %v1799_v35 = vld [vmem:[%s6994_s4 + $0x30] sm:$0xff] }
 0x6be   :  { %4594 = vmatprep.subr.mxu0 %v5262_v61 }
 0x6bf   :  { %4595 = vmatpush3.msra.mxu0 %v1647_v59  ;;  %v1800_v59 = vld [vmem:[%s6994_s4 + $0x38] sm:$0xff] }
 0x6c0   :  { %4596 = vmatprep.subr.mxu0 %v5262_v61 }
 0x6c1   :  { %4597 = vmatpush3.msra.mxu0 %v1646_v62  ;;  %v1801_v62 = vld [vmem:[%s6994_s4 + $0x40] sm:$0x1] }
 0x6c2   :  { %4598 = vmatprep.subr.mxu0 %v5262_v61 }
 0x6c3   :  { %4599 = vmatpush3.msra.mxu0 %v1645_v0 }
 0x6c4   :  { %4600 = vmatprep.subr.mxu0 %v5262_v61 }
 0x6c5   :  { %4601 = vmatpush3.msra.mxu0 %v1644_v1 }
 0x6c6   :  { %4602 = vmatprep.subr.mxu0 %v5262_v61 }
 0x6c7   :  { %4603 = vmatpush3.msra.mxu0 %v1643_v41 }
 0x6c8   :  { %4604 = vmatprep.subr.mxu0 %v5262_v61 }
 0x6c9   :  { %4605 = vmatpush3.msra.mxu0 %v1642_v5 }
 0x6ca   :  { %4606 = vmatprep.subr.mxu0 %v5262_v61 }
 0x6cb   :  { %4607 = vmatpush3.msra.mxu0 %v1641_v37 }
 0x6cc   :  { %4608 = vmatprep.subr.mxu0 %v5262_v61 }
 0x6cd   :  { %4609 = vmatpush3.msra.mxu0 %v1640_v31 }
 0x6ce   :  { %4610 = vmatprep.subr.mxu0 %v5262_v61 }
 0x6cf   :  { %4611 = vmatpush3.msra.mxu0 %v1639_v52 }
 0x6d0   :  { %4612 = vmatprep.subr.mxu0 %v5262_v61 }
 0x6d1   :  { %4613 = vmatpush3.msra.mxu0 %v1638_v63 }
 0x6d2   :  { %4614 = vmatprep.subr.mxu0 %v5262_v61 }
 0x6d3   :  { %4615 = vmatpush3.msra.mxu0 %v1637_v17 }
 0x76e   :  { %v4541_v24 = vpop.f32.mrf.mxu1 }
 0x76f   :  { %1523 = vrot.lane.b32.xlu1 %v4541_v24, %s5264_s27  ;;  %v1731_v24 = vld [vmem:[%s6995_s5 + $0x8] sm:$0xff] }
 0x770   :  { %v1204_v19 = vpop.f32.mrf.mxu1 }
 0x772   :  { %v4544_v33 = vpop.f32.mrf.mxu1 }
 0x773   :  { %1527 = vrot.lane.b32.xlu1 %v4544_v33, %s5264_s27  ;;  %v4010_v33 = vld [vmem:[%s7001_s11] ss:$0 sm:$0xff] }
 0x774   :  { %v1214_v40 = vpop.f32.mrf.mxu1 }
 0x775   :  { %1525 = vrot.lane.b32.xlu0 %v1214_v40, %s5264_s27 }
 0x776   :  { %v4569_v28 = vpop.f32.mrf.mxu1 }
 0x778   :  { %v1482_v46 = vpop.f32.mrf.mxu1 }
 0x77a   :  { %v4572_v49 = vpop.f32.mrf.mxu1 }
 0x77b   :  { %1543 = vrot.lane.b32.xlu1 %v4572_v49, %s5263_s9  ;;  %v1795_v49 = vld [vmem:[%s6994_s4 + $0x10] sm:$0xff] }
 0x77c   :  { %v1492_v56 = vpop.f32.mrf.mxu1 }
 0x77d   :  { %1541 = vrot.lane.b32.xlu0 %v1492_v56, %s5263_s9  ;;  %v1797_v56 = vld [vmem:[%s6994_s4 + $0x20] sm:$0xff] }
 0x77f   :  { %1539 = vrot.lane.b32.xlu1 %v4569_v28, %s5263_s9 }
 0x781   :  { %1521 = vrot.lane.b32.xlu0 %v1204_v19, %s5264_s27  ;;  %v1730_v19 = vld [vmem:[%s6995_s5] sm:$0xff] }
 0x783   :  { %1537 = vrot.lane.b32.xlu1 %v1482_v46, %s5263_s9  ;;  %v1793_v46 = vld [vmem:[%s6994_s4] sm:$0xff] }
 0x785   :  { %1781 = vperm.xlu0 %4996, %v1738_v8  }
 0x787   :  { %1776 = vperm.xlu1 %4997, %v1737_v2  }
 0x789   :  { %1766 = vperm.xlu0 %4996, %v1735_v11  }
 0x78b   :  { %1771 = vperm.xlu1 %4997, %v1736_v10  }
 0x78d   :  { %1756 = vperm.xlu0 %4996, %v1733_v12  }
 0x78f   :  { %1761 = vperm.xlu1 %4997, %v1734_v3   ;;  %v5133_v3 = vld [vmem:[%s6990_s0 + $0x10] sm:$0xff] }
 0x791   :  { %1746 = vperm.xlu0 %4996, %v1731_v24  }
 0x793   :  { %1751 = vperm.xlu1 %4997, %v1732_v13  }
 0x797   :  { %1741 = vperm.xlu1 %4997, %v1730_v19   ;;  %v5134_v19 = vld [vmem:[%s6990_s0 + $0x8] sm:$0xff] }
 0x7e1   :  { %v1524_v22 = vpop.permute.xlu1 %1523 }
 0x7e2   :  { %v1555_v18 = vsel %vm1553_vm5, %v1550_v16, %v1524_v22 }
 0x7e5   :  { %v1528_v25 = vpop.permute.xlu1 %1527 }
 0x7e6   :  { %v1557_v39 = vsel %vm1553_vm5, %v1552_v51, %v1528_v25 }
 0x7e7   :  { %v1526_v23 = vpop.permute.xlu0 %1525 }
 0x7e8   :  { %v1556_v53 = vsel %vm1553_vm5, %v1551_v29, %v1526_v23 }
 0x7ed   :  { %v1544_v26 = vpop.permute.xlu1 %1543 }
 0x7ee   :  { %v1562_v27 = vsel %vm1558_vm4, %v1557_v39, %v1544_v26 }
 0x7ef   :  { %4574 = vmatpush3.msra.mxu1 %v1562_v27  ;;  %v1542_v43 = vpop.permute.xlu0 %1541  ;;  %v5127_v27 = vld [vmem:[%s6990_s0 + $0x40] sm:$0x1] }
 0x7f0   :  { %v1561_v9 = vsel %vm1558_vm4, %v1556_v53, %v1542_v43  ;;  %4575 = vmatprep.subr.mxu1 %v5262_v61 }
 0x7f1   :  { %v1540_v30 = vpop.permute.xlu1 %1539  ;;  %4576 = vmatpush3.msra.mxu1 %v1561_v9  ;;  %v5128_v9 = vld [vmem:[%s6990_s0 + $0x38] sm:$0xff] }
 0x7f2   :  { %v1560_v34 = vsel %vm1558_vm4, %v1555_v18, %v1540_v30  ;;  %4577 = vmatprep.subr.mxu1 %v5262_v61 }
 0x7f3   :  { %4578 = vmatpush3.msra.mxu1 %v1560_v34  ;;  %v1522_v38 = vpop.permute.xlu0 %1521  ;;  %v5129_v34 = vld [vmem:[%s6990_s0 + $0x30] sm:$0xff] }
 0x7f4   :  { %v1554_v45 = vsel %vm1553_vm5, %v1549_v21, %v1522_v38  ;;  %4579 = vmatprep.subr.mxu1 %v5262_v61 }
 0x7f5   :  { %v1538_v15 = vpop.permute.xlu1 %1537 }
 0x7f6   :  { %v1559_v32 = vsel %vm1558_vm4, %v1554_v45, %v1538_v15 }
 0x7f7   :  { %4580 = vmatpush3.msra.mxu1 %v1559_v32 }
 0x7f8   :  { %4582 = vmatmul.mubr.msk.f32.vlgmr.msra.gmra.mxu1 %vm400_vm2, %v1563_v54  ;;  %4619 = vmatprep.subr.mxu1 %v5262_v61  ;;  %v5130_v54 = vld [vmem:[%s6990_s0 + $0x28] sm:$0xff] }
 0x7f9   :  { %4621 = vmatprep.mubr.msk.f32.mxu1 %vm5266_vm3, %v5262_v61 }
 0x800   :  { %v6096_v42 = vpop.permute.xlu0 %1781 }
 0x801   :  { %v1792_v53 = vmul.f32 %v5127_v27, %v6096_v42  ;;  %v5149_v27 = vld [vmem:[%s6998_s8 + $0x40] sm:$0xff] }
 0x802   :  { %v6094_v50 = vpop.permute.xlu1 %1776 }
 0x803   :  { %v1791_v18 = vmul.f32 %v5128_v9, %v6094_v50  ;;  %v5151_v9 = vld [vmem:[%s6998_s8 + $0x10] sm:$0xff] }
 0x804   :  { %v6100_v26 = vpop.permute.xlu0 %1766 }
 0x805   :  { %v1789_v32 = vmul.f32 %v5130_v54, %v6100_v26 }
 0x806   :  { %v6098_v23 = vpop.permute.xlu1 %1771 }
 0x807   :  { %v1790_v21 = vmul.f32 %v5129_v34, %v6098_v23 }
 0x808   :  { %v6116_v45 = vpop.permute.xlu0 %1756 }
 0x809   :  { %v1787_v8 = vmul.f32 %v5132_v57, %v6116_v45 }
 0x80a   :  { %v6106_v43 = vpop.permute.xlu1 %1761 }
 0x80c   :  { %v6135_v11 = vpop.permute.xlu0 %1746 }
 0x8b8   :  { %v1633_v4 = vpop.f32.mrf.mxu1 }
 0x8b9   :  { %4617 = vmatmul.mubr.f32.vlgmr.msra.gmra.mxu0 %v1633_v4  ;;  %v6123_v4 = vpop.permute.xlu1 %1751 }
 0x8ba   :  { %v4583_v44 = vpop.f32.mrf.mxu1  ;;  %4711 = vmatprep.mubr.msk.f32.mxu0 %vm59_vm1, %v5126_v6  ;;  %v1786_v12 = vmul.f32 %v5133_v3, %v6123_v4 }
 0x8bb   :  { %v5131_v44 = vld [vmem:[%s6990_s0 + $0x20] sm:$0xff] }
 0x8bc   :  { %v1788_v6 = vmul.f32 %v5131_v44, %v6106_v43 }
 0x8bd   :  { %v6142_v24 = vpop.permute.xlu1 %1741 }
 0x979   :  { %v1726_v40 = vpop.f32.mrf.mxu0 }
 0x97a   :  { %v1727_v28 = vadd.f32 %v4010_v33, %v1726_v40  ;;  %v1785_v33 = vmul.f32 %v5134_v19, %v6135_v11  ;;  %v5152_v19 = vld [vmem:[%s6992_s2 + $0x8] sm:$0xff] }
 0x97b   :  { %v4618_v47 = vpop.f32.mrf.mxu0 }
 0x97c   :  { %4620 = vmatpush3.msk.msra.mxu1 %vm1830_vm6, %v1727_v28  ;;  %v5135_v28 = vld [vmem:[%s6990_s0] sm:$0xff] }
 0x97d   :  { %4622 = vmatmul.mubr.msk.f32.vlgmr.msra.gmra.mxu1 %vm1802_vm7, %v1793_v46  ;;  %4648 = vmatprep.subr.mxu1 %v5262_v61  ;;  %v1784_v46 = vmul.f32 %v5135_v28, %v6142_v24  ;;  %v5155_v28 = vld [vmem:[%s6998_s8 + $0x168] sm:$0xff] }
 0x97e   :  { %4624 = vmatprep.mubr.msk.f32.mxu1 %vm5266_vm3, %v5262_v61 }
 0x981   :  { %4625 = vmatmul.mubr.msk.f32.gmra.mxu1 %vm1802_vm7, %v1794_v48 }
 0x982   :  { %4627 = vmatprep.mubr.msk.f32.mxu1 %vm5266_vm3, %v5262_v61 }
 0x985   :  { %4628 = vmatmul.mubr.msk.f32.gmra.mxu1 %vm1802_vm7, %v1795_v49 }
 0x986   :  { %4630 = vmatprep.mubr.msk.f32.mxu1 %vm5266_vm3, %v5262_v61 }
 0x989   :  { %4631 = vmatmul.mubr.msk.f32.gmra.mxu1 %vm1802_vm7, %v1796_v55  ;;  %v1953_v55 = vld [vmem:[%s6991_s1] sm:$0xff] }
 0x98a   :  { %4633 = vmatprep.mubr.msk.f32.mxu1 %vm5266_vm3, %v5262_v61 }
 0x98d   :  { %4634 = vmatmul.mubr.msk.f32.gmra.mxu1 %vm1802_vm7, %v1797_v56  ;;  %v5136_v56 = vld [vmem:[%s6998_s8 + $0x178] sm:$0xff] }
 0x98e   :  { %4636 = vmatprep.mubr.msk.f32.mxu1 %vm5266_vm3, %v5262_v61 }
 0x991   :  { %4637 = vmatmul.mubr.msk.f32.gmra.mxu1 %vm1802_vm7, %v1798_v58  ;;  %v1954_v58 = vld [vmem:[%s6991_s1 + $0x8] sm:$0xff] }
 0x992   :  { %4639 = vmatprep.mubr.msk.f32.mxu1 %vm5266_vm3, %v5262_v61 }
 0x995   :  { %4640 = vmatmul.mubr.msk.f32.gmra.mxu1 %vm1802_vm7, %v1799_v35  ;;  %v5137_v35 = vld [vmem:[%s6998_s8 + $0x160] sm:$0xff] }
 0x996   :  { %4642 = vmatprep.mubr.msk.f32.mxu1 %vm5266_vm3, %v5262_v61 }
 0x999   :  { %4643 = vmatmul.mubr.msk.f32.gmra.mxu1 %vm1802_vm7, %v1800_v59  ;;  %v5138_v59 = vld [vmem:[%s6998_s8 + $0x148] sm:$0xff] }
 0x99a   :  { %4645 = vmatprep.mubr.msk.f32.mxu1 %vm5266_vm3, %v5262_v61 }
 0x99d   :  { %4646 = vmatmul.mubr.msk.f32.gmra.mxu1 %vm1802_vm7, %v1801_v62  ;;  %v1955_v62 = vld [vmem:[%s6991_s1 + $0x10] sm:$0xff] }
 0x99e   :  { %4666 = vmatprep.mubr.msk.f32.mxu1 %vm5266_vm3, %v5262_v61 }
 0xa3d   :  { %v6092_v0 = vpop.f32.mrf.mxu1 }
 0xa3e   :  { %v1944_v49 = vadd.f32 %v6092_v0, %v1784_v46  ;;  %v5139_v0 = vld [vmem:[%s6998_s8 + $0x130] sm:$0xff]  ;;  %v5156_v46 = vld [vmem:[%s6998_s8 + $0x158] sm:$0xff] }
 0xa3f   :  { %v4623_v1 = vpop.f32.mrf.mxu1 }
 0xa40   :  { %v5140_v1 = vld [vmem:[%s6998_s8 + $0x118] sm:$0xff] }
 0xa41   :  { %v1905_v41 = vpop.f32.mrf.mxu1 }
 0xa42   :  { %v1945_v48 = vadd.f32 %v1905_v41, %v1785_v33  ;;  %v1956_v41 = vld [vmem:[%s6991_s1 + $0x18] sm:$0xff]  ;;  %v5153_v33 = vld [vmem:[%s6998_s8 + $0x170] sm:$0xff] }
 0xa43   :  { %v4626_v5 = vpop.f32.mrf.mxu1 }
 0xa44   :  { %v5141_v5 = vld [vmem:[%s6998_s8 + $0x100] sm:$0xff] }
 0xa45   :  { %v1910_v37 = vpop.f32.mrf.mxu1 }
 0xa46   :  { %v1946_v47 = vadd.f32 %v1910_v37, %v1786_v12  ;;  %v5142_v37 = vld [vmem:[%s6998_s8 + $0xe8] sm:$0xff] }
 0xa47   :  { %v4629_v31 = vpop.f32.mrf.mxu1 }
 0xa48   :  { %v1957_v31 = vld [vmem:[%s6991_s1 + $0x20] sm:$0xff] }
 0xa49   :  { %v1915_v52 = vpop.f32.mrf.mxu1 }
 0xa4a   :  { %v1947_v40 = vadd.f32 %v1915_v52, %v1787_v8  ;;  %v5143_v52 = vld [vmem:[%s6998_s8 + $0xd0] sm:$0xff] }
 0xa4b   :  { %v4632_v63 = vpop.f32.mrf.mxu1 }
 0xa4c   :  { %v5144_v63 = vld [vmem:[%s6998_s8 + $0xb8] sm:$0xff] }
 0xa4d   :  { %v1920_v7 = vpop.f32.mrf.mxu1 }
 0xa4e   :  { %v1948_v13 = vadd.f32 %v1920_v7, %v1788_v6  ;;  %v1958_v7 = vld [vmem:[%s6991_s1 + $0x28] sm:$0xff] }
 0xa4f   :  { %v4635_v60 = vpop.f32.mrf.mxu1 }
 0xa50   :  { %v5145_v60 = vld [vmem:[%s6998_s8 + $0xa0] sm:$0xff] }
 0xa51   :  { %v1925_v22 = vpop.f32.mrf.mxu1 }
 0xa52   :  { %v1949_v10 = vadd.f32 %v1925_v22, %v1789_v32  ;;  %v5146_v22 = vld [vmem:[%s6998_s8 + $0x88] sm:$0xff] }
 0xa53   :  { %v4638_v25 = vpop.f32.mrf.mxu1 }
 0xa54   :  { %v1959_v25 = vld [vmem:[%s6991_s1 + $0x30] sm:$0xff] }
 0xa55   :  { %v1930_v51 = vpop.f32.mrf.mxu1 }
 0xa56   :  { %v1950_v2 = vadd.f32 %v1930_v51, %v1790_v21  ;;  %v5147_v51 = vld [vmem:[%s6998_s8 + $0x70] sm:$0xff] }
 0xa57   :  { %v4641_v39 = vpop.f32.mrf.mxu1 }
 0xa58   :  { %v5148_v39 = vld [vmem:[%s6998_s8 + $0x58] sm:$0xff] }
 0xa59   :  { %v1935_v29 = vpop.f32.mrf.mxu1 }
 0xa5a   :  { %v1951_v17 = vadd.f32 %v1935_v29, %v1791_v18  ;;  %v1960_v29 = vld [vmem:[%s6991_s1 + $0x38] sm:$0xff] }
 0xa5b   :  { %v4644_v16 = vpop.f32.mrf.mxu1 }
 0xa5c   :  { %v1961_v16 = vld [vmem:[%s6991_s1 + $0x40] sm:$0x1] }
 0xa5d   :  { %v1940_v30 = vpop.f32.mrf.mxu1 }
 0xa5e   :  { %v1952_v38 = vadd.f32 %v1940_v30, %v1792_v53  ;;  %v5150_v53 = vld [vmem:[%s6998_s8 + $0x28] sm:$0xff] }
 0xa5f   :  { %v4647_v15 = vpop.f32.mrf.mxu1 }
 0xa60   :  { %4649 = vmatpush3.msk.msra.mxu1 %vm72_vm0, %v1952_v38 }
 0xa61   :  { %4650 = vmatprep.subr.mxu1 %v5262_v61 }
 0xa62   :  { %4651 = vmatpush3.msra.mxu1 %v1951_v17 }
 0xa63   :  { %4652 = vmatprep.subr.mxu1 %v5262_v61 }
 0xa64   :  { %4653 = vmatpush3.msra.mxu1 %v1950_v2 }
 0xa65   :  { %4654 = vmatprep.subr.mxu1 %v5262_v61 }
 0xa66   :  { %4655 = vmatpush3.msra.mxu1 %v1949_v10 }
 0xa67   :  { %4656 = vmatprep.subr.mxu1 %v5262_v61 }
 0xa68   :  { %4657 = vmatpush3.msra.mxu1 %v1948_v13 }
 0xa69   :  { %4658 = vmatprep.subr.mxu1 %v5262_v61 }
 0xa6a   :  { %4659 = vmatpush3.msra.mxu1 %v1947_v40  ;;  %v5154_v40 = vld [vmem:[%s6992_s2 + $0x10] sm:$0xff] }
 0xa6b   :  { %4660 = vmatprep.subr.mxu1 %v5262_v61 }
 0xa6c   :  { %4661 = vmatpush3.msra.mxu1 %v1946_v47  ;;  %v5157_v47 = vld [vmem:[%s6998_s8 + $0x150] sm:$0xff] }
 0xa6d   :  { %4662 = vmatprep.subr.mxu1 %v5262_v61 }
 0xa6e   :  { %4663 = vmatpush3.msra.mxu1 %v1945_v48  ;;  %v5158_v48 = vld [vmem:[%s6992_s2 + $0x18] sm:$0xff] }
 0xa6f   :  { %4664 = vmatprep.subr.mxu1 %v5262_v61 }
 0xa70   :  { %4665 = vmatpush3.msra.mxu1 %v1944_v49  ;;  %v5159_v49 = vld [vmem:[%s6998_s8 + $0x140] sm:$0xff] }
 0xa71   :  { %4667 = vmatmul.mubr.msk.f32.vlgmr.msra.gmra.mxu1 %vm59_vm1, %v1953_v55  ;;  %4717 = vmatprep.subr.mxu1 %v5136_v56  ;;  %v5160_v55 = vld [vmem:[%s6998_s8 + $0x138] sm:$0xff] }
 0xa72   :  { %4669 = vmatprep.mubr.msk.f32.mxu1 %vm5266_vm3, %v5262_v61  ;;  %4718 = vmatpush3.msra.mxu1 %v5136_v56  ;;  %v5161_v56 = vld [vmem:[%s6998_s8 + $0x128] sm:$0xff] }
 0xa73   :  { %4719 = vmatprep.subr.mxu1 %v5137_v35 }
 0xa74   :  { %4720 = vmatpush3.msra.mxu1 %v5137_v35  ;;  %v5163_v35 = vld [vmem:[%s6998_s8 + $0x110] sm:$0xff] }
 0xa75   :  { %4670 = vmatmul.mubr.msk.f32.gmra.mxu1 %vm59_vm1, %v1954_v58  ;;  %4721 = vmatprep.subr.mxu1 %v5138_v59  ;;  %v5162_v58 = vld [vmem:[%s6998_s8 + $0x120] sm:$0xff] }
 0xa76   :  { %4672 = vmatprep.mubr.msk.f32.mxu1 %vm5266_vm3, %v5262_v61  ;;  %4722 = vmatpush3.msra.mxu1 %v5138_v59  ;;  %v5164_v59 = vld [vmem:[%s6998_s8 + $0x108] sm:$0xff] }
 0xa77   :  { %4723 = vmatprep.subr.mxu1 %v5139_v0 }
 0xa78   :  { %4724 = vmatpush3.msra.mxu1 %v5139_v0  ;;  %v5166_v0 = vld [vmem:[%s6998_s8 + $0xf0] sm:$0xff] }
 0xa79   :  { %4673 = vmatmul.mubr.msk.f32.gmra.mxu1 %vm59_vm1, %v1955_v62  ;;  %4725 = vmatprep.subr.mxu1 %v5140_v1  ;;  %v5165_v62 = vld [vmem:[%s6998_s8 + $0xf8] sm:$0xff] }
 0xa7a   :  { %4675 = vmatprep.mubr.msk.f32.mxu1 %vm5266_vm3, %v5262_v61  ;;  %4726 = vmatpush3.msra.mxu1 %v5140_v1  ;;  %v5167_v1 = vld [vmem:[%s6998_s8 + $0xe0] sm:$0xff] }
 0xa7b   :  { %4727 = vmatprep.subr.mxu1 %v5141_v5 }
 0xa7c   :  { %4728 = vmatpush3.msra.mxu1 %v5141_v5  ;;  %v5169_v5 = vld [vmem:[%s6998_s8 + $0xc8] sm:$0xff] }
 0xa7d   :  { %4676 = vmatmul.mubr.msk.f32.gmra.mxu1 %vm59_vm1, %v1956_v41  ;;  %4729 = vmatprep.subr.mxu1 %v5142_v37  ;;  %v5168_v41 = vld [vmem:[%s6998_s8 + $0xd8] sm:$0xff] }
 0xa7e   :  { %4678 = vmatprep.mubr.msk.f32.mxu1 %vm5266_vm3, %v5262_v61  ;;  %4730 = vmatpush3.msra.mxu1 %v5142_v37  ;;  %v5170_v37 = vld [vmem:[%s6998_s8 + $0xc0] sm:$0xff] }
 0xa7f   :  { %4731 = vmatprep.subr.mxu1 %v5143_v52 }
 0xa80   :  { %4732 = vmatpush3.msra.mxu1 %v5143_v52  ;;  %v5172_v52 = vld [vmem:[%s6998_s8 + $0xa8] sm:$0xff] }
 0xa81   :  { %4679 = vmatmul.mubr.msk.f32.gmra.mxu1 %vm59_vm1, %v1957_v31  ;;  %4733 = vmatprep.subr.mxu1 %v5144_v63  ;;  %v5171_v31 = vld [vmem:[%s6998_s8 + $0xb0] sm:$0xff] }
 0xa82   :  { %4681 = vmatprep.mubr.msk.f32.mxu1 %vm5266_vm3, %v5262_v61  ;;  %4734 = vmatpush3.msra.mxu1 %v5144_v63  ;;  %v5173_v63 = vld [vmem:[%s6998_s8 + $0x98] sm:$0xff] }
 0xa83   :  { %4735 = vmatprep.subr.mxu1 %v5145_v60 }
 0xa84   :  { %4736 = vmatpush3.msra.mxu1 %v5145_v60  ;;  %v5175_v60 = vld [vmem:[%s6998_s8 + $0x80] sm:$0xff] }
 0xa85   :  { %4682 = vmatmul.mubr.msk.f32.gmra.mxu1 %vm59_vm1, %v1958_v7  ;;  %4737 = vmatprep.subr.mxu1 %v5146_v22  ;;  %v5174_v7 = vld [vmem:[%s6998_s8 + $0x90] sm:$0xff] }
 0xa86   :  { %4684 = vmatprep.mubr.msk.f32.mxu1 %vm5266_vm3, %v5262_v61  ;;  %4738 = vmatpush3.msra.mxu1 %v5146_v22  ;;  %v5176_v22 = vld [vmem:[%s6998_s8 + $0x78] sm:$0xff] }
 0xa87   :  { %4739 = vmatprep.subr.mxu1 %v5147_v51 }
 0xa88   :  { %4740 = vmatpush3.msra.mxu1 %v5147_v51  ;;  %v5178_v51 = vld [vmem:[%s6998_s8 + $0x60] sm:$0xff] }
 0xa89   :  { %4685 = vmatmul.mubr.msk.f32.gmra.mxu1 %vm59_vm1, %v1959_v25  ;;  %4741 = vmatprep.subr.mxu1 %v5148_v39  ;;  %v5177_v25 = vld [vmem:[%s6998_s8 + $0x68] sm:$0xff] }
 0xa8a   :  { %4687 = vmatprep.mubr.msk.f32.mxu1 %vm5266_vm3, %v5262_v61  ;;  %4742 = vmatpush3.msra.mxu1 %v5148_v39  ;;  %v5179_v39 = vld [vmem:[%s6998_s8 + $0x50] sm:$0xff] }
 0xa8b   :  { %4743 = vmatprep.subr.mxu1 %v5149_v27 }
 0xa8c   :  { %4744 = vmatpush3.msra.mxu1 %v5149_v27  ;;  %v5181_v27 = vld [vmem:[%s6998_s8 + $0x38] sm:$0xff] }
 0xa8d   :  { %4688 = vmatmul.mubr.msk.f32.gmra.mxu1 %vm59_vm1, %v1960_v29  ;;  %4745 = vmatprep.subr.mxu1 %v5150_v53  ;;  %v5180_v29 = vld [vmem:[%s6998_s8 + $0x48] sm:$0xff] }
 0xa8e   :  { %4690 = vmatprep.mubr.msk.f32.mxu1 %vm5266_vm3, %v5262_v61  ;;  %4746 = vmatpush3.msra.mxu1 %v5150_v53  ;;  %v5182_v53 = vld [vmem:[%s6998_s8 + $0x30] sm:$0xff] }
 0xa8f   :  { %4747 = vmatprep.subr.mxu1 %v5151_v9 }
 0xa90   :  { %4748 = vmatpush3.msra.mxu1 %v5151_v9  ;;  %v5184_v9 = vld [vmem:[%s6998_s8 + $0x18] sm:$0xff] }
 0xa91   :  { %4691 = vmatmul.mubr.msk.f32.gmra.mxu1 %vm59_vm1, %v1961_v16  ;;  %v5183_v16 = vld [vmem:[%s6998_s8 + $0x20] sm:$0xff] }
 0xb31   :  { %v6258_v18 = vpop.f32.mrf.mxu1 }
 0xb33   :  { %v4668_v30 = vpop.f32.mrf.mxu1 }
 0xb34   :  { %v5185_v30 = vld [vmem:[%s6998_s8 + $0x8] sm:$0xff] }
 0xb35   :  { %v6260_v34 = vpop.f32.mrf.mxu1 }
 0xb37   :  { %v4671_v21 = vpop.f32.mrf.mxu1 }
 0xb38   :  { %v5186_v21 = vld [vmem:[%s6998_s8] sm:$0xff] }
 0xb39   :  { %v6262_v38 = vpop.f32.mrf.mxu1 }
 0xb3b   :  { %v4674_v15 = vpop.f32.mrf.mxu1 }
 0xb3d   :  { %v6264_v54 = vpop.f32.mrf.mxu1 }
 0xb3f   :  { %v4677_v32 = vpop.f32.mrf.mxu1 }
 0xb41   :  { %v6266_v17 = vpop.f32.mrf.mxu1 }
 0xb43   :  { %v4680_v44 = vpop.f32.mrf.mxu1 }
 0xb44   :  { %v5187_v44 = vld [vmem:[%s6993_s3] sm:$0xff] }
 0xb45   :  { %v6268_v6 = vpop.f32.mrf.mxu1 }
 0xb47   :  { %v4683_v2 = vpop.f32.mrf.mxu1 }
 0xb49   :  { %v6270_v57 = vpop.f32.mrf.mxu1 }
 0xb4b   :  { %v4686_v8 = vpop.f32.mrf.mxu1 }
 0xb4c   :  { %v5188_v8 = vld [vmem:[%s6993_s3 + $0x8] sm:$0xff] }
 0xb4d   :  { %v6272_v10 = vpop.f32.mrf.mxu1 }
 0xb4f   :  { %v4689_v3 = vpop.f32.mrf.mxu1 }
 0xb51   :  { %v6274_v12 = vpop.f32.mrf.mxu1 }
 0xb52   :  { %4693 = vmatprep.subr.msk.mxu0 %vm72_vm0, %v6274_v12 }
 0xb53   :  { %v4692_v13 = vpop.f32.mrf.mxu1  ;;  %4694 = vmatpush3.msk.msra.mxu0 %vm72_vm0, %v6274_v12 }
 0xb54   :  { %4695 = vmatprep.subr.mxu0 %v6272_v10 }
 0xb55   :  { %4696 = vmatpush3.msra.mxu0 %v6272_v10 }
 0xb56   :  { %4697 = vmatprep.subr.mxu0 %v6270_v57 }
 0xb57   :  { %4698 = vmatpush3.msra.mxu0 %v6270_v57 }
 0xb58   :  { %4699 = vmatprep.subr.mxu0 %v6268_v6 }
 0xb59   :  { %4700 = vmatpush3.msra.mxu0 %v6268_v6 }
 0xb5a   :  { %4701 = vmatprep.subr.mxu0 %v6266_v17 }
 0xb5b   :  { %4702 = vmatpush3.msra.mxu0 %v6266_v17 }
 0xb5c   :  { %4703 = vmatprep.subr.mxu0 %v6264_v54 }
 0xb5d   :  { %4704 = vmatpush3.msra.mxu0 %v6264_v54 }
 0xb5e   :  { %4705 = vmatprep.subr.mxu0 %v6262_v38 }
 0xb5f   :  { %4706 = vmatpush3.msra.mxu0 %v6262_v38 }
 0xb60   :  { %4707 = vmatprep.subr.mxu0 %v6260_v34 }
 0xb61   :  { %4708 = vmatpush3.msra.mxu0 %v6260_v34 }
 0xb62   :  { %4709 = vmatprep.subr.mxu0 %v6258_v18 }
 0xb63   :  { %4710 = vmatpush3.msra.mxu0 %v6258_v18 }
 0xb64   :  { %4712 = vmatmul.mubr.msk.f32.vlgmr.msra.gmra.mxu0 %vm59_vm1, %v5152_v19  ;;  %2199 = vmatprep.subr.mxu0 %v5153_v33  ;;  %v5189_v19 = vld [vmem:[%s6993_s3 + $0x18] sm:$0xff] }
 0xb65   :  { %4714 = vmatprep.mubr.msk.f32.mxu0 %vm59_vm1, %v5154_v40  ;;  %2200 = vmatpush1.msra.mxu0 %v5155_v28  ;;  %v5190_v28 = vld [vmem:[%s6993_s3 + $0x10] sm:$0xff] }
 0xb66   :  { %2201 = vmatprep.subr.mxu0 %v5156_v46 }
 0xb67   :  { %2202 = vmatpush1.msra.mxu0 %v5157_v47 }
 0xb68   :  { %4715 = vmatmul.mubr.msk.f32.gmra.mxu0 %vm59_vm1, %v5158_v48  ;;  %2203 = vmatprep.subr.mxu0 %v5159_v49 }
 0xb69   :  { %2204 = vmatpush1.msra.mxu0 %v5160_v55  ;;  %2263 = vmatprep.mubr.f32.mxu0 %v5262_v61 }
 0xb6a   :  { %2205 = vmatprep.subr.mxu0 %v5161_v56 }
 0xb6b   :  { %2206 = vmatpush1.msra.mxu0 %v5162_v58 }
 0xb6c   :  { %2207 = vmatprep.subr.mxu0 %v5163_v35 }
 0xb6d   :  { %2208 = vmatpush1.msra.mxu0 %v5164_v59 }
 0xb6e   :  { %2209 = vmatprep.subr.mxu0 %v5165_v62 }
 0xb6f   :  { %2210 = vmatpush1.msra.mxu0 %v5166_v0 }
 0xb70   :  { %2211 = vmatprep.subr.mxu0 %v5167_v1 }
 0xb71   :  { %2212 = vmatpush1.msra.mxu0 %v5168_v41 }
 0xb72   :  { %2213 = vmatprep.subr.mxu0 %v5169_v5 }
 0xb73   :  { %2214 = vmatpush1.msra.mxu0 %v5170_v37 }
 0xb74   :  { %2215 = vmatprep.subr.mxu0 %v5171_v31 }
 0xb75   :  { %2216 = vmatpush1.msra.mxu0 %v5172_v52 }
 0xb76   :  { %2217 = vmatprep.subr.mxu0 %v5173_v63 }
 0xb77   :  { %2218 = vmatpush1.msra.mxu0 %v5174_v7 }
 0xb78   :  { %2219 = vmatprep.subr.mxu0 %v5175_v60 }
 0xb79   :  { %2220 = vmatpush1.msra.mxu0 %v5176_v22 }
 0xb7a   :  { %2221 = vmatprep.subr.mxu0 %v5177_v25 }
 0xb7b   :  { %2222 = vmatpush1.msra.mxu0 %v5178_v51 }
 0xb7c   :  { %2223 = vmatprep.subr.mxu0 %v5179_v39 }
 0xb7d   :  { %2224 = vmatpush1.msra.mxu0 %v5180_v29 }
 0xb7e   :  { %2225 = vmatprep.subr.mxu0 %v5181_v27 }
 0xb7f   :  { %2226 = vmatpush1.msra.mxu0 %v5182_v53 }
 0xb80   :  { %2227 = vmatprep.subr.mxu0 %v5183_v16  ;;  %v6491_v16 = vld [vmem:[%s6996_s6 + $0x8] sm:$0xff] }
 0xb81   :  { %2228 = vmatpush1.msra.mxu0 %v5184_v9 }
 0xb82   :  { %2229 = vmatprep.subr.mxu0 %v5185_v30 }
 0xb83   :  { %2230 = vmatpush1.msra.mxu0 %v5186_v21 }
 0xc24   :  { %v4713_v15 = vpop.f32.mrf.mxu0 }
 0xc25   :  { %v2186_v3 = vadd.f32 %v5188_v8, %v4713_v15 }
 0xc26   :  { %v2180_v32 = vpop.f32.mrf.mxu0 }
 0xc27   :  { %v2181_v2 = vadd.f32 %v5187_v44, %v2180_v32 }
 0xc28   :  { %v4716_v13 = vpop.f32.mrf.mxu0 }
 0xc29   :  { %2264 = vmatmul.mubr.f32.vlgmr.msra.gmra.mxu0 %v2181_v2  ;;  %4749 = vmatprep.mubr.f32.mxu1 %v2181_v2  ;;  %v2196_v33 = vadd.f32 %v5189_v19, %v4716_v13 }
 0xc2a   :  { %v2190_v40 = vpop.f32.mrf.mxu0  ;;  %4750 = vmatmul.mubr.f32.vlgmr.msra.gmra.mxu1 %v2186_v3  ;;  %2269 = vmatprep.mubr.f32.mxu0 %v5262_v61 }
 0xc2b   :  { %v2191_v46 = vadd.f32 %v5190_v28, %v2190_v40 }
 0xc2d   :  { %2270 = vmatmul.mubr.f32.gmra.mxu0 %v2186_v3  ;;  %4752 = vmatprep.mubr.f32.mxu1 %v2191_v46  ;;  %v6505_v3 = vld [vmem:[%s6996_s6 + $0x10] sm:$0xff] }
 0xc2e   :  { %4753 = vmatmul.mubr.f32.gmra.mxu1 %v2196_v33  ;;  %2275 = vmatprep.mubr.f32.mxu0 %v5262_v61 }
 0xc31   :  { %2276 = vmatmul.mubr.f32.gmra.mxu0 %v2191_v46 }
 0xc32   :  { %2281 = vmatprep.mubr.f32.mxu0 %v5262_v61 }
 0xc35   :  { %2282 = vmatmul.mubr.f32.gmra.mxu0 %v2196_v33  ;;  %v6512_v33 = vld [vmem:[%s6996_s6 + $0x18] sm:$0xff] }
 0xce9   :  { %v2265_v47 = vpop.f32.mrf.mxu0 }
 0xcea   :  { %v6421_v48 = vadd.f32 %v2265_v47, %v5544_v14  ;;  %v4751_v49 = vpop.f32.mrf.mxu1 }
 0xceb   :  { %v2267_v55 = vpop.f32.mrf.mxu0  ;;  %v6434_v5 = vadd.f32 %v4751_v49, %v5582_v36 }
 0xcec   :  { %v2354_v56 = vpop.f32.mrf.mxu1  ;;  %4763 = vmatprep.mubr.msk.f32.mxu0 %vm400_vm2, %v6421_v48  ;;  %v6465_v22 = vadd.f32 %v2267_v55, %v5551_v20 }
 0xced   :  { %v2271_v58 = vpop.f32.mrf.mxu0  ;;  %v6439_v31 = vadd.f32 %v2354_v56, %v5582_v36 }
 0xcee   :  { %v4754_v35 = vpop.f32.mrf.mxu1  ;;  %v6474_v25 = vadd.f32 %v2271_v58, %v5544_v14 }
 0xcef   :  { %v6426_v59 = vadd.f32 %v4754_v35, %v5582_v36  ;;  %v2273_v62 = vpop.f32.mrf.mxu0 }
 0xcf0   :  { %v2364_v0 = vpop.f32.mrf.mxu1 }
 0xcf1   :  { %v6429_v1 = vadd.f32 %v2364_v0, %v5582_v36  ;;  %v2277_v41 = vpop.f32.mrf.mxu0  ;;  %4769 = vmatprep.subr.mxu1 %v6426_v59  ;;  %v6458_v36 = vadd.f32 %v2273_v62, %v5551_v20 }
 0xcf2   :  { %4770 = vmatpush3.msra.mxu1 %v6426_v59  ;;  %v6477_v51 = vadd.f32 %v2277_v41, %v5544_v14 }
 0xcf3   :  { %v2279_v37 = vpop.f32.mrf.mxu0  ;;  %4771 = vmatprep.subr.mxu1 %v6429_v1 }
 0xcf4   :  { %4772 = vmatpush3.msra.mxu1 %v6429_v1  ;;  %v6449_v60 = vadd.f32 %v2279_v37, %v5551_v20 }
 0xcf5   :  { %v2283_v52 = vpop.f32.mrf.mxu0  ;;  %4773 = vmatprep.subr.mxu1 %v6434_v5 }
 0xcf6   :  { %4774 = vmatpush3.msra.mxu1 %v6434_v5 }
 0xcf7   :  { %v2285_v63 = vpop.f32.mrf.mxu0  ;;  %4775 = vmatprep.subr.mxu1 %v6439_v31 }
 0xcf8   :  { %v6445_v7 = vadd.f32 %v2285_v63, %v5551_v20  ;;  %4776 = vmatpush3.msra.mxu1 %v6439_v31  ;;  %v6484_v20 = vadd.f32 %v2283_v52, %v5544_v14  ;;  %v6498_v14 = vld [vmem:[%s6996_s6] sm:$0xff] }
 0xcfa   :  { %4755 = vmatprep.subr.msk.mxu0 %vm400_vm2, %v6445_v7 }
 0xcfb   :  { %4756 = vmatpush3.xpose.msk.msra.mxu0 %vm400_vm2, %v6445_v7 }
 0xcfc   :  { %4757 = vmatprep.subr.msk.mxu0 %vm400_vm2, %v6449_v60 }
 0xcff   :  { %4758 = vmatpush3.xpose.msk.msra.mxu0 %vm400_vm2, %v6449_v60 }
 0xd00   :  { %4759 = vmatprep.subr.msk.mxu0 %vm400_vm2, %v6458_v36 }
 0xd03   :  { %4760 = vmatpush3.xpose.msk.msra.mxu0 %vm400_vm2, %v6458_v36 }
 0xd04   :  { %4761 = vmatprep.subr.msk.mxu0 %vm400_vm2, %v6465_v22 }
 0xd07   :  { %4762 = vmatpush3.xpose.msk.msra.mxu0 %vm400_vm2, %v6465_v22 }
 0xd0a   :  { %4764 = vmatmul.mubr.msk.f32.vlgmr.msra.gmra.mxu0 %vm400_vm2, %v6474_v25 }
 0xd0b   :  { %4766 = vmatprep.mubr.msk.f32.mxu0 %vm400_vm2, %v6477_v51 }
 0xd0e   :  { %4767 = vmatmul.mubr.msk.f32.gmra.mxu0 %vm400_vm2, %v6484_v20 }
 0xdca   :  { %v4765_v39 = vpop.f32.mrf.mxu0 }
 0xdcb   :  { %v2483_v29 = vmul.f32 0.17677669, %v4765_v39 }
 0xdcc   :  { %v2463_v27 = vpop.f32.mrf.mxu0 }
 0xdcd   :  { %v2482_v53 = vmul.f32 0.17677669, %v2463_v27  ;;  %v2487_v9 = vadd.f32 %v6491_v16, %v2483_v29 }
 0xdce   :  { %v4768_v30 = vpop.f32.mrf.mxu0 }
 0xdcf   :  { %v2493_v21 = vsel %vm400_vm2, %v2487_v9, -inf  ;;  %v2486_v15 = vadd.f32 %v6498_v14, %v2482_v53  ;;  %v2485_v44 = vmul.f32 0.17677669, %v4768_v30 }
 0xdd0   :  { %2494 = vmax.xlane.f32.xlu1 %v2493_v21  ;;  %v2473_v32 = vpop.f32.mrf.mxu0 }
 0xdd1   :  { %v2484_v2 = vmul.f32 0.17677669, %v2473_v32  ;;  %v2490_v8 = vsel %vm400_vm2, %v2486_v15, -inf  ;;  %v2489_v40 = vadd.f32 %v6512_v33, %v2485_v44 }
 0xdd2   :  { %2491 = vmax.xlane.f32.xlu0 %v2490_v8 }
 0xdd3   :  { %v2488_v13 = vadd.f32 %v6505_v3, %v2484_v2  ;;  %v2499_v28 = vsel %vm400_vm2, %v2489_v40, -inf }
 0xdd5   :  { %v2496_v19 = vsel %vm400_vm2, %v2488_v13, -inf }
 0xdd6   :  { %2497 = vmax.xlane.f32.xlu0 %v2496_v19 }
 0xdda   :  { %2500 = vmax.xlane.f32.xlu0 %v2499_v28 }
 0xde1   :  { %2645 = vrot.lane.b32.xlu1 %v6445_v7, %s5263_s9 }
 0xde5   :  { %2641 = vrot.lane.b32.xlu1 %v6458_v36, %s5263_s9 }
 0xe59   :  { %v2495_v46 = vpop.xlane.xlu1 %2494 }
 0xe5a   :  { %v2503_v47 = vsub.f32 %v2487_v9, %v2495_v46 }
 0xe5b   :  { %v2492_v49 = vpop.xlane.xlu0 %2491 }
 0xe5c   :  { %v2508_v55 = vmul.f32 1.442695, %v2503_v47  ;;  %v2502_v56 = vsub.f32 %v2486_v15, %v2492_v49 }
 0xe5d   :  { %v2646_v58 = vpop.permute.xlu1 %2645 }
 0xe5e   :  { %5062 = vpow2.f32 %v2508_v55  ;;  %v2506_v35 = vmul.f32 1.442695, %v2502_v56  ;;  %4783 = vmatprep.subr.msk.mxu1 %vm400_vm2, %v2646_v58 }
 0xe5f   :  { %v2498_v52 = vpop.xlane.xlu0 %2497 }
 0xe60   :  { %5064 = vpow2.f32 %v2506_v35  ;;  %v2504_v29 = vsub.f32 %v2488_v13, %v2498_v52 }
 0xe61   :  { %v2642_v32 = vpop.permute.xlu1 %2641 }
 0xe62   :  { %v2510_v53 = vmul.f32 1.442695, %v2504_v29 }
 0xe63   :  { %v2501_v63 = vpop.xlane.xlu0 %2500 }
 0xe64   :  { %v2505_v39 = vsub.f32 %v2489_v40, %v2501_v63 }
 0xe66   :  { %v2512_v27 = vmul.f32 1.442695, %v2505_v39 }
 0xe68   :  { %5066 = vpow2.f32 %v2512_v27 }
 0xe69   :  { %5068 = vpow2.f32 %v2510_v53 }
 0xe6b   :  { %v5063_v62 = vpop.eup %5062 }
 0xe6c   :  { %v2517_v0 = vsel %vm400_vm2, %v5063_v62, 0.0 }
 0xe6d   :  { %v5065_v41 = vpop.eup %5064  ;;  %2518 = vadd.xlane.f32.xlu0 %v2517_v0 }
 0xe6e   :  { %v2514_v37 = vsel %vm400_vm2, %v5065_v41, 0.0 }
 0xe6f   :  { %2515 = vadd.xlane.f32.xlu1 %v2514_v37 }
 0xe75   :  { %v5067_v9 = vpop.eup %5066 }
 0xe76   :  { %v5069_v30 = vpop.eup %5068  ;;  %v2523_v21 = vsel %vm400_vm2, %v5067_v9, 0.0 }
 0xe77   :  { %v2520_v15 = vsel %vm400_vm2, %v5069_v30, 0.0 }
 0xe80   :  { %2639 = vrot.lane.b32.xlu1 %v6465_v22, %s5263_s9 }
 0xe83   :  { %2643 = vrot.lane.b32.xlu0 %v6449_v60, %s5263_s9 }
 0xea2   :  { %2524 = vadd.xlane.f32.xlu0 %v2523_v21 }
 0xea4   :  { %2521 = vadd.xlane.f32.xlu1 %v2520_v15 }
 0xeb5   :  { %2633 = vrot.lane.b32.xlu1 %v6474_v25, %s5263_s9 }
 0xeb8   :  { %2631 = vrot.lane.b32.xlu0 %v6421_v48, %s5263_s9 }
 0xeb9   :  { %2637 = vrot.lane.b32.xlu1 %v6484_v20, %s5263_s9 }
 0xebc   :  { %2635 = vrot.lane.b32.xlu0 %v6477_v51, %s5263_s9 }
 0xebd   :  { %2810 = vrot.lane.b32.xlu1 %v6426_v59, %s5263_s9 }
 0xec0   :  { %2808 = vrot.lane.b32.xlu0 %v6429_v1, %s5263_s9 }
 0xec1   :  { %2806 = vrot.lane.b32.xlu1 %v6434_v5, %s5263_s9 }
 0xec5   :  { %2804 = vrot.lane.b32.xlu1 %v6439_v31, %s5263_s9 }
 0xef6   :  { %v2519_v44 = vpop.xlane.xlu0 %2518 }
 0xef7   :  { %5070 = vrcp.f32 %v2519_v44 }
 0xef8   :  { %v2516_v2 = vpop.xlane.xlu1 %2515 }
 0xef9   :  { %5072 = vrcp.f32 %v2516_v2 }
 0xefa   :  { %v2644_v28 = vpop.permute.xlu0 %2643 }
 0xefc   :  { %v2640_v46 = vpop.permute.xlu1 %2639 }
 0xf04   :  { %v5071_v8 = vpop.eup %5070 }
 0xf05   :  { %v2531_v40 = vmul.f32 %v5071_v8, %v5063_v62 }
 0xf06   :  { %v5073_v13 = vpop.eup %5072 }
 0xf07   :  { %v2530_v19 = vmul.f32 %v5073_v13, %v5065_v41 }
 0xf09   :  { %4777 = vmatprep.mubr.msk.f32.mxu1 %vm400_vm2, %v2530_v19 }
 0xf0a   :  { %4778 = vmatmul.mubr.msk.f32.vlgmr.msra.gmra.mxu1 %vm400_vm2, %v2531_v40 }
 0xf0b   :  { %4784 = vmatpush3.xpose.msk.msra.mxu1 %vm400_vm2, %v2646_v58 }
 0xf0c   :  { %4785 = vmatprep.subr.msk.mxu1 %vm400_vm2, %v2644_v28 }
 0xf0f   :  { %4786 = vmatpush3.xpose.msk.msra.mxu1 %vm400_vm2, %v2644_v28 }
 0xf10   :  { %4787 = vmatprep.subr.msk.mxu1 %vm400_vm2, %v2642_v32 }
 0xf13   :  { %4788 = vmatpush3.xpose.msk.msra.mxu1 %vm400_vm2, %v2642_v32 }
 0xf14   :  { %4789 = vmatprep.subr.msk.mxu1 %vm400_vm2, %v2640_v46 }
 0xf17   :  { %4790 = vmatpush3.xpose.msk.msra.mxu1 %vm400_vm2, %v2640_v46 }
 0xf2b   :  { %v2525_v47 = vpop.xlane.xlu0 %2524 }
 0xf2c   :  { %5074 = vrcp.f32 %v2525_v47 }
 0xf2d   :  { %v2522_v49 = vpop.xlane.xlu1 %2521 }
 0xf2e   :  { %5076 = vrcp.f32 %v2522_v49 }
 0xf2f   :  { %v2632_v55 = vpop.permute.xlu0 %2631 }
 0xf31   :  { %v2634_v56 = vpop.permute.xlu1 %2633 }
 0xf33   :  { %v2636_v58 = vpop.permute.xlu0 %2635 }
 0xf35   :  { %v2638_v35 = vpop.permute.xlu1 %2637 }
 0xf37   :  { %v2809_v37 = vpop.permute.xlu0 %2808 }
 0xf39   :  { %v2811_v62 = vpop.permute.xlu1 %2810  ;;  %v5075_v0 = vpop.eup %5074 }
 0xf3a   :  { %4797 = vmatprep.subr.mxu0 %v2811_v62  ;;  %v2533_v39 = vmul.f32 %v5075_v0, %v5067_v9 }
 0xf3b   :  { %v5077_v41 = vpop.eup %5076  ;;  %4798 = vmatpush3.msra.mxu0 %v2811_v62 }
 0xf3c   :  { %4799 = vmatprep.subr.mxu0 %v2809_v37  ;;  %v2532_v52 = vmul.f32 %v5077_v41, %v5069_v30 }
 0xf3d   :  { %v2807_v63 = vpop.permute.xlu1 %2806  ;;  %4800 = vmatpush3.msra.mxu0 %v2809_v37 }
 0xf3e   :  { %4780 = vmatprep.mubr.msk.f32.mxu1 %vm400_vm2, %v2532_v52  ;;  %4801 = vmatprep.subr.mxu0 %v2807_v63 }
 0xf3f   :  { %4781 = vmatmul.mubr.msk.f32.gmra.mxu1 %vm400_vm2, %v2533_v39  ;;  %4802 = vmatpush3.msra.mxu0 %v2807_v63 }
 0xf40   :  { %4791 = vmatprep.mubr.msk.f32.mxu1 %vm400_vm2, %v2632_v55 }
 0xf41   :  { %v2805_v29 = vpop.permute.xlu1 %2804 }
 0xf42   :  { %4803 = vmatprep.subr.mxu0 %v2805_v29 }
 0xf43   :  { %4792 = vmatmul.mubr.msk.f32.vlgmr.msra.gmra.mxu1 %vm400_vm2, %v2634_v56  ;;  %4804 = vmatpush3.msra.mxu0 %v2805_v29 }
 0xf44   :  { %4794 = vmatprep.mubr.msk.f32.mxu1 %vm400_vm2, %v2636_v58 }
 0xf47   :  { %4795 = vmatmul.mubr.msk.f32.gmra.mxu1 %vm400_vm2, %v2638_v35 }
 0xfca   :  { %v6560_v27 = vpop.f32.mrf.mxu1 }
 0xfcc   :  { %v6562_v53 = vpop.f32.mrf.mxu1 }
 0xfff   :  { %v6564_v9 = vpop.f32.mrf.mxu1 }
0x1001   :  { %v6566_v30 = vpop.f32.mrf.mxu1 }
0x1003   :  { %v4793_v21 = vpop.f32.mrf.mxu1 }
0x1004   :  { %v2749_v15 = vmul.f32 0.17677669, %v4793_v21 }
0x1005   :  { %v2729_v32 = vpop.f32.mrf.mxu1 }
0x1006   :  { %v2753_v44 = vadd.f32 %v6491_v16, %v2749_v15  ;;  %v2748_v2 = vmul.f32 0.17677669, %v2729_v32 }
0x1007   :  { %v4796_v8 = vpop.f32.mrf.mxu1 }
0x1008   :  { %v2752_v13 = vadd.f32 %v6498_v14, %v2748_v2  ;;  %v2751_v19 = vmul.f32 0.17677669, %v4796_v8  ;;  %v2759_v40 = vsel %vm400_vm2, %v2753_v44, -inf }
0x1009   :  { %2760 = vmax.xlane.f32.xlu1 %v2759_v40  ;;  %v2739_v28 = vpop.f32.mrf.mxu1 }
0x100a   :  { %v2755_v46 = vadd.f32 %v6512_v33, %v2751_v19  ;;  %v2750_v47 = vmul.f32 0.17677669, %v2739_v28  ;;  %v2756_v49 = vsel %vm400_vm2, %v2752_v13, -inf }
0x100b   :  { %2757 = vmax.xlane.f32.xlu0 %v2756_v49 }
0x100c   :  { %v2754_v55 = vadd.f32 %v6505_v3, %v2750_v47  ;;  %v2765_v56 = vsel %vm400_vm2, %v2755_v46, -inf }
0x100e   :  { %v2762_v58 = vsel %vm400_vm2, %v2754_v55, -inf }
0x100f   :  { %2766 = vmax.xlane.f32.xlu0 %v2765_v56 }
0x1013   :  { %2763 = vmax.xlane.f32.xlu0 %v2762_v58 }
0x101a   :  { %2925 = vrot.lane.b32.xlu1 %v6449_v60, %s5264_s27 }
0x1029   :  { %2927 = vrot.lane.b32.xlu0 %v6445_v7, %s5264_s27 }
0x1092   :  { %v2761_v35 = vpop.xlane.xlu1 %2760 }
0x1093   :  { %v2769_v62 = vsub.f32 %v2753_v44, %v2761_v35 }
0x1094   :  { %v2758_v0 = vpop.xlane.xlu0 %2757 }
0x1095   :  { %v2774_v41 = vmul.f32 1.442695, %v2769_v62  ;;  %v2768_v37 = vsub.f32 %v2752_v13, %v2758_v0 }
0x1097   :  { %5078 = vpow2.f32 %v2774_v41  ;;  %v2772_v52 = vmul.f32 1.442695, %v2768_v37 }
0x1098   :  { %v2767_v63 = vpop.xlane.xlu0 %2766 }
0x1099   :  { %5080 = vpow2.f32 %v2772_v52  ;;  %v2771_v44 = vsub.f32 %v2755_v46, %v2767_v63  ;;  %v2926_v46 = vpop.permute.xlu1 %2925 }
0x109b   :  { %v2778_v13 = vmul.f32 1.442695, %v2771_v44 }
0x109c   :  { %v2764_v39 = vpop.xlane.xlu0 %2763 }
0x109d   :  { %v2770_v8 = vsub.f32 %v2754_v55, %v2764_v39  ;;  %5082 = vpow2.f32 %v2778_v13 }
0x109f   :  { %v2776_v19 = vmul.f32 1.442695, %v2770_v8 }
0x10a0   :  { %v2928_v29 = vpop.permute.xlu0 %2927 }
0x10a1   :  { %4811 = vmatprep.subr.msk.mxu0 %vm400_vm2, %v2928_v29  ;;  %5084 = vpow2.f32 %v2776_v19 }
0x10a4   :  { %v5079_v21 = vpop.eup %5078 }
0x10a5   :  { %v2783_v15 = vsel %vm400_vm2, %v5079_v21, 0.0 }
0x10a6   :  { %v5081_v32 = vpop.eup %5080  ;;  %2784 = vadd.xlane.f32.xlu0 %v2783_v15 }
0x10a7   :  { %v2780_v2 = vsel %vm400_vm2, %v5081_v32, 0.0 }
0x10a8   :  { %2781 = vadd.xlane.f32.xlu1 %v2780_v2 }
0x10aa   :  { %v5083_v40 = vpop.eup %5082 }
0x10ab   :  { %v2789_v47 = vsel %vm400_vm2, %v5083_v40, 0.0 }
0x10ae   :  { %v5085_v28 = vpop.eup %5084 }
0x10af   :  { %v2786_v49 = vsel %vm400_vm2, %v5085_v28, 0.0 }
0x10b9   :  { %2921 = vrot.lane.b32.xlu1 %v6465_v22, %s5264_s27 }
0x10bc   :  { %2923 = vrot.lane.b32.xlu0 %v6458_v36, %s5264_s27 }
0x10db   :  { %2790 = vadd.xlane.f32.xlu0 %v2789_v47 }
0x10dd   :  { %2787 = vadd.xlane.f32.xlu1 %v2786_v49 }
0x10ee   :  { %2915 = vrot.lane.b32.xlu1 %v6474_v25, %s5264_s27 }
0x10f1   :  { %2913 = vrot.lane.b32.xlu0 %v6421_v48, %s5264_s27 }
0x10f2   :  { %2919 = vrot.lane.b32.xlu1 %v6484_v20, %s5264_s27 }
0x10f5   :  { %2917 = vrot.lane.b32.xlu0 %v6477_v51, %s5264_s27 }
0x10f6   :  { %3088 = vrot.lane.b32.xlu1 %v6426_v59, %s5264_s27 }
0x10f9   :  { %3086 = vrot.lane.b32.xlu0 %v6429_v1, %s5264_s27 }
0x10fa   :  { %3084 = vrot.lane.b32.xlu1 %v6434_v5, %s5264_s27 }
0x10fe   :  { %3082 = vrot.lane.b32.xlu1 %v6439_v31, %s5264_s27 }
0x112f   :  { %v2785_v55 = vpop.xlane.xlu0 %2784 }
0x1130   :  { %5086 = vrcp.f32 %v2785_v55 }
0x1131   :  { %v2782_v56 = vpop.xlane.xlu1 %2781 }
0x1132   :  { %5088 = vrcp.f32 %v2782_v56 }
0x1133   :  { %v2924_v41 = vpop.permute.xlu0 %2923 }
0x1135   :  { %v2922_v37 = vpop.permute.xlu1 %2921 }
0x113d   :  { %v5087_v58 = vpop.eup %5086 }
0x113e   :  { %v2797_v0 = vmul.f32 %v5087_v58, %v5079_v21 }
0x113f   :  { %v5089_v35 = vpop.eup %5088 }
0x1140   :  { %v2796_v62 = vmul.f32 %v5089_v35, %v5081_v32 }
0x1142   :  { %4805 = vmatprep.mubr.msk.f32.mxu0 %vm400_vm2, %v2796_v62 }
0x1143   :  { %4806 = vmatmul.mubr.msk.f32.vlgmr.msra.gmra.mxu0 %vm400_vm2, %v2797_v0 }
0x1144   :  { %4812 = vmatpush3.xpose.msk.msra.mxu0 %vm400_vm2, %v2928_v29 }
0x1145   :  { %4813 = vmatprep.subr.msk.mxu0 %vm400_vm2, %v2926_v46 }
0x1148   :  { %4814 = vmatpush3.xpose.msk.msra.mxu0 %vm400_vm2, %v2926_v46 }
0x1149   :  { %4815 = vmatprep.subr.msk.mxu0 %vm400_vm2, %v2924_v41 }
0x114c   :  { %4816 = vmatpush3.xpose.msk.msra.mxu0 %vm400_vm2, %v2924_v41 }
0x114d   :  { %4817 = vmatprep.subr.msk.mxu0 %vm400_vm2, %v2922_v37 }
0x1150   :  { %4818 = vmatpush3.xpose.msk.msra.mxu0 %vm400_vm2, %v2922_v37 }
0x1164   :  { %v2791_v52 = vpop.xlane.xlu0 %2790 }
0x1165   :  { %5090 = vrcp.f32 %v2791_v52 }
0x1166   :  { %v2788_v63 = vpop.xlane.xlu1 %2787 }
0x1167   :  { %5092 = vrcp.f32 %v2788_v63 }
0x1168   :  { %v2914_v39 = vpop.permute.xlu0 %2913 }
0x116a   :  { %v2916_v29 = vpop.permute.xlu1 %2915 }
0x116c   :  { %v2918_v21 = vpop.permute.xlu0 %2917 }
0x116e   :  { %v2920_v15 = vpop.permute.xlu1 %2919 }
0x1170   :  { %v3087_v8 = vpop.permute.xlu0 %3086 }
0x1172   :  { %v3089_v32 = vpop.permute.xlu1 %3088  ;;  %v5091_v2 = vpop.eup %5090 }
0x1173   :  { %4825 = vmatprep.subr.mxu1 %v3089_v32  ;;  %v2799_v47 = vmul.f32 %v5091_v2, %v5083_v40 }
0x1174   :  { %v5093_v44 = vpop.eup %5092  ;;  %4826 = vmatpush3.msra.mxu1 %v3089_v32 }
0x1175   :  { %4827 = vmatprep.subr.mxu1 %v3087_v8  ;;  %v2798_v13 = vmul.f32 %v5093_v44, %v5085_v28 }
0x1176   :  { %v3085_v19 = vpop.permute.xlu1 %3084  ;;  %4828 = vmatpush3.msra.mxu1 %v3087_v8 }
0x1177   :  { %4808 = vmatprep.mubr.msk.f32.mxu0 %vm400_vm2, %v2798_v13  ;;  %4829 = vmatprep.subr.mxu1 %v3085_v19 }
0x1178   :  { %4809 = vmatmul.mubr.msk.f32.gmra.mxu0 %vm400_vm2, %v2799_v47  ;;  %4830 = vmatpush3.msra.mxu1 %v3085_v19 }
0x1179   :  { %4819 = vmatprep.mubr.msk.f32.mxu0 %vm400_vm2, %v2914_v39 }
0x117a   :  { %v3083_v49 = vpop.permute.xlu1 %3082 }
0x117b   :  { %4831 = vmatprep.subr.mxu1 %v3083_v49 }
0x117c   :  { %4820 = vmatmul.mubr.msk.f32.vlgmr.msra.gmra.mxu0 %vm400_vm2, %v2916_v29  ;;  %4832 = vmatpush3.msra.mxu1 %v3083_v49 }
0x117d   :  { %4822 = vmatprep.mubr.msk.f32.mxu0 %vm400_vm2, %v2918_v21 }
0x1180   :  { %4823 = vmatmul.mubr.msk.f32.gmra.mxu0 %vm400_vm2, %v2920_v15 }
0x1203   :  { %v6620_v28 = vpop.f32.mrf.mxu0 }
0x1205   :  { %v6622_v40 = vpop.f32.mrf.mxu0 }
0x1238   :  { %v6624_v46 = vpop.f32.mrf.mxu0 }
0x123a   :  { %v6626_v55 = vpop.f32.mrf.mxu0 }
0x123c   :  { %v4821_v56 = vpop.f32.mrf.mxu0 }
0x123d   :  { %v3031_v58 = vmul.f32 0.17677669, %v4821_v56 }
0x123e   :  { %v3011_v35 = vpop.f32.mrf.mxu0 }
0x123f   :  { %v3035_v62 = vadd.f32 %v6491_v16, %v3031_v58  ;;  %v3030_v0 = vmul.f32 0.17677669, %v3011_v35 }
0x1240   :  { %v4824_v41 = vpop.f32.mrf.mxu0 }
0x1241   :  { %v3034_v37 = vadd.f32 %v6498_v14, %v3030_v0  ;;  %v3033_v52 = vmul.f32 0.17677669, %v4824_v41  ;;  %v3041_v63 = vsel %vm400_vm2, %v3035_v62, -inf }
0x1242   :  { %3042 = vmax.xlane.f32.xlu1 %v3041_v63  ;;  %v3021_v39 = vpop.f32.mrf.mxu0 }
0x1243   :  { %v3037_v29 = vadd.f32 %v6512_v33, %v3033_v52  ;;  %v3032_v21 = vmul.f32 0.17677669, %v3021_v39  ;;  %v3038_v15 = vsel %vm400_vm2, %v3034_v37, -inf }
0x1244   :  { %3039 = vmax.xlane.f32.xlu0 %v3038_v15 }
0x1245   :  { %v3036_v32 = vadd.f32 %v6505_v3, %v3032_v21  ;;  %v3047_v2 = vsel %vm400_vm2, %v3037_v29, -inf }
0x1247   :  { %v3044_v44 = vsel %vm400_vm2, %v3036_v32, -inf }
0x1248   :  { %3048 = vmax.xlane.f32.xlu0 %v3047_v2 }
0x124c   :  { %3045 = vmax.xlane.f32.xlu0 %v3044_v44 }
0x1253   :  { %3203 = vrot.lane.b32.xlu1 %v6449_v60, %s5265_s28 }
0x1262   :  { %3205 = vrot.lane.b32.xlu0 %v6445_v7, %s5265_s28 }
0x12cb   :  { %v3043_v8 = vpop.xlane.xlu1 %3042 }
0x12cc   :  { %v3051_v13 = vsub.f32 %v3035_v62, %v3043_v8 }
0x12cd   :  { %v3040_v19 = vpop.xlane.xlu0 %3039 }
0x12ce   :  { %v3056_v47 = vmul.f32 1.442695, %v3051_v13  ;;  %v3050_v49 = vsub.f32 %v3034_v37, %v3040_v19 }
0x12d0   :  { %5094 = vpow2.f32 %v3056_v47  ;;  %v3054_v56 = vmul.f32 1.442695, %v3050_v49 }
0x12d1   :  { %v3049_v58 = vpop.xlane.xlu0 %3048 }
0x12d2   :  { %5096 = vpow2.f32 %v3054_v56  ;;  %v3053_v62 = vsub.f32 %v3037_v29, %v3049_v58 }
0x12d4   :  { %v3060_v63 = vmul.f32 1.442695, %v3053_v62  ;;  %v5197_v62 = vld [vmem:[%s7000_s10 + $0x68] sm:$0xff] }
0x12d5   :  { %v3046_v35 = vpop.xlane.xlu0 %3045 }
0x12d6   :  { %v3052_v37 = vsub.f32 %v3036_v32, %v3046_v35  ;;  %5098 = vpow2.f32 %v3060_v63  ;;  %v5199_v63 = vld [vmem:[%s7000_s10 + $0x58] sm:$0xff] }
0x12d8   :  { %v3058_v39 = vmul.f32 1.442695, %v3052_v37  ;;  %v5198_v37 = vld [vmem:[%s7000_s10 + $0x60] sm:$0xff] }
0x12d9   :  { %v3206_v0 = vpop.permute.xlu0 %3205 }
0x12da   :  { %4839 = vmatprep.subr.msk.mxu1 %vm400_vm2, %v3206_v0  ;;  %5100 = vpow2.f32 %v3058_v39  ;;  %v5200_v39 = vld [vmem:[%s7000_s10 + $0x50] sm:$0xff] }
0x12dd   :  { %v5095_v41 = vpop.eup %5094 }
0x12de   :  { %v3065_v52 = vsel %vm400_vm2, %v5095_v41, 0.0 }
0x12df   :  { %v5097_v60 = vpop.eup %5096  ;;  %3066 = vadd.xlane.f32.xlu0 %v3065_v52  ;;  %v5195_v52 = vld [vmem:[%s7000_s10 + $0x78] sm:$0xff] }
0x12e0   :  { %v3062_v7 = vsel %vm400_vm2, %v5097_v60, 0.0 }
0x12e1   :  { %3063 = vadd.xlane.f32.xlu1 %v3062_v7  ;;  %v5196_v7 = vld [vmem:[%s7000_s10 + $0x70] sm:$0xff] }
0x12e3   :  { %v5099_v21 = vpop.eup %5098 }
0x12e4   :  { %v3071_v2 = vsel %vm400_vm2, %v5099_v21, 0.0 }
0x12e7   :  { %v5101_v15 = vpop.eup %5100 }
0x12e8   :  { %v3068_v44 = vsel %vm400_vm2, %v5101_v15, 0.0 }
0x12f2   :  { %3199 = vrot.lane.b32.xlu1 %v6465_v22, %s5265_s28 }
0x12f5   :  { %3201 = vrot.lane.b32.xlu0 %v6458_v36, %s5265_s28  ;;  %v3204_v36 = vpop.permute.xlu1 %3203 }
0x1314   :  { %3072 = vadd.xlane.f32.xlu0 %v3071_v2  ;;  %v5203_v2 = vld [vmem:[%s7000_s10 + $0x38] sm:$0xff] }
0x1316   :  { %3069 = vadd.xlane.f32.xlu1 %v3068_v44  ;;  %v5204_v44 = vld [vmem:[%s7000_s10 + $0x30] sm:$0xff] }
0x1327   :  { %3193 = vrot.lane.b32.xlu1 %v6474_v25, %s5265_s28 }
0x132a   :  { %3191 = vrot.lane.b32.xlu0 %v6421_v48, %s5265_s28 }
0x132b   :  { %3197 = vrot.lane.b32.xlu1 %v6484_v20, %s5265_s28 }
0x132e   :  { %3195 = vrot.lane.b32.xlu0 %v6477_v51, %s5265_s28 }
0x1368   :  { %v3067_v22 = vpop.xlane.xlu0 %3066 }
0x1369   :  { %5102 = vrcp.f32 %v3067_v22  ;;  %v5206_v22 = vld [vmem:[%s7000_s10 + $0x20] sm:$0xff] }
0x136a   :  { %v3064_v29 = vpop.xlane.xlu1 %3063 }
0x136b   :  { %5104 = vrcp.f32 %v3064_v29  ;;  %v5207_v29 = vld [vmem:[%s7000_s10 + $0x18] sm:$0xff] }
0x136c   :  { %v3202_v48 = vpop.permute.xlu0 %3201 }
0x136e   :  { %v3200_v25 = vpop.permute.xlu1 %3199 }
0x1376   :  { %v5103_v32 = vpop.eup %5102 }
0x1377   :  { %v3079_v19 = vmul.f32 %v5103_v32, %v5095_v41  ;;  %v5208_v32 = vld [vmem:[%s7000_s10 + $0x10] sm:$0xff] }
0x1378   :  { %v5105_v8 = vpop.eup %5104 }
0x1379   :  { %v3078_v13 = vmul.f32 %v5105_v8, %v5097_v60  ;;  %v5209_v8 = vld [vmem:[%s7000_s10 + $0x8] sm:$0xff] }
0x137b   :  { %4833 = vmatprep.mubr.msk.f32.mxu1 %vm400_vm2, %v3078_v13  ;;  %v5210_v13 = vld [vmem:[%s7000_s10] sm:$0xff] }
0x137c   :  { %4834 = vmatmul.mubr.msk.f32.vlgmr.msra.gmra.mxu1 %vm400_vm2, %v3079_v19 }
0x137d   :  { %4840 = vmatpush3.xpose.msk.msra.mxu1 %vm400_vm2, %v3206_v0 }
0x137e   :  { %4841 = vmatprep.subr.msk.mxu1 %vm400_vm2, %v3204_v36 }
0x1381   :  { %4842 = vmatpush3.xpose.msk.msra.mxu1 %vm400_vm2, %v3204_v36  ;;  %v5205_v36 = vld [vmem:[%s7000_s10 + $0x28] sm:$0xff] }
0x1382   :  { %4843 = vmatprep.subr.msk.mxu1 %vm400_vm2, %v3202_v48 }
0x1385   :  { %4844 = vmatpush3.xpose.msk.msra.mxu1 %vm400_vm2, %v3202_v48 }
0x1386   :  { %4845 = vmatprep.subr.msk.mxu1 %vm400_vm2, %v3200_v25 }
0x1389   :  { %4846 = vmatpush3.xpose.msk.msra.mxu1 %vm400_vm2, %v3200_v25 }
0x138a   :  { %4878 = vmatprep.subr.mxu1 %v5262_v61 }
0x139d   :  { %v3073_v51 = vpop.xlane.xlu0 %3072 }
0x139e   :  { %5106 = vrcp.f32 %v3073_v51 }
0x139f   :  { %v3070_v20 = vpop.xlane.xlu1 %3069 }
0x13a0   :  { %5108 = vrcp.f32 %v3070_v20 }
0x13a1   :  { %v3192_v58 = vpop.permute.xlu0 %3191 }
0x13a3   :  { %v3194_v0 = vpop.permute.xlu1 %3193 }
0x13a5   :  { %v3196_v41 = vpop.permute.xlu0 %3195 }
0x13a7   :  { %v3198_v60 = vpop.permute.xlu1 %3197 }
0x13ab   :  { %v5107_v47 = vpop.eup %5106 }
0x13ac   :  { %v3081_v35 = vmul.f32 %v5107_v47, %v5099_v21  ;;  %v5201_v21 = vld [vmem:[%s7000_s10 + $0x48] sm:$0xff] }
0x13ad   :  { %v5109_v49 = vpop.eup %5108 }
0x13ae   :  { %v3080_v56 = vmul.f32 %v5109_v49, %v5101_v15  ;;  %v5202_v15 = vld [vmem:[%s7000_s10 + $0x40] sm:$0xff] }
0x13b0   :  { %4836 = vmatprep.mubr.msk.f32.mxu1 %vm400_vm2, %v3080_v56 }
0x13b1   :  { %4837 = vmatmul.mubr.msk.f32.gmra.mxu1 %vm400_vm2, %v3081_v35 }
0x13b2   :  { %4847 = vmatprep.mubr.msk.f32.mxu1 %vm400_vm2, %v3192_v58 }
0x13b5   :  { %4848 = vmatmul.mubr.msk.f32.vlgmr.msra.gmra.mxu1 %vm400_vm2, %v3194_v0 }
0x13b6   :  { %4850 = vmatprep.mubr.msk.f32.mxu1 %vm400_vm2, %v3196_v41  ;;  %4879 = vmatpush3.msra.mxu1 %v5195_v52 }
0x13b7   :  { %4880 = vmatprep.subr.mxu1 %v5262_v61 }
0x13b8   :  { %4881 = vmatpush3.msra.mxu1 %v5196_v7 }
0x13b9   :  { %4851 = vmatmul.mubr.msk.f32.gmra.mxu1 %vm400_vm2, %v3198_v60  ;;  %4882 = vmatprep.subr.mxu1 %v5262_v61 }
0x13ba   :  { %4883 = vmatpush3.msra.mxu1 %v5197_v62  ;;  %4910 = vmatprep.mubr.msk.f32.mxu1 %vm5266_vm3, %v5262_v61 }
0x13bb   :  { %4884 = vmatprep.subr.mxu1 %v5262_v61 }
0x13bc   :  { %4885 = vmatpush3.msra.mxu1 %v5198_v37 }
0x13bd   :  { %4886 = vmatprep.subr.mxu1 %v5262_v61 }
0x13be   :  { %4887 = vmatpush3.msra.mxu1 %v5199_v63 }
0x13bf   :  { %4888 = vmatprep.subr.mxu1 %v5262_v61 }
0x13c0   :  { %4889 = vmatpush3.msra.mxu1 %v5200_v39 }
0x13c1   :  { %4890 = vmatprep.subr.mxu1 %v5262_v61 }
0x13c2   :  { %4891 = vmatpush3.msra.mxu1 %v5201_v21 }
0x13c3   :  { %4892 = vmatprep.subr.mxu1 %v5262_v61 }
0x13c4   :  { %4893 = vmatpush3.msra.mxu1 %v5202_v15 }
0x13c5   :  { %4894 = vmatprep.subr.mxu1 %v5262_v61 }
0x13c6   :  { %4895 = vmatpush3.msra.mxu1 %v5203_v2 }
0x13c7   :  { %4896 = vmatprep.subr.mxu1 %v5262_v61 }
0x13c8   :  { %4897 = vmatpush3.msra.mxu1 %v5204_v44 }
0x13c9   :  { %4898 = vmatprep.subr.mxu1 %v5262_v61 }
0x13ca   :  { %4899 = vmatpush3.msra.mxu1 %v5205_v36 }
0x13cb   :  { %4900 = vmatprep.subr.mxu1 %v5262_v61 }
0x13cc   :  { %4901 = vmatpush3.msra.mxu1 %v5206_v22 }
0x13cd   :  { %4902 = vmatprep.subr.mxu1 %v5262_v61 }
0x13ce   :  { %4903 = vmatpush3.msra.mxu1 %v5207_v29 }
0x13cf   :  { %4904 = vmatprep.subr.mxu1 %v5262_v61 }
0x13d0   :  { %4905 = vmatpush3.msra.mxu1 %v5208_v32 }
0x13d1   :  { %4906 = vmatprep.subr.mxu1 %v5262_v61 }
0x13d2   :  { %4907 = vmatpush3.msra.mxu1 %v5209_v8 }
0x13d3   :  { %4908 = vmatprep.subr.mxu1 %v5262_v61 }
0x13d4   :  { %4909 = vmatpush3.msra.mxu1 %v5210_v13 }
0x143c   :  { %v6738_v19 = vpop.f32.mrf.mxu1 }
0x143e   :  { %v6740_v48 = vpop.f32.mrf.mxu1 }
0x1471   :  { %v4838_v25 = vpop.f32.mrf.mxu1 }
0x1473   :  { %v3182_v51 = vpop.f32.mrf.mxu1 }
0x1475   :  { %v4849_v20 = vpop.f32.mrf.mxu1 }
0x1476   :  { %v3309_v47 = vmul.f32 0.17677669, %v4849_v20 }
0x1477   :  { %v3289_v49 = vpop.f32.mrf.mxu1 }
0x1478   :  { %v3313_v56 = vadd.f32 %v6491_v16, %v3309_v47  ;;  %v3308_v58 = vmul.f32 0.17677669, %v3289_v49 }
0x1479   :  { %v4852_v35 = vpop.f32.mrf.mxu1 }
0x147a   :  { %v3312_v0 = vadd.f32 %v6498_v14, %v3308_v58  ;;  %v3319_v41 = vsel %vm400_vm2, %v3313_v56, -inf  ;;  %v3311_v60 = vmul.f32 0.17677669, %v4852_v35 }
0x147b   :  { %3320 = vmax.xlane.f32.xlu1 %v3319_v41  ;;  %v3299_v52 = vpop.f32.mrf.mxu1 }
0x147c   :  { %v3310_v7 = vmul.f32 0.17677669, %v3299_v52  ;;  %v3316_v62 = vsel %vm400_vm2, %v3312_v0, -inf  ;;  %v3315_v63 = vadd.f32 %v6512_v33, %v3311_v60 }
0x147d   :  { %3317 = vmax.xlane.f32.xlu0 %v3316_v62 }
0x147e   :  { %v3314_v37 = vadd.f32 %v6505_v3, %v3310_v7  ;;  %v3325_v16 = vsel %vm400_vm2, %v3315_v63, -inf }
0x1480   :  { %v3322_v39 = vsel %vm400_vm2, %v3314_v37, -inf }
0x1481   :  { %3323 = vmax.xlane.f32.xlu0 %v3322_v39 }
0x1485   :  { %3326 = vmax.xlane.f32.xlu0 %v3325_v16 }
0x148c   :  { %3366 = vrot.lane.b32.xlu1 %v6426_v59, %s5265_s28 }
0x1504   :  { %v3321_v14 = vpop.xlane.xlu1 %3320 }
0x1505   :  { %v3329_v21 = vsub.f32 %v3313_v56, %v3321_v14 }
0x1506   :  { %v3318_v15 = vpop.xlane.xlu0 %3317 }
0x1507   :  { %v3334_v2 = vmul.f32 1.442695, %v3329_v21  ;;  %v3328_v44 = vsub.f32 %v3312_v0, %v3318_v15 }
0x1508   :  { %v3367_v36 = vpop.permute.xlu1 %3366 }
0x1509   :  { %5110 = vpow2.f32 %v3334_v2  ;;  %v3332_v22 = vmul.f32 1.442695, %v3328_v44  ;;  %4853 = vmatprep.subr.mxu0 %v3367_v36 }
0x150a   :  { %4854 = vmatpush3.msra.mxu0 %v3367_v36  ;;  %v3324_v3 = vpop.xlane.xlu0 %3323 }
0x150b   :  { %5112 = vpow2.f32 %v3332_v22  ;;  %v3330_v56 = vsub.f32 %v3314_v37, %v3324_v3 }
0x150d   :  { %v3336_v58 = vmul.f32 1.442695, %v3330_v56 }
0x150e   :  { %v3327_v33 = vpop.xlane.xlu0 %3326 }
0x150f   :  { %v3331_v29 = vsub.f32 %v3315_v63, %v3327_v33 }
0x1511   :  { %v3338_v32 = vmul.f32 1.442695, %v3331_v29 }
0x1513   :  { %5114 = vpow2.f32 %v3338_v32 }
0x1514   :  { %5116 = vpow2.f32 %v3336_v58 }
0x1516   :  { %v5111_v8 = vpop.eup %5110 }
0x1517   :  { %v3343_v13 = vsel %vm400_vm2, %v5111_v8, 0.0 }
0x1518   :  { %v5113_v59 = vpop.eup %5112  ;;  %3344 = vadd.xlane.f32.xlu0 %v3343_v13 }
0x1519   :  { %v3340_v20 = vsel %vm400_vm2, %v5113_v59, 0.0 }
0x151a   :  { %3341 = vadd.xlane.f32.xlu1 %v3340_v20 }
0x1520   :  { %v5115_v47 = vpop.eup %5114 }
0x1521   :  { %v3349_v49 = vsel %vm400_vm2, %v5115_v47, 0.0  ;;  %v5117_v35 = vpop.eup %5116 }
0x1522   :  { %3350 = vadd.xlane.f32.xlu0 %v3349_v49 }
0x152b   :  { %3362 = vrot.lane.b32.xlu1 %v6434_v5, %s5265_s28  ;;  %v3346_v5 = vsel %vm400_vm2, %v5117_v35, 0.0 }
0x1538   :  { %3364 = vrot.lane.b32.xlu0 %v6429_v1, %s5265_s28 }
0x153c   :  { %3479 = vrot.lane.b32.xlu0 %v6624_v46, %s5265_s28 }
0x1540   :  { %3477 = vrot.lane.b32.xlu0 %v6626_v55, %s5265_s28 }
0x1544   :  { %3493 = vrot.lane.b32.xlu0 %v3182_v51, %s5264_s27 }
0x1548   :  { %3473 = vrot.lane.b32.xlu0 %v6622_v40, %s5265_s28 }
0x154f   :  { %3347 = vadd.xlane.f32.xlu1 %v3346_v5  ;;  %v5211_v5 = vld [vmem:[%s6997_s7] sm:$0xf] }
0x1560   :  { %3360 = vrot.lane.b32.xlu1 %v6439_v31, %s5265_s28 }
0x1564   :  { %3495 = vrot.lane.b32.xlu1 %v4838_v25, %s5264_s27 }
0x1568   :  { %3475 = vrot.lane.b32.xlu1 %v6620_v28, %s5265_s28 }
0x156c   :  { %3491 = vrot.lane.b32.xlu1 %v6738_v19, %s5264_s27 }
0x15a1   :  { %v3345_v46 = vpop.xlane.xlu0 %3344 }
0x15a3   :  { %v3342_v1 = vpop.xlane.xlu1 %3341 }
0x15a4   :  { %5118 = vrcp.f32 %v3342_v1 }
0x15a5   :  { %5120 = vrcp.f32 %v3345_v46 }
0x15a7   :  { %v3363_v0 = vpop.permute.xlu1 %3362 }
0x15ab   :  { %v3351_v55 = vpop.xlane.xlu0 %3350 }
0x15ac   :  { %5122 = vrcp.f32 %v3351_v55  ;;  %v5212_v55 = vld [vmem:[%s7001_s11] ss:$0 sm:$0xff] }
0x15af   :  { %v3365_v40 = vpop.permute.xlu0 %3364 }
0x15b0   :  { %4855 = vmatprep.subr.mxu0 %v3365_v40 }
0x15b1   :  { %v5119_v51 = vpop.eup %5118  ;;  %4856 = vmatpush3.msra.mxu0 %v3365_v40 }
0x15b2   :  { %4857 = vmatprep.subr.mxu0 %v3363_v0  ;;  %v3356_v41 = vmul.f32 %v5119_v51, %v5113_v59  ;;  %v5121_v28 = vpop.eup %5120 }
0x15b3   :  { %4858 = vmatpush3.msra.mxu0 %v3363_v0  ;;  %v3357_v25 = vmul.f32 %v5121_v28, %v5111_v8  ;;  %v3480_v14 = vpop.permute.xlu0 %3479  ;;  %v5213_v0 = vld [vmem:[%s6994_s4] sm:$0xff]  ;;  %v5216_v28 = vld [vmem:[%s6994_s4 + $0x18] sm:$0xff] }
0x15b4   :  { %4861 = vmatprep.mubr.msk.f32.mxu0 %vm400_vm2, %v3356_v41  ;;  %v3520_v3 = vsel %vm400_vm2, %v6564_v9, %v3480_v14  ;;  %v5214_v41 = vld [vmem:[%s6994_s4 + $0x8] sm:$0xff] }
0x15b7   :  { %v3478_v15 = vpop.permute.xlu0 %3477 }
0x15b8   :  { %v3519_v32 = vsel %vm400_vm2, %v6566_v30, %v3478_v15 }
0x15b9   :  { %v5123_v52 = vpop.eup %5122 }
0x15ba   :  { %v3359_v62 = vmul.f32 %v5123_v52, %v5115_v47  ;;  %v5219_v52 = vld [vmem:[%s6994_s4 + $0x30] sm:$0xff] }
0x15bb   :  { %v3494_v44 = vpop.permute.xlu0 %3493 }
0x15bc   :  { %v3523_v8 = vsel %vm1553_vm5, %v3519_v32, %v3494_v44 }
0x15bf   :  { %v3474_v22 = vpop.permute.xlu0 %3473 }
0x15c0   :  { %v3517_v30 = vsel %vm400_vm2, %v6562_v53, %v3474_v22 }
0x15d8   :  { %v3348_v31 = vpop.xlane.xlu1 %3347 }
0x15d9   :  { %5124 = vrcp.f32 %v3348_v31  ;;  %v5215_v31 = vld [vmem:[%s6994_s4 + $0x10] sm:$0xff] }
0x15dc   :  { %v3361_v19 = vpop.permute.xlu1 %3360 }
0x15dd   :  { %4859 = vmatprep.subr.mxu0 %v3361_v19 }
0x15de   :  { %4860 = vmatpush3.msra.mxu0 %v3361_v19  ;;  %v5217_v19 = vld [vmem:[%s6994_s4 + $0x20] sm:$0xff] }
0x15df   :  { %4862 = vmatmul.mubr.msk.f32.vlgmr.msra.gmra.mxu0 %vm400_vm2, %v3357_v25  ;;  %4867 = vmatprep.subr.mxu0 %v5262_v61  ;;  %v5218_v25 = vld [vmem:[%s6994_s4 + $0x28] sm:$0xff] }
0x15e0   :  { %v3496_v21 = vpop.permute.xlu1 %3495 }
0x15e1   :  { %v3524_v33 = vsel %vm1553_vm5, %v3520_v3, %v3496_v21 }
0x15e4   :  { %v3476_v2 = vpop.permute.xlu1 %3475 }
0x15e5   :  { %v3518_v59 = vsel %vm400_vm2, %v6560_v27, %v3476_v2 }
0x15e6   :  { %v5125_v60 = vpop.eup %5124 }
0x15e7   :  { %v3358_v7 = vmul.f32 %v5125_v60, %v5117_v35  ;;  %v5220_v60 = vld [vmem:[%s6994_s4 + $0x38] sm:$0xff] }
0x15e8   :  { %v3492_v36 = vpop.permute.xlu1 %3491 }
0x15e9   :  { %4864 = vmatprep.mubr.msk.f32.mxu0 %vm400_vm2, %v3358_v7  ;;  %v3522_v9 = vsel %vm1553_vm5, %v3518_v59, %v3492_v36  ;;  %v5221_v7 = vld [vmem:[%s6994_s4 + $0x40] sm:$0x1] }
0x15ea   :  { %4865 = vmatmul.mubr.msk.f32.gmra.mxu0 %vm400_vm2, %v3359_v62 }
0x15eb   :  { %4875 = vmatprep.mubr.msk.f32.mxu0 %vm5266_vm3, %v5262_v61 }
0x169f   :  { %v4863_v37 = vpop.f32.mrf.mxu0 }
0x16a1   :  { %v3450_v63 = vpop.f32.mrf.mxu0 }
0x16aa   :  { %v4866_v39 = vpop.f32.mrf.mxu0 }
0x16ab   :  { %3511 = vrot.lane.b32.xlu1 %v4866_v39, %s5263_s9 }
0x16ac   :  { %v3460_v16 = vpop.f32.mrf.mxu0 }
0x16ad   :  { %3509 = vrot.lane.b32.xlu0 %v3460_v16, %s5263_s9 }
0x16af   :  { %3507 = vrot.lane.b32.xlu1 %v4863_v37, %s5263_s9 }
0x16b1   :  { %3489 = vrot.lane.b32.xlu0 %v6740_v48, %s5264_s27 }
0x16b3   :  { %3505 = vrot.lane.b32.xlu1 %v3450_v63, %s5263_s9  ;;  %s5268_s9 = smov [#allocation2]  }
0x16b4   :  { %s3945_s27 = sshll.u32 %s5268_s9, 4  ;;  %s3946_s27 = int_to_ptr.vmem [resolvable:$true] %s3945_s27 }
0x16b5   :  { %s5240_s28 = scalar_lea.vmem %s3946_s27, 1152  ;;  %p5245_p1 = scmp.lt.s32.totalorder %s3946_s27, %s3946_s27 }
0x16b6   :  { %p5241_p0 = scmp.ne.s32.totalorder %s3946_s27, %s5240_s28  ;;  %p5246_p2 = scmp.lt.s32.totalorder %s5240_s28, %s5240_s28 }
0x16b8   :  { %p5247_p3 = por %p5246_p2, %p5245_p1 }
0x16ba   :  { %p5248_p4 = pnand %p5247_p3, %p5241_p0 }
0x171d   :  { %v3512_v29 = vpop.permute.xlu1 %3511 }
0x171e   :  { %v3528_v48 = vsel %vm1558_vm4, %v3524_v33, %v3512_v29 }
0x171f   :  { %4868 = vmatpush3.msra.mxu0 %v3528_v48  ;;  %v3510_v13 = vpop.permute.xlu0 %3509  ;;  %v3677_v48 = vmul.f32 %v6274_v12, %v6096_v42 }
0x1720   :  { %v3527_v20 = vsel %vm1558_vm4, %v3523_v8, %v3510_v13  ;;  %4869 = vmatprep.subr.mxu0 %v5262_v61  ;;  %v3676_v13 = vmul.f32 %v6272_v10, %v6094_v50  ;;  %v3673_v50 = vmul.f32 %v6266_v17, %v6106_v43  ;;  %v3670_v43 = vmul.f32 %v6260_v34, %v6135_v11  ;;  %v5223_v11 = vld [vmem:[%s6991_s1 + $0x8] sm:$0xff] }
0x1721   :  { %v3508_v47 = vpop.permute.xlu1 %3507  ;;  %4870 = vmatpush3.msra.mxu0 %v3527_v20 }
0x1722   :  { %v3526_v49 = vsel %vm1558_vm4, %v3522_v9, %v3508_v47  ;;  %4871 = vmatprep.subr.mxu0 %v5262_v61  ;;  %v3675_v9 = vmul.f32 %v6270_v57, %v6098_v23  ;;  %v3672_v23 = vmul.f32 %v6264_v54, %v6116_v45  ;;  %v3669_v45 = vmul.f32 %v6258_v18, %v6142_v24  ;;  %v5224_v24 = vld [vmem:[%s6991_s1 + $0x10] sm:$0xff] }
0x1723   :  { %4872 = vmatpush3.msra.mxu0 %v3526_v49  ;;  %v3490_v56 = vpop.permute.xlu0 %3489  ;;  %v3674_v49 = vmul.f32 %v6268_v6, %v6100_v26  ;;  %v3671_v26 = vmul.f32 %v6262_v38, %v6123_v4  ;;  %v5222_v4 = vld [vmem:[%s6991_s1] sm:$0xff] }
0x1724   :  { %v3521_v58 = vsel %vm1553_vm5, %v3517_v30, %v3490_v56  ;;  %4873 = vmatprep.subr.mxu0 %v5262_v61 }
0x1725   :  { %v3506_v27 = vpop.permute.xlu1 %3505 }
0x1726   :  { %v3525_v35 = vsel %vm1558_vm4, %v3521_v58, %v3506_v27 }
0x1727   :  { %4874 = vmatpush3.msra.mxu0 %v3525_v35 }
0x1728   :  { %4876 = vmatmul.mubr.msk.f32.vlgmr.msra.gmra.mxu0 %vm400_vm2, %v5211_v5  ;;  %4913 = vmatprep.subr.mxu0 %v5262_v61 }
0x1729   :  { %4915 = vmatprep.mubr.msk.f32.mxu0 %vm5266_vm3, %v5262_v61 }
0x17e8   :  { %v3595_v53 = vpop.f32.mrf.mxu0 }
0x17e9   :  { %4911 = vmatmul.mubr.f32.vlgmr.msra.gmra.mxu1 %v3595_v53  ;;  %v5225_v53 = vld [vmem:[%s6991_s1 + $0x18] sm:$0xff] }
0x17ea   :  { %v4877_v1 = vpop.f32.mrf.mxu0 }
0x17eb   :  { %v5226_v1 = vld [vmem:[%s6991_s1 + $0x20] sm:$0xff] }
0x18a9   :  { %v3665_v46 = vpop.f32.mrf.mxu1 }
0x18aa   :  { %v3666_v40 = vadd.f32 %v5212_v55, %v3665_v46  ;;  %v5227_v46 = vld [vmem:[%s6991_s1 + $0x28] sm:$0xff]  ;;  %v5228_v55 = vld [vmem:[%s6991_s1 + $0x30] sm:$0xff] }
0x18ab   :  { %v4912_v51 = vpop.f32.mrf.mxu1 }
0x18ac   :  { %4914 = vmatpush3.msk.msra.mxu0 %vm1830_vm6, %v3666_v40  ;;  %v5229_v40 = vld [vmem:[%s6991_s1 + $0x38] sm:$0xff]  ;;  %v5230_v51 = vld [vmem:[%s6991_s1 + $0x40] sm:$0x1] }
0x18ad   :  { %4916 = vmatmul.mubr.msk.f32.vlgmr.msra.gmra.mxu0 %vm1802_vm7, %v5213_v0  ;;  %4942 = vmatprep.subr.mxu0 %v5262_v61  ;;  %v5231_v0 = vld [vmem:[%s6990_s0] sm:$0xff] }
0x18ae   :  { %4918 = vmatprep.mubr.msk.f32.mxu0 %vm5266_vm3, %v5262_v61 }
0x18b1   :  { %4919 = vmatmul.mubr.msk.f32.gmra.mxu0 %vm1802_vm7, %v5214_v41  ;;  %v2102_v41 = vadd.f32 %v5231_v0, %v6258_v18 }
0x18b2   :  { %4921 = vmatprep.mubr.msk.f32.mxu0 %vm5266_vm3, %v5262_v61 }
0x18b5   :  { %4922 = vmatmul.mubr.msk.f32.gmra.mxu0 %vm1802_vm7, %v5215_v31 }
0x18b6   :  { %4924 = vmatprep.mubr.msk.f32.mxu0 %vm5266_vm3, %v5262_v61 }
0x18b9   :  { %4925 = vmatmul.mubr.msk.f32.gmra.mxu0 %vm1802_vm7, %v5216_v28 }
0x18ba   :  { %4927 = vmatprep.mubr.msk.f32.mxu0 %vm5266_vm3, %v5262_v61 }
0x18bd   :  { %4928 = vmatmul.mubr.msk.f32.gmra.mxu0 %vm1802_vm7, %v5217_v19 }
0x18be   :  { %4930 = vmatprep.mubr.msk.f32.mxu0 %vm5266_vm3, %v5262_v61 }
0x18c1   :  { %4931 = vmatmul.mubr.msk.f32.gmra.mxu0 %vm1802_vm7, %v5218_v25 }
0x18c2   :  { %4933 = vmatprep.mubr.msk.f32.mxu0 %vm5266_vm3, %v5262_v61 }
0x18c5   :  { %4934 = vmatmul.mubr.msk.f32.gmra.mxu0 %vm1802_vm7, %v5219_v52 }
0x18c6   :  { %4936 = vmatprep.mubr.msk.f32.mxu0 %vm5266_vm3, %v5262_v61 }
0x18c9   :  { %4937 = vmatmul.mubr.msk.f32.gmra.mxu0 %vm1802_vm7, %v5220_v60 }
0x18ca   :  { %4939 = vmatprep.mubr.msk.f32.mxu0 %vm5266_vm3, %v5262_v61 }
0x18cd   :  { %4940 = vmatmul.mubr.msk.f32.gmra.mxu0 %vm1802_vm7, %v5221_v7 }
0x18ce   :  { %4960 = vmatprep.mubr.msk.f32.mxu0 %vm5266_vm3, %v5262_v61 }
0x196d   :  { %v3747_v62 = vpop.f32.mrf.mxu0 }
0x196e   :  { %v3791_v5 = vadd.f32 %v3747_v62, %v3669_v45 }
0x196f   :  { %v4917_v37 = vpop.f32.mrf.mxu0 }
0x1971   :  { %v3752_v63 = vpop.f32.mrf.mxu0 }
0x1972   :  { %v3792_v35 = vadd.f32 %v3752_v63, %v3670_v43  ;;  %v5233_v63 = vld [vmem:[%s6990_s0 + $0x10] sm:$0xff] }
0x1973   :  { %v4920_v39 = vpop.f32.mrf.mxu0  ;;  %v2104_v18 = vadd.f32 %v5233_v63, %v6262_v38  ;;  %v5235_v38 = vld [vmem:[%s6990_s0 + $0x20] sm:$0xff] }
0x1975   :  { %v3757_v16 = vpop.f32.mrf.mxu0 }
0x1976   :  { %v3793_v27 = vadd.f32 %v3757_v16, %v3671_v26 }
0x1977   :  { %v4923_v14 = vpop.f32.mrf.mxu0 }
0x1979   :  { %v3762_v21 = vpop.f32.mrf.mxu0 }
0x197a   :  { %v3794_v58 = vadd.f32 %v3762_v21, %v3672_v23 }
0x197b   :  { %v4926_v15 = vpop.f32.mrf.mxu0 }
0x197d   :  { %v3767_v2 = vpop.f32.mrf.mxu0 }
0x197e   :  { %v3795_v56 = vadd.f32 %v3767_v2, %v3673_v50 }
0x197f   :  { %v4929_v44 = vpop.f32.mrf.mxu0 }
0x1981   :  { %v3772_v36 = vpop.f32.mrf.mxu0 }
0x1982   :  { %v3796_v42 = vadd.f32 %v3772_v36, %v3674_v49 }
0x1983   :  { %v4932_v22 = vpop.f32.mrf.mxu0 }
0x1985   :  { %v3777_v3 = vpop.f32.mrf.mxu0 }
0x1986   :  { %v3797_v30 = vadd.f32 %v3777_v3, %v3675_v9  ;;  %v2106_v3 = vadd.f32 %v5235_v38, %v6266_v17  ;;  %v5237_v17 = vld [vmem:[%s6990_s0 + $0x30] sm:$0xff] }
0x1987   :  { %v4935_v33 = vpop.f32.mrf.mxu0 }
0x1989   :  { %v3782_v29 = vpop.f32.mrf.mxu0 }
0x198a   :  { %v3798_v47 = vadd.f32 %v3782_v29, %v3676_v13 }
0x198b   :  { %v4938_v32 = vpop.f32.mrf.mxu0 }
0x198d   :  { %v3787_v8 = vpop.f32.mrf.mxu0 }
0x198e   :  { %v3799_v59 = vadd.f32 %v3787_v8, %v3677_v48 }
0x198f   :  { %v4941_v20 = vpop.f32.mrf.mxu0 }
0x1990   :  { %4943 = vmatpush3.msk.msra.mxu0 %vm72_vm0, %v3799_v59 }
0x1991   :  { %4944 = vmatprep.subr.mxu0 %v5262_v61 }
0x1992   :  { %4945 = vmatpush3.msra.mxu0 %v3798_v47  ;;  %v2108_v47 = vadd.f32 %v5237_v17, %v6270_v57  ;;  %v5239_v57 = vld [vmem:[%s6990_s0 + $0x40] sm:$0x1] }
0x1993   :  { %4946 = vmatprep.subr.mxu0 %v5262_v61 }
0x1994   :  { %4947 = vmatpush3.msra.mxu0 %v3797_v30 }
0x1995   :  { %4948 = vmatprep.subr.mxu0 %v5262_v61 }
0x1996   :  { %4949 = vmatpush3.msra.mxu0 %v3796_v42 }
0x1997   :  { %4950 = vmatprep.subr.mxu0 %v5262_v61 }
0x1998   :  { %4951 = vmatpush3.msra.mxu0 %v3795_v56 }
0x1999   :  { %4952 = vmatprep.subr.mxu0 %v5262_v61 }
0x199a   :  { %4953 = vmatpush3.msra.mxu0 %v3794_v58 }
0x199b   :  { %4954 = vmatprep.subr.mxu0 %v5262_v61 }
0x199c   :  { %4955 = vmatpush3.msra.mxu0 %v3793_v27  ;;  %v2110_v27 = vadd.f32 %v5239_v57, %v6274_v12 }
0x199d   :  { %4956 = vmatprep.subr.mxu0 %v5262_v61 }
0x199e   :  { %4957 = vmatpush3.msra.mxu0 %v3792_v35 }
0x199f   :  { %4958 = vmatprep.subr.mxu0 %v5262_v61 }
0x19a0   :  { %4959 = vmatpush3.msra.mxu0 %v3791_v5 }
0x19a1   :  { %4961 = vmatmul.mubr.msk.f32.vlgmr.msra.gmra.mxu0 %vm59_vm1, %v5222_v4 }
0x19a2   :  { %4963 = vmatprep.mubr.msk.f32.mxu0 %vm5266_vm3, %v5262_v61 }
0x19a5   :  { %4964 = vmatmul.mubr.msk.f32.gmra.mxu0 %vm59_vm1, %v5223_v11 }
0x19a6   :  { %4966 = vmatprep.mubr.msk.f32.mxu0 %vm5266_vm3, %v5262_v61 }
0x19a9   :  { %4967 = vmatmul.mubr.msk.f32.gmra.mxu0 %vm59_vm1, %v5224_v24 }
0x19aa   :  { %4969 = vmatprep.mubr.msk.f32.mxu0 %vm5266_vm3, %v5262_v61 }
0x19ad   :  { %4970 = vmatmul.mubr.msk.f32.gmra.mxu0 %vm59_vm1, %v5225_v53 }
0x19ae   :  { %4972 = vmatprep.mubr.msk.f32.mxu0 %vm5266_vm3, %v5262_v61 }
0x19b1   :  { %4973 = vmatmul.mubr.msk.f32.gmra.mxu0 %vm59_vm1, %v5226_v1 }
0x19b2   :  { %4975 = vmatprep.mubr.msk.f32.mxu0 %vm5266_vm3, %v5262_v61 }
0x19b5   :  { %4976 = vmatmul.mubr.msk.f32.gmra.mxu0 %vm59_vm1, %v5227_v46 }
0x19b6   :  { %4978 = vmatprep.mubr.msk.f32.mxu0 %vm5266_vm3, %v5262_v61 }
0x19b9   :  { %4979 = vmatmul.mubr.msk.f32.gmra.mxu0 %vm59_vm1, %v5228_v55 }
0x19ba   :  { %4981 = vmatprep.mubr.msk.f32.mxu0 %vm5266_vm3, %v5262_v61 }
0x19bd   :  { %4982 = vmatmul.mubr.msk.f32.gmra.mxu0 %vm59_vm1, %v5229_v40 }
0x19be   :  { %4984 = vmatprep.mubr.msk.f32.mxu0 %vm5266_vm3, %v5262_v61  ;;  %v5232_v61 = vld [vmem:[%s6990_s0 + $0x8] sm:$0xff] }
0x19bf   :  { %v2103_v52 = vadd.f32 %v5232_v61, %v6260_v34  ;;  %v5234_v34 = vld [vmem:[%s6990_s0 + $0x18] sm:$0xff] }
0x19c0   :  { %v2105_v15 = vadd.f32 %v5234_v34, %v6264_v54  ;;  %v5236_v54 = vld [vmem:[%s6990_s0 + $0x28] sm:$0xff] }
0x19c1   :  { %4985 = vmatmul.mubr.msk.f32.gmra.mxu0 %vm59_vm1, %v5230_v51  ;;  %v2107_v8 = vadd.f32 %v5236_v54, %v6268_v6  ;;  %v5238_v6 = vld [vmem:[%s6990_s0 + $0x38] sm:$0xff] }
0x19c2   :  { %v2109_v23 = vadd.f32 %v5238_v6, %v6272_v10 }
0x1a61   :  { %v3869_v31 = vpop.f32.mrf.mxu0 }
0x1a62   :  { %v3913_v28 = vadd.f32 %v3869_v31, %v2102_v41 }
0x1a63   :  { %v4962_v19 = vpop.f32.mrf.mxu0 }
0x1a64   :  { %v3922_v25 = vmul.f32 0.33333334, %v3913_v28 }
0x1a65   :  { %v3874_v60 = vpop.f32.mrf.mxu0 }
0x1a66   :  { %3931 = vst [vmem:[#allocation2] sm:$0xff] %v3922_v25  ;;  %v3914_v7 = vadd.f32 %v3874_v60, %v2103_v52 }
0x1a67   :  { %v4965_v62 = vpop.f32.mrf.mxu0 }
0x1a68   :  { %v3923_v37 = vmul.f32 0.33333334, %v3914_v7 }
0x1a69   :  { %v3879_v39 = vpop.f32.mrf.mxu0 }
0x1a6a   :  { %3932 = vst [vmem:[#allocation2 + $0x8] sm:$0xff] %v3923_v37  ;;  %v3915_v16 = vadd.f32 %v3879_v39, %v2104_v18 }
0x1a6b   :  { %v4968_v14 = vpop.f32.mrf.mxu0 }
0x1a6c   :  { %v3924_v21 = vmul.f32 0.33333334, %v3915_v16 }
0x1a6d   :  { %v3884_v2 = vpop.f32.mrf.mxu0 }
0x1a6e   :  { %3933 = vst [vmem:[#allocation2 + $0x10] sm:$0xff] %v3924_v21  ;;  %v3916_v44 = vadd.f32 %v3884_v2, %v2105_v15 }
0x1a6f   :  { %v4971_v36 = vpop.f32.mrf.mxu0 }
0x1a70   :  { %v3925_v22 = vmul.f32 0.33333334, %v3916_v44 }
0x1a71   :  { %v3889_v33 = vpop.f32.mrf.mxu0 }
0x1a72   :  { %3934 = vst [vmem:[#allocation2 + $0x18] sm:$0xff] %v3925_v22  ;;  %v3917_v29 = vadd.f32 %v3889_v33, %v2106_v3 }
0x1a73   :  { %v4974_v32 = vpop.f32.mrf.mxu0 }
0x1a74   :  { %v3926_v48 = vmul.f32 0.33333334, %v3917_v29 }
0x1a75   :  { %v3894_v13 = vpop.f32.mrf.mxu0 }
0x1a76   :  { %3935 = vst [vmem:[#allocation2 + $0x20] sm:$0xff] %v3926_v48  ;;  %v3918_v59 = vadd.f32 %v3894_v13, %v2107_v8 }
0x1a77   :  { %v4977_v20 = vpop.f32.mrf.mxu0 }
0x1a78   :  { %v3927_v9 = vmul.f32 0.33333334, %v3918_v59 }
0x1a79   :  { %v3899_v49 = vpop.f32.mrf.mxu0 }
0x1a7a   :  { %3936 = vst [vmem:[#allocation2 + $0x28] sm:$0xff] %v3927_v9  ;;  %v3919_v30 = vadd.f32 %v3899_v49, %v2108_v47 }
0x1a7b   :  { %v4980_v50 = vpop.f32.mrf.mxu0 }
0x1a7c   :  { %v3928_v42 = vmul.f32 0.33333334, %v3919_v30 }
0x1a7d   :  { %v3904_v56 = vpop.f32.mrf.mxu0 }
0x1a7e   :  { %3937 = vst [vmem:[#allocation2 + $0x30] sm:$0xff] %v3928_v42  ;;  %v3920_v26 = vadd.f32 %v3904_v56, %v2109_v23 }
0x1a7f   :  { %v4983_v58 = vpop.f32.mrf.mxu0 }
0x1a80   :  { %v3929_v43 = vmul.f32 0.33333334, %v3920_v26 }
0x1a81   :  { %v3909_v45 = vpop.f32.mrf.mxu0 }
0x1a82   :  { %3938 = vst [vmem:[#allocation2 + $0x38] sm:$0xff] %v3929_v43  ;;  %v3921_v35 = vadd.f32 %v3909_v45, %v2110_v27 }
0x1a83   :  { %v4986_v5 = vpop.f32.mrf.mxu0 }
0x1a84   :  { %v3930_v4 = vmul.f32 0.33333334, %v3921_v35 }
0x1a86   :  { %3939 = vst [vmem:[#allocation2 + $0x40] sm:$0x1] %v3930_v4 }
0x1a87   :  { %5251 = shalt.err (!%p5248_p4)
}
0x1a88   :  { %s5269_s7 = smov 128   ;;  %s5270_s0 = smov 8  }
0x1a89   :  { %3951 = dma.vmem_to_hbm [thread:$0]  %s3946_s27, 1152, %s7002_s12, [#allocation3], %s5269_s7, %s5269_s7, %s5270_s0  }
0x1a8a   :  { %5260 = dma.done.wait [#allocation3], 1152  }
0x1a8b   :  { %5261 = vsyncadd [#allocation3], 4294966144 }
0x1a8c   :  { %3955 = vsyncpa [#allocation3], 1 }

</bundles_post_ra>
